<compile_context>
chip_gen: v7x
topology: tpu7x:2x2x1
jax: 0.10.0
libtpu: 0.0.40
codegen_flags: <defaults>
</compile_context>

<pallas_src>
import functools

import jax
import jax.numpy as jnp
from jax.experimental import pallas as pl
from jax.experimental.pallas import tpu as pltpu


# ----------------------------------------------------------------------------
# Fused Pallas kernel: one grid step == one batch image
# ----------------------------------------------------------------------------

def _mbconv_kernel(x_ref, *rest, K, H, W, pad, has_expand, skip):
    if has_expand:
        w_exp_ref, s_exp_ref, b_exp_ref, *rest = rest
    (w_dw_ref, s_dw_ref, b_dw_ref,
     w_se1_ref, b_se1_ref, w_se2_ref, b_se2_ref,
     w_pw_ref, s_pw_ref, b_pw_ref,
     o_ref, hpad_ref) = rest

    cexp = w_dw_ref.shape[-1]

    # ---- input pixels for this image, channels on lanes: (H*W, Cin)
    x2d = x_ref[0].astype(jnp.float32)

    # ---- expand 1x1 conv + folded BN + SiLU (Identity when expansion_factor == 1)
    if has_expand:
        e = jnp.dot(x2d, w_exp_ref[...], preferred_element_type=jnp.float32)
        e = e * s_exp_ref[...] + b_exp_ref[...]
        e = e * jax.nn.sigmoid(e)                     # SiLU
    else:
        e = x2d

    # ---- stage expanded activations in a zero-padded VMEM scratch (halo never hits HBM).
    # Re-zeroed every step so it is correct even when the batch axis is sharded across cores.
    hpad_ref[...] = jnp.zeros_like(hpad_ref)
    hpad_ref[pad:pad + H, pad:pad + W, :] = e.reshape(H, W, cexp)

    # ---- depthwise KxK conv (stride 1) + folded BN + SiLU; taps are VMEM window loads.
    wdw = w_dw_ref[...].astype(jnp.float32)           # (K*K, Cexp), loaded once
    acc = jnp.zeros((H, W, cexp), jnp.float32)
    for dy in range(K):                                # static, fully unrolled taps
        for dx in range(K):
            tap_w = wdw[dy * K + dx].reshape(1, 1, cexp)
            acc = acc + hpad_ref[dy:dy + H, dx:dx + W, :] * tap_w
    y = acc * s_dw_ref[...].reshape(1, 1, cexp) + b_dw_ref[...].reshape(1, 1, cexp)
    y = y * jax.nn.sigmoid(y)                          # SiLU
    y2d = y.reshape(H * W, cexp)                       # (H*W, Cexp), stays in registers

    # ---- SE gate fused: GAP (from data already resident) -> FC -> SiLU -> FC -> sigmoid
    pooled = jnp.mean(y2d, axis=0, keepdims=True)      # (1, Cexp)
    g = jnp.dot(pooled, w_se1_ref[...], preferred_element_type=jnp.float32) + b_se1_ref[...]
    g = g * jax.nn.sigmoid(g)                          # SiLU
    g = jnp.dot(g, w_se2_ref[...], preferred_element_type=jnp.float32) + b_se2_ref[...]
    g = jax.nn.sigmoid(g)                              # (1, Cexp) gate in (0, 1)

    # ---- channel gate + final 1x1 projection + folded BN (+ residual skip)
    out = jnp.dot(y2d * g, w_pw_ref[...], preferred_element_type=jnp.float32)
    out = out * s_pw_ref[...] + b_pw_ref[...]
    if skip:
        out = out + x2d                                # DropSample(p=0) is identity
    o_ref[0] = out.astype(o_ref.dtype)


def mbconv_block(x3d, w_exp, s_exp, b_exp, w_dw, s_dw, b_dw,
                 w_se1, b_se1, w_se2, b_se2, w_pw, s_pw, b_pw,
                 *, H, W, K, skip, has_expand):
    """x3d: (N, H*W, Cin) NHWC pixels with spatial flattened. w_dw: (K*K, Cexp)."""
    N, HW, cin = x3d.shape
    cexp = w_dw.shape[-1]
    cr = w_se1.shape[-1]
    cout = w_pw.shape[-1]
    pad = (K - 1) // 2
    Hp, Wp = H + 2 * pad, W + 2 * pad

    kernel = functools.partial(_mbconv_kernel, K=K, H=H, W=W, pad=pad,
                               has_expand=has_expand, skip=skip)

    def fixed(shape):
        nd = len(shape)
        return pl.BlockSpec(shape, lambda n, _nd=nd: (0,) * _nd)

    in_specs = [pl.BlockSpec((1, HW, cin), lambda n: (n, 0, 0))]
    args = [x3d]
    if has_expand:
        in_specs += [fixed((cin, cexp)), fixed((1, cexp)), fixed((1, cexp))]
        args += [w_exp, s_exp.reshape(1, cexp), b_exp.reshape(1, cexp)]
    in_specs += [fixed((K * K, cexp)), fixed((1, cexp)), fixed((1, cexp)),
                 fixed((cexp, cr)), fixed((1, cr)),
                 fixed((cr, cexp)), fixed((1, cexp)),
                 fixed((cexp, cout)), fixed((1, cout)), fixed((1, cout))]
    args += [w_dw, s_dw.reshape(1, cexp), b_dw.reshape(1, cexp),
             w_se1, b_se1.reshape(1, cr),
             w_se2, b_se2.reshape(1, cexp),
             w_pw, s_pw.reshape(1, cout), b_pw.reshape(1, cout)]

    return pl.pallas_call(
        kernel,
        out_shape=jax.ShapeDtypeStruct((N, HW, cout), x3d.dtype),
        grid_spec=pltpu.PrefetchScalarGridSpec(
            num_scalar_prefetch=0,
            grid=(N,),
            in_specs=in_specs,
            out_specs=pl.BlockSpec((1, HW, cout), lambda n: (n, 0, 0)),
            scratch_shapes=[pltpu.VMEM((Hp, Wp, cexp), jnp.float32)],
        ),
        compiler_params=pltpu.CompilerParams(
            dimension_semantics=("parallel",),       # batch images are independent (2 TCs on v7x)
            vmem_limit_bytes=32 * 1024 * 1024,
        ),
    )(*args)


# ----------------------------------------------------------------------------
# Module (parameters + forward orchestration)
# ----------------------------------------------------------------------------

def _make_bn(key, c, eps=1e-5):
    """Deterministic BatchNorm(eval) params, folded into (scale, bias)."""
    k1, k2, k3, k4 = jax.random.split(key, 4)
    gamma = 1.0 + 0.1 * jax.random.normal(k1, (c,), jnp.float32)
    beta = 0.1 * jax.random.normal(k2, (c,), jnp.float32)
    running_mean = 0.1 * jax.random.normal(k3, (c,), jnp.float32)
    running_var = jax.random.uniform(k4, (c,), jnp.float32, minval=0.5, maxval=1.5)
    scale = gamma / jnp.sqrt(running_var + eps)
    bias = beta - running_mean * scale
    return scale, bias


class MBConvNPallas:
    def __init__(self, in_channels, out_channels, expansion_factor,
                 kernel_size=3, stride=1, ratio=24, probability=0, *, key):
        assert stride == 1, "stride > 1 not implemented"  # TODO(synk): strided depthwise conv
        self.cin = in_channels
        self.cout = out_channels
        self.expansion = expansion_factor
        self.K = kernel_size
        self.cexp = expansion_factor * in_channels
        self.cr = max(1, self.cexp // ratio)              # SE squeeze width
        self.skip = (in_channels == out_channels) and (stride == 1)
        self.probability = probability                    # TODO(synk): DropSample for p > 0

        ks = jax.random.split(key, 10)
        # expand pointwise (only used if expansion_factor != 1)
        self.w_exp = 0.1 * jax.random.normal(ks[0], (self.cin, self.cexp), jnp.float32)
        self.s_exp, self.b_exp = _make_bn(ks[1], self.cexp)
        # depthwise
        self.w_dw = 0.1 * jax.random.normal(ks[2], (self.K, self.K, self.cexp), jnp.float32)
        self.s_dw, self.b_dw = _make_bn(ks[3], self.cexp)
        # SE (1x1 convs with bias)
        self.w_se1 = 0.1 * jax.random.normal(ks[4], (self.cexp, self.cr), jnp.float32)
        self.b_se1 = 0.05 * jax.random.normal(ks[5], (self.cr,), jnp.float32)
        self.w_se2 = 0.1 * jax.random.normal(ks[6], (self.cr, self.cexp), jnp.float32)
        self.b_se2 = 0.05 * jax.random.normal(ks[7], (self.cexp,), jnp.float32)
        # final pointwise projection
        self.w_pw = 0.1 * jax.random.normal(ks[8], (self.cexp, self.cout), jnp.float32)
        self.s_pw, self.b_pw = _make_bn(ks[9], self.cout)

    def __call__(self, x_nchw):
        N, C, H, W = x_nchw.shape
        assert C == self.cin
        x3d = jnp.transpose(x_nchw, (0, 2, 3, 1)).reshape(N, H * W, C)   # NCHW -> N(HW)C
        has_expand = self.expansion != 1
        out3d = mbconv_block(
            x3d,
            self.w_exp if has_expand else None,
            self.s_exp if has_expand else None,
            self.b_exp if has_expand else None,
            self.w_dw.reshape(self.K * self.K, self.cexp), self.s_dw, self.b_dw,
            self.w_se1, self.b_se1, self.w_se2, self.b_se2,
            self.w_pw, self.s_pw, self.b_pw,
            H=H, W=W, K=self.K, skip=self.skip, has_expand=has_expand)
        out = out3d.reshape(N, H, W, self.cout)
        return jnp.transpose(out, (0, 3, 1, 2))                           # NHWC -> NCHW


# ----------------------------------------------------------------------------
# Pure-JAX reference (same math, no Pallas) for a sanity check
# ----------------------------------------------------------------------------

def reference_forward(m: MBConvNPallas, x_nchw):
    x = jnp.transpose(x_nchw, (0, 2, 3, 1))
    res = x

    def pw(h, w, s, b, act):
        y = jnp.einsum('nhwc,cd->nhwd', h, w) * s + b
        return y * jax.nn.sigmoid(y) if act else y

    h = x
    if m.expansion != 1:
        h = pw(h, m.w_exp, m.s_exp, m.b_exp, True)

    pad = (m.K - 1) // 2
    hp = jnp.pad(h, ((0, 0), (pad, pad), (pad, pad), (0, 0)))
    N, H, W, C = h.shape
    acc = jnp.zeros_like(h)
    for dy in range(m.K):
        for dx in range(m.K):
            acc = acc + hp[:, dy:dy + H, dx:dx + W, :] * m.w_dw[dy, dx]
    y = acc * m.s_dw + m.b_dw
    h = y * jax.nn.sigmoid(y)

    pooled = jnp.mean(h, axis=(1, 2))
    a = pooled @ m.w_se1 + m.b_se1
    a = a * jax.nn.sigmoid(a)
    g = jax.nn.sigmoid(a @ m.w_se2 + m.b_se2)
    h = h * g[:, None, None, :]

    out = pw(h, m.w_pw, m.s_pw, m.b_pw, False)
    if m.skip:
        out = out + res
    return jnp.transpose(out, (0, 3, 1, 2))


# ----------------------------------------------------------------------------
# Main
# ----------------------------------------------------------------------------

if __name__ == "__main__":
    key = jax.random.PRNGKey(0)
    k_x, k_p = jax.random.split(key)

    # Small shapes consistent with the module: NCHW input, skip connection active.
    N, Cin, H, W = 2, 4, 16, 16
    x = jax.random.normal(k_x, (N, Cin, H, W), jnp.float32)

    mb = MBConvNPallas(in_channels=Cin, out_channels=Cin, expansion_factor=4,
                       kernel_size=3, stride=1, ratio=4, probability=0, key=k_p)

    out = mb(x)
    out = jax.block_until_ready(out)

    ref = jax.block_until_ready(reference_forward(mb, x))
    assert out.shape == (N, Cin, H, W)
    assert jnp.allclose(out, ref, atol=1e-2, rtol=1e-2), float(jnp.max(jnp.abs(out - ref)))

    print("KERNEL_OK")
</pallas_src>

<mosaic_0001>
module attributes {stable_mosaic.version = 11 : i64} {
  func.func @_mbconv_kernel(%arg0: i32, %arg1: memref<1x256x4xf32, #tpu.memory_space<vmem>>, %arg2: memref<4x16xf32, #tpu.memory_space<vmem>>, %arg3: memref<1x16xf32, #tpu.memory_space<vmem>>, %arg4: memref<1x16xf32, #tpu.memory_space<vmem>>, %arg5: memref<9x16xf32, #tpu.memory_space<vmem>>, %arg6: memref<1x16xf32, #tpu.memory_space<vmem>>, %arg7: memref<1x16xf32, #tpu.memory_space<vmem>>, %arg8: memref<16x4xf32, #tpu.memory_space<vmem>>, %arg9: memref<1x4xf32, #tpu.memory_space<vmem>>, %arg10: memref<4x16xf32, #tpu.memory_space<vmem>>, %arg11: memref<1x16xf32, #tpu.memory_space<vmem>>, %arg12: memref<16x4xf32, #tpu.memory_space<vmem>>, %arg13: memref<1x4xf32, #tpu.memory_space<vmem>>, %arg14: memref<1x4xf32, #tpu.memory_space<vmem>>, %arg15: memref<1x256x4xf32, #tpu.memory_space<vmem>>, %arg16: memref<18x18x16xf32, #tpu.memory_space<vmem>>) attributes {dimension_semantics = [#tpu.dimension_semantics<parallel>], iteration_bounds = array<i64: 2>, scalar_prefetch = 0 : i64, scratch_operands = 1 : i64, tpu.core_type = #tpu.core_type<tc>, window_params = [{transform_indices = @transform_0, window_bounds = array<i64: 1, 256, 4>}, {pipeline_mode = #tpu.pipeline_mode<synchronous>, transform_indices = @transform_1, window_bounds = array<i64: 4, 16>}, {pipeline_mode = #tpu.pipeline_mode<synchronous>, transform_indices = @transform_2, window_bounds = array<i64: 1, 16>}, {pipeline_mode = #tpu.pipeline_mode<synchronous>, transform_indices = @transform_3, window_bounds = array<i64: 1, 16>}, {pipeline_mode = #tpu.pipeline_mode<synchronous>, transform_indices = @transform_4, window_bounds = array<i64: 9, 16>}, {pipeline_mode = #tpu.pipeline_mode<synchronous>, transform_indices = @transform_5, window_bounds = array<i64: 1, 16>}, {pipeline_mode = #tpu.pipeline_mode<synchronous>, transform_indices = @transform_6, window_bounds = array<i64: 1, 16>}, {pipeline_mode = #tpu.pipeline_mode<synchronous>, transform_indices = @transform_7, window_bounds = array<i64: 16, 4>}, {pipeline_mode = #tpu.pipeline_mode<synchronous>, transform_indices = @transform_8, window_bounds = array<i64: 1, 4>}, {pipeline_mode = #tpu.pipeline_mode<synchronous>, transform_indices = @transform_9, window_bounds = array<i64: 4, 16>}, {pipeline_mode = #tpu.pipeline_mode<synchronous>, transform_indices = @transform_10, window_bounds = array<i64: 1, 16>}, {pipeline_mode = #tpu.pipeline_mode<synchronous>, transform_indices = @transform_11, window_bounds = array<i64: 16, 4>}, {pipeline_mode = #tpu.pipeline_mode<synchronous>, transform_indices = @transform_12, window_bounds = array<i64: 1, 4>}, {pipeline_mode = #tpu.pipeline_mode<synchronous>, transform_indices = @transform_13, window_bounds = array<i64: 1, 4>}, {transform_indices = @transform_14, window_bounds = array<i64: 1, 256, 4>}]} {
    %c0 = arith.constant 0 : index
    %c0_0 = arith.constant 0 : index
    %c0_1 = arith.constant 0 : index
    %0 = vector.load %arg1[%c0, %c0_0, %c0_1] : memref<1x256x4xf32, #tpu.memory_space<vmem>>, vector<1x256x4xf32>
    %1 = vector.shape_cast %0 : vector<1x256x4xf32> to vector<256x4xf32>
    %c0_2 = arith.constant 0 : index
    %c0_3 = arith.constant 0 : index
    %2 = vector.load %arg2[%c0_2, %c0_3] : memref<4x16xf32, #tpu.memory_space<vmem>>, vector<4x16xf32>
    %cst = arith.constant dense<0.000000e+00> : vector<256x16xf32>
    %3 = tpu.matmul %1, %2, %cst {dimension_numbers = #tpu.dot_dimension_numbers<[1], [0], [0], [1], [0, 0, 1, 1], [], []>} : vector<256x4xf32>, vector<4x16xf32>, vector<256x16xf32> -> vector<256x16xf32>
    %c0_4 = arith.constant 0 : index
    %c0_5 = arith.constant 0 : index
    %4 = vector.load %arg3[%c0_4, %c0_5] : memref<1x16xf32, #tpu.memory_space<vmem>>, vector<1x16xf32>
    %5 = vector.broadcast %4 : vector<1x16xf32> to vector<256x16xf32>
    %6 = arith.mulf %3, %5 : vector<256x16xf32>
    %c0_6 = arith.constant 0 : index
    %c0_7 = arith.constant 0 : index
    %7 = vector.load %arg4[%c0_6, %c0_7] : memref<1x16xf32, #tpu.memory_space<vmem>>, vector<1x16xf32>
    %8 = vector.broadcast %7 : vector<1x16xf32> to vector<256x16xf32>
    %9 = arith.addf %6, %8 : vector<256x16xf32>
    %10 = arith.negf %9 : vector<256x16xf32>
    %11 = math.exp %10 : vector<256x16xf32>
    %cst_8 = arith.constant 1.000000e+00 : f32
    %12 = vector.broadcast %cst_8 : f32 to vector<256x16xf32>
    %13 = arith.addf %12, %11 : vector<256x16xf32>
    %14 = arith.divf %12, %13 : vector<256x16xf32>
    %15 = arith.mulf %9, %14 : vector<256x16xf32>
    %cst_9 = arith.constant 0.000000e+00 : f32
    %16 = vector.broadcast %cst_9 : f32 to vector<18x18x16xf32>
    %c0_10 = arith.constant 0 : index
    %c0_11 = arith.constant 0 : index
    %c0_12 = arith.constant 0 : index
    %17 = vector.load %arg16[%c0_10, %c0_11, %c0_12] : memref<18x18x16xf32, #tpu.memory_space<vmem>>, vector<18x18x16xf32>
    tpu.vector_store %arg16[%c0_10, %c0_11, %c0_12], %16 {strides = array<i32>} : memref<18x18x16xf32, #tpu.memory_space<vmem>>, vector<18x18x16xf32>,
    %18 = vector.shape_cast %15 : vector<256x16xf32> to vector<16x16x16xf32>
    %c1 = arith.constant 1 : index
    %c1_13 = arith.constant 1 : index
    %c0_14 = arith.constant 0 : index
    %19 = vector.load %arg16[%c1, %c1_13, %c0_14] : memref<18x18x16xf32, #tpu.memory_space<vmem>>, vector<16x16x16xf32>
    tpu.vector_store %arg16[%c1, %c1_13, %c0_14], %18 {strides = array<i32>} : memref<18x18x16xf32, #tpu.memory_space<vmem>>, vector<16x16x16xf32>,
    %c0_15 = arith.constant 0 : index
    %c0_16 = arith.constant 0 : index
    %20 = vector.load %arg5[%c0_15, %c0_16] : memref<9x16xf32, #tpu.memory_space<vmem>>, vector<9x16xf32>
    %cst_17 = arith.constant 0.000000e+00 : f32
    %21 = vector.broadcast %cst_17 : f32 to vector<16x16x16xf32>
    %22 = vector.extract_strided_slice %20 {offsets = [0, 0], sizes = [1, 16], strides = [1, 1]} : vector<9x16xf32> to vector<1x16xf32>
    %23 = vector.shape_cast %22 : vector<1x16xf32> to vector<16xf32>
    %24 = vector.shape_cast %23 : vector<16xf32> to vector<1x1x16xf32>
    %c0_18 = arith.constant 0 : index
    %c0_19 = arith.constant 0 : index
    %c0_20 = arith.constant 0 : index
    %25 = vector.load %arg16[%c0_18, %c0_19, %c0_20] : memref<18x18x16xf32, #tpu.memory_space<vmem>>, vector<16x16x16xf32>
    %26 = vector.broadcast %24 : vector<1x1x16xf32> to vector<16x16x16xf32>
    %27 = arith.mulf %25, %26 : vector<16x16x16xf32>
    %28 = arith.addf %21, %27 : vector<16x16x16xf32>
    %29 = vector.extract_strided_slice %20 {offsets = [1, 0], sizes = [1, 16], strides = [1, 1]} : vector<9x16xf32> to vector<1x16xf32>
    %30 = vector.shape_cast %29 : vector<1x16xf32> to vector<16xf32>
    %31 = vector.shape_cast %30 : vector<16xf32> to vector<1x1x16xf32>
    %c0_21 = arith.constant 0 : index
    %c1_22 = arith.constant 1 : index
    %c0_23 = arith.constant 0 : index
    %32 = vector.load %arg16[%c0_21, %c1_22, %c0_23] : memref<18x18x16xf32, #tpu.memory_space<vmem>>, vector<16x16x16xf32>
    %33 = vector.broadcast %31 : vector<1x1x16xf32> to vector<16x16x16xf32>
    %34 = arith.mulf %32, %33 : vector<16x16x16xf32>
    %35 = arith.addf %28, %34 : vector<16x16x16xf32>
    %36 = vector.extract_strided_slice %20 {offsets = [2, 0], sizes = [1, 16], strides = [1, 1]} : vector<9x16xf32> to vector<1x16xf32>
    %37 = vector.shape_cast %36 : vector<1x16xf32> to vector<16xf32>
    %38 = vector.shape_cast %37 : vector<16xf32> to vector<1x1x16xf32>
    %c0_24 = arith.constant 0 : index
    %c2 = arith.constant 2 : index
    %c0_25 = arith.constant 0 : index
    %39 = vector.load %arg16[%c0_24, %c2, %c0_25] : memref<18x18x16xf32, #tpu.memory_space<vmem>>, vector<16x16x16xf32>
    %40 = vector.broadcast %38 : vector<1x1x16xf32> to vector<16x16x16xf32>
    %41 = arith.mulf %39, %40 : vector<16x16x16xf32>
    %42 = arith.addf %35, %41 : vector<16x16x16xf32>
    %43 = vector.extract_strided_slice %20 {offsets = [3, 0], sizes = [1, 16], strides = [1, 1]} : vector<9x16xf32> to vector<1x16xf32>
    %44 = vector.shape_cast %43 : vector<1x16xf32> to vector<16xf32>
    %45 = vector.shape_cast %44 : vector<16xf32> to vector<1x1x16xf32>
    %c1_26 = arith.constant 1 : index
    %c0_27 = arith.constant 0 : index
    %c0_28 = arith.constant 0 : index
    %46 = vector.load %arg16[%c1_26, %c0_27, %c0_28] : memref<18x18x16xf32, #tpu.memory_space<vmem>>, vector<16x16x16xf32>
    %47 = vector.broadcast %45 : vector<1x1x16xf32> to vector<16x16x16xf32>
    %48 = arith.mulf %46, %47 : vector<16x16x16xf32>
    %49 = arith.addf %42, %48 : vector<16x16x16xf32>
    %50 = vector.extract_strided_slice %20 {offsets = [4, 0], sizes = [1, 16], strides = [1, 1]} : vector<9x16xf32> to vector<1x16xf32>
    %51 = vector.shape_cast %50 : vector<1x16xf32> to vector<16xf32>
    %52 = vector.shape_cast %51 : vector<16xf32> to vector<1x1x16xf32>
    %c1_29 = arith.constant 1 : index
    %c1_30 = arith.constant 1 : index
    %c0_31 = arith.constant 0 : index
    %53 = vector.load %arg16[%c1_29, %c1_30, %c0_31] : memref<18x18x16xf32, #tpu.memory_space<vmem>>, vector<16x16x16xf32>
    %54 = vector.broadcast %52 : vector<1x1x16xf32> to vector<16x16x16xf32>
    %55 = arith.mulf %53, %54 : vector<16x16x16xf32>
    %56 = arith.addf %49, %55 : vector<16x16x16xf32>
    %57 = vector.extract_strided_slice %20 {offsets = [5, 0], sizes = [1, 16], strides = [1, 1]} : vector<9x16xf32> to vector<1x16xf32>
    %58 = vector.shape_cast %57 : vector<1x16xf32> to vector<16xf32>
    %59 = vector.shape_cast %58 : vector<16xf32> to vector<1x1x16xf32>
    %c1_32 = arith.constant 1 : index
    %c2_33 = arith.constant 2 : index
    %c0_34 = arith.constant 0 : index
    %60 = vector.load %arg16[%c1_32, %c2_33, %c0_34] : memref<18x18x16xf32, #tpu.memory_space<vmem>>, vector<16x16x16xf32>
    %61 = vector.broadcast %59 : vector<1x1x16xf32> to vector<16x16x16xf32>
    %62 = arith.mulf %60, %61 : vector<16x16x16xf32>
    %63 = arith.addf %56, %62 : vector<16x16x16xf32>
    %64 = vector.extract_strided_slice %20 {offsets = [6, 0], sizes = [1, 16], strides = [1, 1]} : vector<9x16xf32> to vector<1x16xf32>
    %65 = vector.shape_cast %64 : vector<1x16xf32> to vector<16xf32>
    %66 = vector.shape_cast %65 : vector<16xf32> to vector<1x1x16xf32>
    %c2_35 = arith.constant 2 : index
    %c0_36 = arith.constant 0 : index
    %c0_37 = arith.constant 0 : index
    %67 = vector.load %arg16[%c2_35, %c0_36, %c0_37] : memref<18x18x16xf32, #tpu.memory_space<vmem>>, vector<16x16x16xf32>
    %68 = vector.broadcast %66 : vector<1x1x16xf32> to vector<16x16x16xf32>
    %69 = arith.mulf %67, %68 : vector<16x16x16xf32>
    %70 = arith.addf %63, %69 : vector<16x16x16xf32>
    %71 = vector.extract_strided_slice %20 {offsets = [7, 0], sizes = [1, 16], strides = [1, 1]} : vector<9x16xf32> to vector<1x16xf32>
    %72 = vector.shape_cast %71 : vector<1x16xf32> to vector<16xf32>
    %73 = vector.shape_cast %72 : vector<16xf32> to vector<1x1x16xf32>
    %c2_38 = arith.constant 2 : index
    %c1_39 = arith.constant 1 : index
    %c0_40 = arith.constant 0 : index
    %74 = vector.load %arg16[%c2_38, %c1_39, %c0_40] : memref<18x18x16xf32, #tpu.memory_space<vmem>>, vector<16x16x16xf32>
    %75 = vector.broadcast %73 : vector<1x1x16xf32> to vector<16x16x16xf32>
    %76 = arith.mulf %74, %75 : vector<16x16x16xf32>
    %77 = arith.addf %70, %76 : vector<16x16x16xf32>
    %78 = vector.extract_strided_slice %20 {offsets = [8, 0], sizes = [1, 16], strides = [1, 1]} : vector<9x16xf32> to vector<1x16xf32>
    %79 = vector.shape_cast %78 : vector<1x16xf32> to vector<16xf32>
    %80 = vector.shape_cast %79 : vector<16xf32> to vector<1x1x16xf32>
    %c2_41 = arith.constant 2 : index
    %c2_42 = arith.constant 2 : index
    %c0_43 = arith.constant 0 : index
    %81 = vector.load %arg16[%c2_41, %c2_42, %c0_43] : memref<18x18x16xf32, #tpu.memory_space<vmem>>, vector<16x16x16xf32>
    %82 = vector.broadcast %80 : vector<1x1x16xf32> to vector<16x16x16xf32>
    %83 = arith.mulf %81, %82 : vector<16x16x16xf32>
    %84 = arith.addf %77, %83 : vector<16x16x16xf32>
    %c0_44 = arith.constant 0 : index
    %c0_45 = arith.constant 0 : index
    %85 = vector.load %arg6[%c0_44, %c0_45] : memref<1x16xf32, #tpu.memory_space<vmem>>, vector<1x16xf32>
    %86 = vector.shape_cast %85 : vector<1x16xf32> to vector<1x1x16xf32>
    %87 = vector.broadcast %86 : vector<1x1x16xf32> to vector<16x16x16xf32>
    %88 = arith.mulf %84, %87 : vector<16x16x16xf32>
    %c0_46 = arith.constant 0 : index
    %c0_47 = arith.constant 0 : index
    %89 = vector.load %arg7[%c0_46, %c0_47] : memref<1x16xf32, #tpu.memory_space<vmem>>, vector<1x16xf32>
    %90 = vector.shape_cast %89 : vector<1x16xf32> to vector<1x1x16xf32>
    %91 = vector.broadcast %90 : vector<1x1x16xf32> to vector<16x16x16xf32>
    %92 = arith.addf %88, %91 : vector<16x16x16xf32>
    %93 = arith.negf %92 : vector<16x16x16xf32>
    %94 = math.exp %93 : vector<16x16x16xf32>
    %cst_48 = arith.constant 1.000000e+00 : f32
    %95 = vector.broadcast %cst_48 : f32 to vector<16x16x16xf32>
    %96 = arith.addf %95, %94 : vector<16x16x16xf32>
    %97 = arith.divf %95, %96 : vector<16x16x16xf32>
    %98 = arith.mulf %92, %97 : vector<16x16x16xf32>
    %99 = vector.shape_cast %98 : vector<16x16x16xf32> to vector<256x16xf32>
    %cst_49 = arith.constant dense<0.000000e+00> : vector<16xf32>
    %100 = vector.multi_reduction <add>, %99, %cst_49 [0] : vector<256x16xf32> to vector<16xf32>
    %101 = vector.shape_cast %100 : vector<16xf32> to vector<1x16xf32>
    %cst_50 = arith.constant 2.560000e+02 : f32
    %102 = vector.broadcast %cst_50 : f32 to vector<1x16xf32>
    %103 = arith.divf %101, %102 : vector<1x16xf32>
    %c0_51 = arith.constant 0 : index
    %c0_52 = arith.constant 0 : index
    %104 = vector.load %arg8[%c0_51, %c0_52] : memref<16x4xf32, #tpu.memory_space<vmem>>, vector<16x4xf32>
    %cst_53 = arith.constant dense<0.000000e+00> : vector<1x4xf32>
    %105 = tpu.matmul %103, %104, %cst_53 {dimension_numbers = #tpu.dot_dimension_numbers<[1], [0], [0], [1], [0, 0, 1, 1], [], []>} : vector<1x16xf32>, vector<16x4xf32>, vector<1x4xf32> -> vector<1x4xf32>
    %c0_54 = arith.constant 0 : index
    %c0_55 = arith.constant 0 : index
    %106 = vector.load %arg9[%c0_54, %c0_55] : memref<1x4xf32, #tpu.memory_space<vmem>>, vector<1x4xf32>
    %107 = arith.addf %105, %106 : vector<1x4xf32>
    %108 = arith.negf %107 : vector<1x4xf32>
    %109 = math.exp %108 : vector<1x4xf32>
    %cst_56 = arith.constant 1.000000e+00 : f32
    %110 = vector.broadcast %cst_56 : f32 to vector<1x4xf32>
    %111 = arith.addf %110, %109 : vector<1x4xf32>
    %112 = arith.divf %110, %111 : vector<1x4xf32>
    %113 = arith.mulf %107, %112 : vector<1x4xf32>
    %c0_57 = arith.constant 0 : index
    %c0_58 = arith.constant 0 : index
    %114 = vector.load %arg10[%c0_57, %c0_58] : memref<4x16xf32, #tpu.memory_space<vmem>>, vector<4x16xf32>
    %cst_59 = arith.constant dense<0.000000e+00> : vector<1x16xf32>
    %115 = tpu.matmul %113, %114, %cst_59 {dimension_numbers = #tpu.dot_dimension_numbers<[1], [0], [0], [1], [0, 0, 1, 1], [], []>} : vector<1x4xf32>, vector<4x16xf32>, vector<1x16xf32> -> vector<1x16xf32>
    %c0_60 = arith.constant 0 : index
    %c0_61 = arith.constant 0 : index
    %116 = vector.load %arg11[%c0_60, %c0_61] : memref<1x16xf32, #tpu.memory_space<vmem>>, vector<1x16xf32>
    %117 = arith.addf %115, %116 : vector<1x16xf32>
    %118 = arith.negf %117 : vector<1x16xf32>
    %119 = math.exp %118 : vector<1x16xf32>
    %cst_62 = arith.constant 1.000000e+00 : f32
    %120 = vector.broadcast %cst_62 : f32 to vector<1x16xf32>
    %121 = arith.addf %120, %119 : vector<1x16xf32>
    %122 = arith.divf %120, %121 : vector<1x16xf32>
    %123 = vector.broadcast %122 : vector<1x16xf32> to vector<256x16xf32>
    %124 = arith.mulf %99, %123 : vector<256x16xf32>
    %c0_63 = arith.constant 0 : index
    %c0_64 = arith.constant 0 : index
    %125 = vector.load %arg12[%c0_63, %c0_64] : memref<16x4xf32, #tpu.memory_space<vmem>>, vector<16x4xf32>
    %cst_65 = arith.constant dense<0.000000e+00> : vector<256x4xf32>
    %126 = tpu.matmul %124, %125, %cst_65 {dimension_numbers = #tpu.dot_dimension_numbers<[1], [0], [0], [1], [0, 0, 1, 1], [], []>} : vector<256x16xf32>, vector<16x4xf32>, vector<256x4xf32> -> vector<256x4xf32>
    %c0_66 = arith.constant 0 : index
    %c0_67 = arith.constant 0 : index
    %127 = vector.load %arg13[%c0_66, %c0_67] : memref<1x4xf32, #tpu.memory_space<vmem>>, vector<1x4xf32>
    %128 = vector.broadcast %127 : vector<1x4xf32> to vector<256x4xf32>
    %129 = arith.mulf %126, %128 : vector<256x4xf32>
    %c0_68 = arith.constant 0 : index
    %c0_69 = arith.constant 0 : index
    %130 = vector.load %arg14[%c0_68, %c0_69] : memref<1x4xf32, #tpu.memory_space<vmem>>, vector<1x4xf32>
    %131 = vector.broadcast %130 : vector<1x4xf32> to vector<256x4xf32>
    %132 = arith.addf %129, %131 : vector<256x4xf32>
    %133 = arith.addf %132, %1 : vector<256x4xf32>
    %c0_70 = arith.constant 0 : index
    %c0_71 = arith.constant 0 : index
    %c0_72 = arith.constant 0 : index
    %134 = vector.load %arg15[%c0_70, %c0_71, %c0_72] : memref<1x256x4xf32, #tpu.memory_space<vmem>>, vector<1x256x4xf32>
    %135 = vector.shape_cast %134 : vector<1x256x4xf32> to vector<256x4xf32>
    %136 = vector.shape_cast %133 : vector<256x4xf32> to vector<1x256x4xf32>
    tpu.vector_store %arg15[%c0_70, %c0_71, %c0_72], %136 {strides = array<i32>} : memref<1x256x4xf32, #tpu.memory_space<vmem>>, vector<1x256x4xf32>,
    return
  }
  func.func @transform_0(%arg0: i32) -> (i32, i32, i32) {
    %c0_i32 = arith.constant 0 : i32
    %c0_i32_0 = arith.constant 0 : i32
    %c0_i32_1 = arith.constant 0 : i32
    return %arg0, %c0_i32, %c0_i32_0 : i32, i32, i32
  }
  func.func @transform_1(%arg0: i32) -> (i32, i32) {
    %c0_i32 = arith.constant 0 : i32
    %c0_i32_0 = arith.constant 0 : i32
    %c0_i32_1 = arith.constant 0 : i32
    return %c0_i32, %c0_i32_0 : i32, i32
  }
  func.func @transform_2(%arg0: i32) -> (i32, i32) {
    %c0_i32 = arith.constant 0 : i32
    %c0_i32_0 = arith.constant 0 : i32
    %c0_i32_1 = arith.constant 0 : i32
    return %c0_i32, %c0_i32_0 : i32, i32
  }
  func.func @transform_3(%arg0: i32) -> (i32, i32) {
    %c0_i32 = arith.constant 0 : i32
    %c0_i32_0 = arith.constant 0 : i32
    %c0_i32_1 = arith.constant 0 : i32
    return %c0_i32, %c0_i32_0 : i32, i32
  }
  func.func @transform_4(%arg0: i32) -> (i32, i32) {
    %c0_i32 = arith.constant 0 : i32
    %c0_i32_0 = arith.constant 0 : i32
    %c0_i32_1 = arith.constant 0 : i32
    return %c0_i32, %c0_i32_0 : i32, i32
  }
  func.func @transform_5(%arg0: i32) -> (i32, i32) {
    %c0_i32 = arith.constant 0 : i32
    %c0_i32_0 = arith.constant 0 : i32
    %c0_i32_1 = arith.constant 0 : i32
    return %c0_i32, %c0_i32_0 : i32, i32
  }
  func.func @transform_6(%arg0: i32) -> (i32, i32) {
    %c0_i32 = arith.constant 0 : i32
    %c0_i32_0 = arith.constant 0 : i32
    %c0_i32_1 = arith.constant 0 : i32
    return %c0_i32, %c0_i32_0 : i32, i32
  }
  func.func @transform_7(%arg0: i32) -> (i32, i32) {
    %c0_i32 = arith.constant 0 : i32
    %c0_i32_0 = arith.constant 0 : i32
    %c0_i32_1 = arith.constant 0 : i32
    return %c0_i32, %c0_i32_0 : i32, i32
  }
  func.func @transform_8(%arg0: i32) -> (i32, i32) {
    %c0_i32 = arith.constant 0 : i32
    %c0_i32_0 = arith.constant 0 : i32
    %c0_i32_1 = arith.constant 0 : i32
    return %c0_i32, %c0_i32_0 : i32, i32
  }
  func.func @transform_9(%arg0: i32) -> (i32, i32) {
    %c0_i32 = arith.constant 0 : i32
    %c0_i32_0 = arith.constant 0 : i32
    %c0_i32_1 = arith.constant 0 : i32
    return %c0_i32, %c0_i32_0 : i32, i32
  }
  func.func @transform_10(%arg0: i32) -> (i32, i32) {
    %c0_i32 = arith.constant 0 : i32
    %c0_i32_0 = arith.constant 0 : i32
    %c0_i32_1 = arith.constant 0 : i32
    return %c0_i32, %c0_i32_0 : i32, i32
  }
  func.func @transform_11(%arg0: i32) -> (i32, i32) {
    %c0_i32 = arith.constant 0 : i32
    %c0_i32_0 = arith.constant 0 : i32
    %c0_i32_1 = arith.constant 0 : i32
    return %c0_i32, %c0_i32_0 : i32, i32
  }
  func.func @transform_12(%arg0: i32) -> (i32, i32) {
    %c0_i32 = arith.constant 0 : i32
    %c0_i32_0 = arith.constant 0 : i32
    %c0_i32_1 = arith.constant 0 : i32
    return %c0_i32, %c0_i32_0 : i32, i32
  }
  func.func @transform_13(%arg0: i32) -> (i32, i32) {
    %c0_i32 = arith.constant 0 : i32
    %c0_i32_0 = arith.constant 0 : i32
    %c0_i32_1 = arith.constant 0 : i32
    return %c0_i32, %c0_i32_0 : i32, i32
  }
  func.func @transform_14(%arg0: i32) -> (i32, i32, i32) {
    %c0_i32 = arith.constant 0 : i32
    %c0_i32_0 = arith.constant 0 : i32
    %c0_i32_1 = arith.constant 0 : i32
    return %arg0, %c0_i32, %c0_i32_0 : i32, i32, i32
  }
}

</mosaic_0001>

<bundles_post_ra>
// kernel: tpu_custom_call.1
= control target key start
LH: loop header
LB: loop body
LE: loop exit
PB: predicated region body
PF: predicated region fallthrough
CT: control target
= control target key end

     0   :  { %s3965_s29 = smov 0   ;;  %s5671_s0 = inlined_call_operand.vmem [shape: f32[2,256,4], index: 0, kind: input, shape index: {}]   ;;  %s5672_s1 = inlined_call_operand.vmem [shape: f32[4,16], index: 1, kind: input, shape index: {}]   ;;  %s5673_s2 = inlined_call_operand.vmem [shape: f32[1,16], index: 2, kind: input, shape index: {}]   ;;  %s5674_s3 = inlined_call_operand.vmem [shape: f32[1,16], index: 3, kind: input, shape index: {}]   ;;  %s5675_s4 = inlined_call_operand.vmem [shape: f32[9,16], index: 4, kind: input, shape index: {}]   ;;  %s5676_s5 = inlined_call_operand.vmem [shape: f32[1,16], index: 5, kind: input, shape index: {}]   ;;  %s5677_s6 = inlined_call_operand.vmem [shape: f32[1,16], index: 6, kind: input, shape index: {}]   ;;  %s5678_s7 = inlined_call_operand.vmem [shape: f32[16,4], index: 7, kind: input, shape index: {}]   ;;  %s5679_s8 = inlined_call_operand.vmem [shape: f32[1,4], index: 8, kind: input, shape index: {}]   ;;  %s5680_s9 = inlined_call_operand.vmem [shape: f32[4,16], index: 9, kind: input, shape index: {}]   ;;  %s5681_s10 = inlined_call_operand.vmem [shape: f32[1,16], index: 10, kind: input, shape index: {}]   ;;  %s5682_s11 = inlined_call_operand.vmem [shape: f32[16,4], index: 11, kind: input, shape index: {}]   ;;  %s5683_s12 = inlined_call_operand.vmem [shape: f32[1,4], index: 12, kind: input, shape index: {}]   ;;  %s5684_s13 = inlined_call_operand.vmem [shape: f32[1,4], index: 13, kind: input, shape index: {}]   ;;  %s5685_s14 = inlined_call_operand.vmem [shape: f32[2,256,4], index: 14, kind: output, shape index: {}]  }
   0x1 LB: > { %s3217_s30 = sadd.s32 4294967295, %s3885_s29   ;;  %p3221_p0 = scmp.ge.s32.totalorder %s3885_s29, 1  ;;  %s3885_s29 = sphi %s3965_s29, %s24_s29  }
   0x2   : > { %p412_p1 = scmp.lt.s32.totalorder %s3885_s29, 3 }
   0x4   : > { %p413_p2 = pnand %p3221_p0, %p412_p1 }
   0x6   : > { %416 = sbr.rel (%p413_p2) target bundleno = 1320 (0x528), region = 76 }
   0xd   : > { %v500_v0 = vld [vmem:[%s5672_s1] sm:$0xf]  ;;  %vm598_vm0 = vcmask 1043456   ;;  %p458_p3 = scmp.lt.s32.totalorder %s3217_s30, 1  ;;  %vm501_vm1 = vcmask 31744   ;;  %vm1129_vm2 = vcmask 130048   ;;  %v1252_v59 = vlaneseq }
   0xe   : > { %3443 = vmatprep.subr.msk.mxu0 %vm598_vm0, %v500_v0  ;;  %vm1132_vm3 = vcmask 123904   ;;  %v5687_v33 = vmov 0.0   ;;  %v4164_v34 = vld [vmem:[%s5673_s2] ss:$0 sm:$0xff]  ;;  %vm3889_vm4 = vmmov 0  }
   0xf   : > { %3444 = vmatpush3.msk.msra.mxu0 %vm598_vm0, %v500_v0  ;;  %s5822_s30 = smov (!%p458_p3, %s3217_s30), 1  ;;  %1135 = vst.msk [vmem:[#allocation2 + $0x20] sm:$0xff] %vm1129_vm2, %v5687_v33  ;;  %1130 = vst.msk [vmem:[#allocation2] sm:$0xff] %vm1129_vm2, %v5687_v33  ;;  %3500 = vmatprep.subr.mxu1 %v5687_v33  ;;  %v4169_v36 = vld [vmem:[%s5674_s3] ss:$0 sm:$0xff] }
  0x10   : > { %s3369_s17 = sshll.u32 %s5822_s30, 8  ;;  %1136 = vst.msk [vmem:[#allocation2 + $0x28] sm:$0x3] %vm1132_vm3, %v5687_v33  ;;  %1133 = vst.msk [vmem:[#allocation2 + $0x10] sm:$0x3] %vm1132_vm3, %v5687_v33 }
  0x11   : > { %s3986_s20 = scalar_lea.vmem %s5671_s0, %s3369_s17  ;;  %1131 = vst.msk [vmem:[#allocation2 + $0x8] sm:$0xff] %vm1129_vm2, %v5687_v33  ;;  %1134 = vst.msk [vmem:[#allocation2 + $0x18] sm:$0xff] %vm1129_vm2, %v5687_v33  ;;  %s5509_s21 = scalar_lea.vmem %s5685_s14, %s3369_s17 }
  0x12   : > { %v468_v1 = vld [vmem:[%s3986_s20] sm:$0xff]  ;;  %v469_v2 = vld [vmem:[%s3986_s20 + $0x8] sm:$0xff]  ;;  %v470_v3 = vld [vmem:[%s3986_s20 + $0x10] sm:$0xff]  ;;  %1137 = vst.msk [vmem:[#allocation2 + $0x30] sm:$0xff] %vm1129_vm2, %v5687_v33 }
  0x13   : > { %3445 = vmatprep.mubr.msk.f32.mxu0 %vm501_vm1, %v468_v1  ;;  %v471_v4 = vld [vmem:[%s3986_s20 + $0x18] sm:$0xff]  ;;  %v472_v5 = vld [vmem:[%s3986_s20 + $0x20] sm:$0xff]  ;;  %v473_v6 = vld [vmem:[%s3986_s20 + $0x28] sm:$0xff]  ;;  %1138 = vst.msk [vmem:[#allocation2 + $0x38] sm:$0xff] %vm1129_vm2, %v5687_v33 }
  0x14   : > { %3446 = vmatmul.mubr.msk.f32.vlgmr.msra.gmra.mrb[0].mxu0 %vm501_vm1, %v469_v2  ;;  %v474_v7 = vld [vmem:[%s3986_s20 + $0x30] sm:$0xff]  ;;  %v475_v8 = vld [vmem:[%s3986_s20 + $0x38] sm:$0xff]  ;;  %v476_v9 = vld [vmem:[%s3986_s20 + $0x40] sm:$0xff]  ;;  %1139 = vst.msk [vmem:[#allocation2 + $0x40] sm:$0x3] %vm1132_vm3, %v5687_v33 }
  0x15   : > { %3448 = vmatprep.mubr.msk.f32.mxu0 %vm501_vm1, %v470_v3  ;;  %v477_v10 = vld [vmem:[%s3986_s20 + $0x48] sm:$0xff]  ;;  %v478_v11 = vld [vmem:[%s3986_s20 + $0x50] sm:$0xff]  ;;  %v479_v12 = vld [vmem:[%s3986_s20 + $0x58] sm:$0xff]  ;;  %1140 = vst.msk [vmem:[#allocation2 + $0x48] sm:$0xff] %vm1129_vm2, %v5687_v33  ;;  %v4205_v3 = vshrl.u32 %v1252_v59, 7 }
  0x16   : > { %v480_v13 = vld [vmem:[%s3986_s20 + $0x60] sm:$0xff]  ;;  %v481_v14 = vld [vmem:[%s3986_s20 + $0x68] sm:$0xff]  ;;  %v482_v15 = vld [vmem:[%s3986_s20 + $0x70] sm:$0xff]  ;;  %1141 = vst.msk [vmem:[#allocation2 + $0x50] sm:$0xff] %vm1129_vm2, %v5687_v33 }
  0x17   : > { %v483_v16 = vld [vmem:[%s3986_s20 + $0x78] sm:$0xff]  ;;  %v484_v17 = vld [vmem:[%s3986_s20 + $0x80] sm:$0xff]  ;;  %v485_v18 = vld [vmem:[%s3986_s20 + $0x88] sm:$0xff]  ;;  %1142 = vst.msk [vmem:[#allocation2 + $0x58] sm:$0x3] %vm1132_vm3, %v5687_v33 }
  0x18   : > { %3449 = vmatmul.mubr.msk.f32.gmra.mrb[2].mxu0 %vm501_vm1, %v471_v4  ;;  %v486_v19 = vld [vmem:[%s3986_s20 + $0x90] sm:$0xff]  ;;  %v487_v20 = vld [vmem:[%s3986_s20 + $0x98] sm:$0xff]  ;;  %v488_v21 = vld [vmem:[%s3986_s20 + $0xa0] sm:$0xff]  ;;  %1143 = vst.msk [vmem:[#allocation2 + $0x60] sm:$0xff] %vm1129_vm2, %v5687_v33 }
  0x19   : > { %3451 = vmatprep.mubr.msk.f32.mxu0 %vm501_vm1, %v472_v5  ;;  %v489_v22 = vld [vmem:[%s3986_s20 + $0xa8] sm:$0xff]  ;;  %v490_v23 = vld [vmem:[%s3986_s20 + $0xb0] sm:$0xff]  ;;  %v491_v24 = vld [vmem:[%s3986_s20 + $0xb8] sm:$0xff]  ;;  %1144 = vst.msk [vmem:[#allocation2 + $0x68] sm:$0xff] %vm1129_vm2, %v5687_v33 }
  0x1a   : > { %v492_v25 = vld [vmem:[%s3986_s20 + $0xc0] sm:$0xff]  ;;  %v493_v26 = vld [vmem:[%s3986_s20 + $0xc8] sm:$0xff]  ;;  %v494_v27 = vld [vmem:[%s3986_s20 + $0xd0] sm:$0xff]  ;;  %1145 = vst.msk [vmem:[#allocation2 + $0x70] sm:$0x3] %vm1132_vm3, %v5687_v33 }
  0x1b   : > { %v495_v28 = vld [vmem:[%s3986_s20 + $0xd8] sm:$0xff]  ;;  %v496_v29 = vld [vmem:[%s3986_s20 + $0xe0] sm:$0xff]  ;;  %v497_v30 = vld [vmem:[%s3986_s20 + $0xe8] sm:$0xff]  ;;  %1146 = vst.msk [vmem:[#allocation2 + $0x78] sm:$0xff] %vm1129_vm2, %v5687_v33 }
  0x1c   : > { %3452 = vmatmul.mubr.msk.f32.gmra.mrb[4].mxu0 %vm501_vm1, %v473_v6  ;;  %v498_v31 = vld [vmem:[%s3986_s20 + $0xf0] sm:$0xff]  ;;  %v499_v32 = vld [vmem:[%s3986_s20 + $0xf8] sm:$0xff]  ;;  %1147 = vst.msk [vmem:[#allocation2 + $0x80] sm:$0xff] %vm1129_vm2, %v5687_v33  ;;  %1149 = vst.msk [vmem:[#allocation2 + $0x90] sm:$0xff] %vm1129_vm2, %v5687_v33 }
  0x1d   : > { %3454 = vmatprep.mubr.msk.f32.mxu0 %vm501_vm1, %v474_v7  ;;  %1148 = vst.msk [vmem:[#allocation2 + $0x88] sm:$0x3] %vm1132_vm3, %v5687_v33  ;;  %1151 = vst.msk [vmem:[#allocation2 + $0xa0] sm:$0x3] %vm1132_vm3, %v5687_v33 }
  0x1e   : > { %1150 = vst.msk [vmem:[#allocation2 + $0x98] sm:$0xff] %vm1129_vm2, %v5687_v33  ;;  %1152 = vst.msk [vmem:[#allocation2 + $0xa8] sm:$0xff] %vm1129_vm2, %v5687_v33 }
  0x1f   : > { %1153 = vst.msk [vmem:[#allocation2 + $0xb0] sm:$0xff] %vm1129_vm2, %v5687_v33  ;;  %1155 = vst.msk [vmem:[#allocation2 + $0xc0] sm:$0xff] %vm1129_vm2, %v5687_v33 }
  0x20   : > { %3455 = vmatmul.mubr.msk.f32.gmra.mrb[6].mxu0 %vm501_vm1, %v475_v8  ;;  %1154 = vst.msk [vmem:[#allocation2 + $0xb8] sm:$0x3] %vm1132_vm3, %v5687_v33  ;;  %1157 = vst.msk [vmem:[#allocation2 + $0xd0] sm:$0x3] %vm1132_vm3, %v5687_v33 }
  0x21   : > { %3457 = vmatprep.mubr.msk.f32.mxu0 %vm501_vm1, %v476_v9  ;;  %1156 = vst.msk [vmem:[#allocation2 + $0xc8] sm:$0xff] %vm1129_vm2, %v5687_v33  ;;  %1158 = vst.msk [vmem:[#allocation2 + $0xd8] sm:$0xff] %vm1129_vm2, %v5687_v33 }
  0x22   : > { %1159 = vst.msk [vmem:[#allocation2 + $0xe0] sm:$0xff] %vm1129_vm2, %v5687_v33  ;;  %1161 = vst.msk [vmem:[#allocation2 + $0xf0] sm:$0xff] %vm1129_vm2, %v5687_v33 }
  0x23   : > { %1160 = vst.msk [vmem:[#allocation2 + $0xe8] sm:$0x3] %vm1132_vm3, %v5687_v33  ;;  %1163 = vst.msk [vmem:[#allocation2 + $0x100] sm:$0x3] %vm1132_vm3, %v5687_v33 }
  0x24   : > { %3458 = vmatmul.mubr.msk.f32.gmra.mrb[8].mxu0 %vm501_vm1, %v477_v10  ;;  %1162 = vst.msk [vmem:[#allocation2 + $0xf8] sm:$0xff] %vm1129_vm2, %v5687_v33  ;;  %1164 = vst.msk [vmem:[#allocation2 + $0x108] sm:$0xff] %vm1129_vm2, %v5687_v33 }
  0x25   : > { %3460 = vmatprep.mubr.msk.f32.mxu0 %vm501_vm1, %v478_v11  ;;  %1165 = vst.msk [vmem:[#allocation2 + $0x110] sm:$0xff] %vm1129_vm2, %v5687_v33  ;;  %1167 = vst.msk [vmem:[#allocation2 + $0x120] sm:$0xff] %vm1129_vm2, %v5687_v33 }
  0x26   : > { %1166 = vst.msk [vmem:[#allocation2 + $0x118] sm:$0x3] %vm1132_vm3, %v5687_v33  ;;  %1169 = vst.msk [vmem:[#allocation2 + $0x130] sm:$0x3] %vm1132_vm3, %v5687_v33 }
  0x27   : > { %1168 = vst.msk [vmem:[#allocation2 + $0x128] sm:$0xff] %vm1129_vm2, %v5687_v33  ;;  %1170 = vst.msk [vmem:[#allocation2 + $0x138] sm:$0xff] %vm1129_vm2, %v5687_v33 }
  0x28   : > { %3461 = vmatmul.mubr.msk.f32.gmra.mrb[10].mxu0 %vm501_vm1, %v479_v12  ;;  %1171 = vst.msk [vmem:[#allocation2 + $0x140] sm:$0xff] %vm1129_vm2, %v5687_v33  ;;  %1173 = vst.msk [vmem:[#allocation2 + $0x150] sm:$0xff] %vm1129_vm2, %v5687_v33  ;;  %v5686_v12 = vsub.s32 0, %v4205_v3 }
  0x29   : > { %3463 = vmatprep.mubr.msk.f32.mxu0 %vm501_vm1, %v480_v13  ;;  %1172 = vst.msk [vmem:[#allocation2 + $0x148] sm:$0x3] %vm1132_vm3, %v5687_v33  ;;  %1175 = vst.msk [vmem:[#allocation2 + $0x160] sm:$0x3] %vm1132_vm3, %v5687_v33 }
  0x2a   : > { %1174 = vst.msk [vmem:[#allocation2 + $0x158] sm:$0xff] %vm1129_vm2, %v5687_v33  ;;  %1176 = vst.msk [vmem:[#allocation2 + $0x168] sm:$0xff] %vm1129_vm2, %v5687_v33 }
  0x2b   : > { %1177 = vst.msk [vmem:[#allocation2 + $0x170] sm:$0xff] %vm1129_vm2, %v5687_v33  ;;  %1179 = vst.msk [vmem:[#allocation2 + $0x180] sm:$0xff] %vm1129_vm2, %v5687_v33 }
  0x2c   : > { %3464 = vmatmul.mubr.msk.f32.gmra.mrb[12].mxu0 %vm501_vm1, %v481_v14  ;;  %1178 = vst.msk [vmem:[#allocation2 + $0x178] sm:$0x3] %vm1132_vm3, %v5687_v33  ;;  %1181 = vst.msk [vmem:[#allocation2 + $0x190] sm:$0x3] %vm1132_vm3, %v5687_v33 }
  0x2d   : > { %3466 = vmatprep.mubr.msk.f32.mxu0 %vm501_vm1, %v482_v15  ;;  %1180 = vst.msk [vmem:[#allocation2 + $0x188] sm:$0xff] %vm1129_vm2, %v5687_v33  ;;  %1182 = vst.msk [vmem:[#allocation2 + $0x198] sm:$0xff] %vm1129_vm2, %v5687_v33 }
  0x2e   : > { %1183 = vst.msk [vmem:[#allocation2 + $0x1a0] sm:$0xff] %vm1129_vm2, %v5687_v33  ;;  %5723 = vst [vmem:[#allocation3_spill] sm:$0xff] %v4205_v3 }
  0x2f   : > { %1184 = vst.msk [vmem:[#allocation2 + $0x1a8] sm:$0x3] %vm1132_vm3, %v5687_v33 }
  0x30   : > { %3467 = vmatmul.mubr.msk.f32.gmra.mrb[14].mxu0 %vm501_vm1, %v483_v16  ;;  %v4214_v16 = vld [vmem:[%s5675_s4] sm:$0xff] }
  0x31   : > { %3469 = vmatprep.mubr.msk.f32.mxu0 %vm501_vm1, %v484_v17  ;;  %v1354_v17 = vsub.s32 1, %v4205_v3 }
  0x34   : > { %3470 = vmatmul.mubr.msk.f32.gmra.mrb[16].mxu0 %vm501_vm1, %v485_v18 }
  0x35   : > { %3472 = vmatprep.mubr.msk.f32.mxu0 %vm501_vm1, %v486_v19 }
  0x38   : > { %3473 = vmatmul.mubr.msk.f32.gmra.mrb[18].mxu0 %vm501_vm1, %v487_v20 }
  0x39   : > { %3475 = vmatprep.mubr.msk.f32.mxu0 %vm501_vm1, %v488_v21 }
  0x3c   : > { %3476 = vmatmul.mubr.msk.f32.gmra.mrb[20].mxu0 %vm501_vm1, %v489_v22 }
  0x3d   : > { %3478 = vmatprep.mubr.msk.f32.mxu0 %vm501_vm1, %v490_v23 }
  0x40   : > { %3479 = vmatmul.mubr.msk.f32.gmra.mrb[22].mxu0 %vm501_vm1, %v491_v24 }
  0x41   : > { %3481 = vmatprep.mubr.msk.f32.mxu0 %vm501_vm1, %v492_v25  ;;  %v1454_v25 = vsub.s32 2, %v4205_v3 }
  0x44   : > { %3482 = vmatmul.mubr.msk.f32.gmra.mrb[24].mxu0 %vm501_vm1, %v493_v26  ;;  %v4226_v26 = vrot.slane %v4214_v16, %v5686_v12 }
  0x45   : > { %3484 = vmatprep.mubr.msk.f32.mxu0 %vm501_vm1, %v494_v27 }
  0x48   : > { %3485 = vmatmul.mubr.msk.f32.gmra.mrb[26].mxu0 %vm501_vm1, %v495_v28 }
  0x49   : > { %3487 = vmatprep.mubr.msk.f32.mxu0 %vm501_vm1, %v496_v29 }
  0x4c   : > { %3488 = vmatmul.mubr.msk.f32.gmra.mrb[28].mxu0 %vm501_vm1, %v497_v30  ;;  %v4232_v30 = vrot.slane %v4214_v16, %v1354_v17 }
  0x4d   : > { %3490 = vmatprep.mubr.msk.f32.mxu0 %vm501_vm1, %v498_v31  ;;  %v1220_v31 = vld [vmem:[#allocation2] sm:$0xff] }
  0x50   : > { %3491 = vmatmul.mubr.msk.f32.gmra.mrb[30].mxu0 %vm501_vm1, %v499_v32 }
  0xe7   : > { %v3447_v35 = vpop.f32.mrb[0].mxu0 }
  0xe8   : > { %v835_v37 = vmul.f32 %v3447_v35, %v4164_v34  ;;  %v668_v38 = vpop.f32.mrb[1].mxu0 }
  0xe9   : > { %v834_v39 = vmul.f32 %v4164_v34, %v668_v38  ;;  %v1320_v38 = vld [vmem:[#allocation2 + $0x1] sm:$0xff] }
  0xea   : > { %v4174_v40 = vadd.f32 %v4169_v36, %v835_v37  ;;  %v1221_v37 = vld [vmem:[#allocation2 + $0x8] sm:$0xff] }
  0xeb   : > { %v4177_v41 = vadd.f32 %v4169_v36, %v834_v39  ;;  %v3450_v42 = vpop.f32.mrb[2].mxu0 }
  0xec   : > { %v3262_v43 = vmul.f32 -1.442695, %v4174_v40  ;;  %v837_v44 = vmul.f32 %v3450_v42, %v4164_v34  ;;  %v678_v45 = vpop.f32.mrb[3].mxu0 }
  0xed   : > { %v3261_v46 = vmul.f32 -1.442695, %v4177_v41  ;;  %v836_v47 = vmul.f32 %v4164_v34, %v678_v45 }
  0xee   : > { %3575 = vpow2.f32 %v3262_v43  ;;  %v4184_v48 = vadd.f32 %v4169_v36, %v837_v44  ;;  %v1321_v43 = vld [vmem:[#allocation2 + $0x9] sm:$0xff] }
  0xef   : > { %3577 = vpow2.f32 %v3261_v46  ;;  %v4187_v49 = vadd.f32 %v4169_v36, %v836_v47  ;;  %v3453_v50 = vpop.f32.mrb[4].mxu0  ;;  %v4244_v47 = vrot.slane %v4214_v16, %v1454_v25 }
  0xf0   : > { %v3264_v51 = vmul.f32 -1.442695, %v4184_v48  ;;  %v839_v52 = vmul.f32 %v3453_v50, %v4164_v34  ;;  %v688_v53 = vpop.f32.mrb[5].mxu0  ;;  %v1256_v50 = vmul.f32 %v4226_v26, %v1220_v31 }
  0xf1   : > { %v3263_v54 = vmul.f32 -1.442695, %v4187_v49  ;;  %v838_v55 = vmul.f32 %v4164_v34, %v688_v53 }
  0xf2   : > { %3579 = vpow2.f32 %v3264_v51  ;;  %v4194_v56 = vadd.f32 %v4169_v36, %v839_v52 }
  0xf3   : > { %3581 = vpow2.f32 %v3263_v54  ;;  %v4197_v57 = vadd.f32 %v4169_v36, %v838_v55  ;;  %v3456_v58 = vpop.f32.mrb[6].mxu0  ;;  %v1257_v54 = vmul.f32 %v4226_v26, %v1221_v37  ;;  %v1356_v55 = vmul.f32 %v4232_v30, %v1320_v38 }
  0xf4   : > { %v3266_v60 = vmul.f32 -1.442695, %v4194_v56  ;;  %v841_v61 = vmul.f32 %v3456_v58, %v4164_v34  ;;  %v698_v62 = vpop.f32.mrb[7].mxu0 }
  0xf5   : > { %v3265_v63 = vmul.f32 -1.442695, %v4197_v57  ;;  %v840_v9 = vmul.f32 %v4164_v34, %v698_v62  ;;  %v1357_v62 = vmul.f32 %v4232_v30, %v1321_v43 }
  0xf6   : > { %3583 = vpow2.f32 %v3266_v60  ;;  %v4203_v0 = vadd.f32 %v4169_v36, %v841_v61 }
  0xf7   : > { %3585 = vpow2.f32 %v3265_v63  ;;  %v3459_v1 = vpop.f32.mrb[8].mxu0  ;;  %v4219_v21 = vadd.f32 %v4169_v36, %v840_v9 }
  0xf8   : > { %v3576_v2 = vpop.eup %3575  ;;  %v3268_v4 = vmul.f32 -1.442695, %v4203_v0  ;;  %v708_v5 = vpop.f32.mrb[9].mxu0  ;;  %v843_v13 = vmul.f32 %v3459_v1, %v4164_v34 }
  0xf9   : > { %v3578_v6 = vpop.eup %3577  ;;  %v1002_v7 = vadd.f32 1.0, %v3576_v2  ;;  %v842_v19 = vmul.f32 %v4164_v34, %v708_v5  ;;  %v3267_v42 = vmul.f32 -1.442695, %v4219_v21  ;;  %v1420_v2 = vld [vmem:[#allocation2 + $0x2] sm:$0xff] }
  0xfa   : > { %v1001_v8 = vadd.f32 1.0, %v3578_v6  ;;  %3587 = vpow2.f32 %v3268_v4  ;;  %v4229_v27 = vadd.f32 %v4169_v36, %v843_v13  ;;  %v1654_v6 = vsub.s32 4, %v4205_v3 }
  0xfb   : > { %3589 = vrcp.f32 %v1002_v7  ;;  %v3462_v10 = vpop.f32.mrb[10].mxu0  ;;  %v4235_v35 = vadd.f32 %v4169_v36, %v842_v19  ;;  %v1421_v7 = vld [vmem:[#allocation2 + $0xa] sm:$0xff] }
  0xfc   : > { %v3580_v11 = vpop.eup %3579  ;;  %3591 = vrcp.f32 %v1001_v8  ;;  %v718_v14 = vpop.f32.mrb[11].mxu0  ;;  %v845_v22 = vmul.f32 %v3462_v10, %v4164_v34  ;;  %v3270_v51 = vmul.f32 -1.442695, %v4229_v27  ;;  %v1754_v10 = vsub.s32 5, %v4205_v3 }
  0xfd   : > { %v3582_v15 = vpop.eup %3581  ;;  %v1004_v18 = vadd.f32 1.0, %v3580_v11  ;;  %v3269_v59 = vmul.f32 -1.442695, %v4235_v35  ;;  %v844_v63 = vmul.f32 %v4164_v34, %v718_v14  ;;  %v1554_v11 = vsub.s32 3, %v4205_v3 }
  0xfe   : > { %v1003_v20 = vadd.f32 1.0, %v3582_v15  ;;  %v4239_v44 = vadd.f32 %v4169_v36, %v845_v22  ;;  %v1389_v14 = vadd.f32 %v1357_v62, %v1257_v54  ;;  %v1456_v15 = vmul.f32 %v4244_v47, %v1420_v2 }
  0xff   : > { %3593 = vrcp.f32 %v1004_v18  ;;  %v3465_v23 = vpop.f32.mrb[12].mxu0  ;;  %v4271_v18 = vadd.f32 %v4169_v36, %v844_v63  ;;  %v1457_v19 = vmul.f32 %v4244_v47, %v1421_v7  ;;  %v4291_v37 = vrot.slane %v4214_v16, %v1654_v6 }
 0x100   : > { %v3584_v24 = vpop.eup %3583  ;;  %3595 = vrcp.f32 %v1003_v20  ;;  %v728_v28 = vpop.f32.mrb[13].mxu0  ;;  %v3272_v4 = vmul.f32 -1.442695, %v4239_v44  ;;  %v1955_v20 = vsub.s32 7, %v4205_v3  ;;  %v4294_v38 = vrot.slane %v4214_v16, %v1754_v10 }
 0x101   : > { %v3586_v29 = vpop.eup %3585  ;;  %v1006_v32 = vadd.f32 1.0, %v3584_v24  ;;  %v1855_v24 = vsub.s32 6, %v4205_v3 }
 0x102   : > { %v1005_v39 = vadd.f32 1.0, %v3586_v29 }
 0x103   : > { %3597 = vrcp.f32 %v1006_v32  ;;  %v4241_v45 = vpop.f32.mrb[14].mxu0  ;;  %v4287_v32 = vrot.slane %v4214_v16, %v1554_v11 }
 0x104   : > { %v3588_v46 = vpop.eup %3587  ;;  %3599 = vrcp.f32 %v1005_v39  ;;  %v4248_v52 = vpop.f32.mrb[15].mxu0 }
 0x105   : > { %v3590_v53 = vpop.eup %3589  ;;  %v1008_v58 = vadd.f32 1.0, %v3588_v46  ;;  %3601 = vpow2.f32 %v3267_v42  ;;  %v3271_v42 = vmul.f32 -1.442695, %v4271_v18  ;;  %v1489_v46 = vadd.f32 %v1457_v19, %v1389_v14 }
 0x106   : > { %v3592_v60 = vpop.eup %3591  ;;  %v1098_v61 = vmul.f32 %v3590_v53, %v4174_v40  ;;  %v847_v40 = vmul.f32 %v3465_v23, %v4164_v34 }
 0x107   : > { %v1097_v1 = vmul.f32 %v3592_v60, %v4177_v41  ;;  %3603 = vrcp.f32 %v1008_v58  ;;  %v4258_v5 = vpop.f32.mrb[16].mxu0  ;;  %v1388_v41 = vadd.f32 %v1356_v55, %v1256_v50  ;;  %v4299_v50 = vrot.slane %v4214_v16, %v1955_v20 }
 0x108   : > { %1187 = vst.msk [vmem:[#allocation2 + $0x21] sm:$0xff] %vm1129_vm2, %v1098_v61  ;;  %3605 = vpow2.f32 %v3270_v51  ;;  %v4263_v8 = vpop.f32.mrb[17].mxu0  ;;  %v4281_v25 = vadd.f32 %v4169_v36, %v847_v40 }
 0x109   : > { %v3594_v9 = vpop.eup %3593  ;;  %1186 = vst.msk [vmem:[#allocation2 + $0x19] sm:$0xff] %vm1129_vm2, %v1097_v1  ;;  %3607 = vpow2.f32 %v3269_v59  ;;  %v1488_v43 = vadd.f32 %v1456_v15, %v1388_v41  ;;  %v849_v41 = vmul.f32 %v4241_v45, %v4164_v34 }
 0x10a   : > { %v3596_v13 = vpop.eup %3595  ;;  %v1100_v17 = vmul.f32 %v3594_v9, %v4184_v48  ;;  %3609 = vpow2.f32 %v3272_v4  ;;  %v846_v48 = vmul.f32 %v4164_v34, %v728_v28  ;;  %v3274_v61 = vmul.f32 -1.442695, %v4281_v25 }
 0x10b   : > { %v1099_v22 = vmul.f32 %v3596_v13, %v4187_v49  ;;  %v4276_v23 = vpop.f32.mrb[18].mxu0  ;;  %3611 = vpow2.f32 %v3271_v42 }
 0x10c   : > { %1189 = vst.msk [vmem:[#allocation2 + $0x39] sm:$0xff] %vm1129_vm2, %v1100_v17  ;;  %v4284_v29 = vpop.f32.mrb[19].mxu0  ;;  %v4311_v62 = vadd.f32 %v4169_v36, %v846_v48  ;;  %3613 = vpow2.f32 %v3274_v61  ;;  %v4346_v61 = vld [vmem:[%s5675_s4 + $0x8] ss:$0 sm:$0xff] }
 0x10d   : > { %v3598_v31 = vpop.eup %3597  ;;  %1188 = vst.msk [vmem:[#allocation2 + $0x31] sm:$0xff] %vm1129_vm2, %v1099_v22 }
 0x10e   : > { %v3600_v49 = vpop.eup %3599  ;;  %v1102_v39 = vmul.f32 %v3598_v31, %v4194_v56  ;;  %v4306_v56 = vrot.slane %v4214_v16, %v1855_v24 }
 0x10f   : > { %v1323_v28 = vld [vmem:[#allocation2 + $0x21] sm:$0xff]  ;;  %v1101_v51 = vmul.f32 %v3600_v49, %v4197_v57  ;;  %v4302_v53 = vpop.f32.mrb[20].mxu0  ;;  %v3602_v54 = vpop.eup %3601 }
 0x110   : > { %v1359_v55 = vmul.f32 %v4232_v30, %v1323_v28  ;;  %v1222_v58 = vld [vmem:[#allocation2 + $0x18] sm:$0xff]  ;;  %v1223_v59 = vld [vmem:[#allocation2 + $0x20] sm:$0xff]  ;;  %1191 = vst.msk [vmem:[#allocation2 + $0x51] sm:$0xff] %vm1129_vm2, %v1102_v39  ;;  %v4313_v63 = vpop.f32.mrb[21].mxu0  ;;  %v1657_v20 = vmul.f32 %v4291_v37, %v1323_v28  ;;  %v1007_v48 = vadd.f32 1.0, %v3602_v54 }
 0x111   : > { %v1322_v60 = vld [vmem:[#allocation2 + $0x19] sm:$0xff]  ;;  %v3604_v57 = vpop.eup %3603  ;;  %v1258_v1 = vmul.f32 %v4226_v26, %v1222_v58  ;;  %v1259_v2 = vmul.f32 %v4226_v26, %v1223_v59  ;;  %v1556_v16 = vmul.f32 %v4287_v32, %v1222_v58  ;;  %1190 = vst.msk [vmem:[#allocation2 + $0x49] sm:$0xff] %vm1129_vm2, %v1101_v51  ;;  %v1423_v40 = vld [vmem:[#allocation2 + $0x22] sm:$0xff]  ;;  %v1557_v9 = vmul.f32 %v4287_v32, %v1223_v59 }
 0x112   : > { %v1358_v4 = vmul.f32 %v4232_v30, %v1322_v60  ;;  %v1422_v6 = vld [vmem:[#allocation2 + $0x1a] sm:$0xff]  ;;  %v3606_v7 = vpop.eup %3605  ;;  %v1656_v10 = vmul.f32 %v4291_v37, %v1322_v60  ;;  %v1104_v17 = vmul.f32 %v3604_v57, %v4203_v0  ;;  %v1459_v39 = vmul.f32 %v4244_v47, %v1423_v40 }
 0x113   : > { %v3608_v11 = vpop.eup %3607  ;;  %v1391_v14 = vadd.f32 %v1359_v55, %v1259_v2  ;;  %v1588_v15 = vadd.f32 %v1556_v16, %v1488_v43  ;;  %v4325_v19 = vpop.f32.mrb[22].mxu0  ;;  %v1458_v22 = vmul.f32 %v4244_v47, %v1422_v6  ;;  %v1589_v24 = vadd.f32 %v1557_v9, %v1489_v46  ;;  %v1325_v16 = vld [vmem:[#allocation2 + $0x39] sm:$0xff] }
 0x114   : > { %v1390_v13 = vadd.f32 %v1358_v4, %v1258_v1  ;;  %v4329_v31 = vpop.f32.mrb[23].mxu0  ;;  %v3610_v49 = vpop.eup %3609  ;;  %v1756_v42 = vmul.f32 %v4294_v38, %v1422_v6  ;;  %v1224_v51 = vld [vmem:[#allocation2 + $0x30] sm:$0xff]  ;;  %v1225_v43 = vld [vmem:[#allocation2 + $0x38] sm:$0xff]  ;;  %1193 = vst.msk [vmem:[#allocation2 + $0x69] sm:$0xff] %vm1129_vm2, %v1104_v17  ;;  %v1010_v0 = vadd.f32 1.0, %v3606_v7  ;;  %v1009_v28 = vadd.f32 1.0, %v3608_v11 }
 0x115   : > { %v1688_v45 = vadd.f32 %v1656_v10, %v1588_v15  ;;  %v1689_v58 = vadd.f32 %v1657_v20, %v1589_v24  ;;  %v848_v46 = vmul.f32 %v4164_v34, %v4248_v52  ;;  %v1757_v54 = vmul.f32 %v4294_v38, %v1423_v40  ;;  %v1324_v57 = vld [vmem:[#allocation2 + $0x31] sm:$0xff]  ;;  %v1425_v15 = vld [vmem:[#allocation2 + $0x3a] sm:$0xff] }
 0x116   : > { %v1490_v55 = vadd.f32 %v1458_v22, %v1390_v13  ;;  %v1491_v60 = vadd.f32 %v1459_v39, %v1391_v14  ;;  %v1558_v1 = vmul.f32 %v4287_v32, %v1224_v51  ;;  %v1559_v2 = vmul.f32 %v4287_v32, %v1225_v43  ;;  %v1424_v40 = vld [vmem:[#allocation2 + $0x32] sm:$0xff] }
 0x117   : > { %v1788_v59 = vadd.f32 %v1756_v42, %v1688_v45  ;;  %3615 = vrcp.f32 %v1007_v48  ;;  %v1012_v4 = vadd.f32 1.0, %v3610_v49  ;;  %v4339_v6 = vpop.f32.mrb[24].mxu0  ;;  %v1789_v7 = vadd.f32 %v1757_v54, %v1689_v58  ;;  %v4356_v48 = vpop.eup %3611 }
 0x118   : > { %5724 = vst [vmem:[#allocation4_spill] sm:$0xff] %v4339_v6  ;;  %v1857_v9 = vmul.f32 %v4306_v56, %v1224_v51  ;;  %3617 = vrcp.f32 %v1010_v0  ;;  %v3273_v52 = vmul.f32 -1.442695, %v4311_v62  ;;  %v1590_v10 = vadd.f32 %v1558_v1, %v1490_v55  ;;  %v4352_v14 = vpop.f32.mrb[25].mxu0 }
 0x119   : > { %v1858_v11 = vmul.f32 %v4306_v56, %v1225_v43  ;;  %3619 = vrcp.f32 %v1009_v28  ;;  %v4350_v13 = vadd.f32 %v4169_v36, %v849_v41  ;;  %5726 = vst [vmem:[#allocation6_spill] sm:$0xff] %v4352_v14  ;;  %v1591_v17 = vadd.f32 %v1559_v2, %v1491_v60  ;;  %v4370_v60 = vld [vmem:[%s5676_s5] ss:$0 sm:$0xff] }
 0x11a   : > { %v1658_v20 = vmul.f32 %v4291_v37, %v1324_v57  ;;  %v1889_v22 = vadd.f32 %v1857_v9, %v1788_v59  ;;  %v1957_v24 = vmul.f32 %v4299_v50, %v1324_v57  ;;  %v1958_v49 = vmul.f32 %v4299_v50, %v1325_v16 }
 0x11b   : > { %5725 = vst [vmem:[#allocation5_spill] sm:$0xff] %v4350_v13  ;;  %v1890_v39 = vadd.f32 %v1858_v11, %v1789_v7  ;;  %3621 = vrcp.f32 %v1012_v4  ;;  %v4360_v45 = vadd.f32 %v4169_v36, %v848_v46  ;;  %v1659_v41 = vmul.f32 %v4291_v37, %v1325_v16 }
 0x11c   : > { %v1690_v42 = vadd.f32 %v1658_v20, %v1590_v10  ;;  %v1989_v0 = vadd.f32 %v1957_v24, %v1889_v22  ;;  %v2057_v55 = vmul.f32 %v4346_v61, %v1424_v40  ;;  %v2058_v58 = vmul.f32 %v4346_v61, %v1425_v15  ;;  %v1227_v24 = vld [vmem:[#allocation2 + $0x50] sm:$0xff] }
 0x11d   : > { %5727 = vst [vmem:[#allocation7_spill] sm:$0xff] %v4360_v45  ;;  %v1260_v28 = vmul.f32 %v4226_v26, %v1224_v51  ;;  %v1360_v54 = vmul.f32 %v4232_v30, %v1324_v57  ;;  %v1990_v59 = vadd.f32 %v1958_v49, %v1890_v39  ;;  %v1691_v46 = vadd.f32 %v1659_v41, %v1591_v17  ;;  %v4379_v51 = vld [vmem:[%s5677_s6] ss:$0 sm:$0xff]  ;;  %v1226_v57 = vld [vmem:[#allocation2 + $0x48] sm:$0xff]  ;;  %v4384_v17 = vpop.eup %3613  ;;  %v4389_v49 = vpop.f32.mrb[26].mxu0 }
 0x11e   : > { %v1758_v1 = vmul.f32 %v4294_v38, %v1424_v40  ;;  %v2089_v2 = vadd.f32 %v2057_v55, %v1989_v0  ;;  %v851_v4 = vmul.f32 %v4258_v5, %v4164_v34  ;;  %v1361_v7 = vmul.f32 %v4232_v30, %v1325_v16  ;;  %5728 = vst [vmem:[#allocation8_spill] sm:$0xff] %v4389_v49  ;;  %v1326_v55 = vld [vmem:[#allocation2 + $0x49] sm:$0xff] }
 0x11f   : > { %v2090_v9 = vadd.f32 %v2058_v58, %v1990_v59  ;;  %v3276_v10 = vmul.f32 -1.442695, %v4350_v13  ;;  %v850_v11 = vmul.f32 %v4164_v34, %v4263_v8  ;;  %v1759_v20 = vmul.f32 %v4294_v38, %v1425_v15  ;;  %v4395_v58 = vpop.f32.mrb[27].mxu0 }
 0x120   : > { %v1261_v5 = vmul.f32 %v4226_v26, %v1225_v43  ;;  %v1790_v22 = vadd.f32 %v1758_v1, %v1690_v42  ;;  %v2128_v16 = vmul.f32 %v4370_v60, %v2089_v2  ;;  %v1392_v41 = vadd.f32 %v1360_v54, %v1260_v28  ;;  %5729 = vst [vmem:[#allocation9_spill] sm:$0xff] %v4395_v58  ;;  %v1327_v42 = vld [vmem:[#allocation2 + $0x51] sm:$0xff] }
 0x121   : > { %v3616_v39 = vpop.eup %3615  ;;  %v2129_v0 = vmul.f32 %v4370_v60, %v2090_v9  ;;  %3623 = vpow2.f32 %v3273_v52  ;;  %v4393_v8 = vmul.f32 -1.442695, %v4360_v45  ;;  %v1791_v1 = vadd.f32 %v1759_v20, %v1691_v46  ;;  %v1426_v9 = vld [vmem:[#allocation2 + $0x4a] sm:$0xff]  ;;  %v4412_v58 = vld [vmem:[#allocation2 + $0x52] sm:$0xff] }
 0x122   : > { %v3618_v59 = vpop.eup %3617  ;;  %v4398_v43 = vadd.f32 %v4379_v51, %v2128_v16  ;;  %v1859_v2 = vmul.f32 %v4306_v56, %v1226_v57  ;;  %v4402_v12 = vadd.f32 %v4169_v36, %v851_v4  ;;  %v1460_v54 = vmul.f32 %v4244_v47, %v1424_v40 }
 0x123   : > { %v3620_v28 = vpop.eup %3619  ;;  %v4406_v52 = vadd.f32 %v4379_v51, %v2129_v0  ;;  %v1860_v33 = vmul.f32 %v4306_v56, %v1227_v24  ;;  %v4410_v3 = vadd.f32 %v4169_v36, %v850_v11  ;;  %v1393_v16 = vadd.f32 %v1361_v7, %v1261_v5 }
 0x124   : > { %5730 = vst [vmem:[#allocation10_spill] sm:$0xff] %v4398_v43  ;;  %v1891_v46 = vadd.f32 %v1859_v2, %v1790_v22  ;;  %v1959_v20 = vmul.f32 %v4299_v50, %v1326_v55  ;;  %3625 = vpow2.f32 %v3276_v10  ;;  %v1461_v45 = vmul.f32 %v4244_v47, %v1425_v15 }
 0x125   : > { %5731 = vst [vmem:[#allocation11_spill] sm:$0xff] %v4406_v52  ;;  %5732 = vst [vmem:[#allocation12_spill] sm:$0xff] %v4410_v3  ;;  %v3622_v4 = vpop.eup %3621  ;;  %v1492_v40 = vadd.f32 %v1460_v54, %v1392_v41  ;;  %v1960_v0 = vmul.f32 %v4299_v50, %v1327_v42  ;;  %v1892_v49 = vadd.f32 %v1860_v33, %v1791_v1  ;;  %v3296_v14 = vmul.f32 -1.442695, %v4398_v43 }
 0x126   : > { %v1560_v6 = vmul.f32 %v4287_v32, %v1226_v57  ;;  %v1991_v11 = vadd.f32 %v1959_v20, %v1891_v46  ;;  %v2059_v7 = vmul.f32 %v4346_v61, %v1426_v9  ;;  %v3297_v5 = vmul.f32 -1.442695, %v4406_v52 }
 0x127   : > { %v2060_v22 = vmul.f32 %v4346_v61, %v4412_v58  ;;  %v1262_v10 = vmul.f32 %v4226_v26, %v1226_v57  ;;  %v1992_v2 = vadd.f32 %v1960_v0, %v1892_v49  ;;  %v1493_v15 = vadd.f32 %v1461_v45, %v1393_v16 }
 0x128   : > { %v1561_v41 = vmul.f32 %v4287_v32, %v1227_v24  ;;  %v2091_v54 = vadd.f32 %v2059_v7, %v1991_v11  ;;  %v1103_v33 = vmul.f32 %v3616_v39, %v4219_v21  ;;  %v1362_v1 = vmul.f32 %v4232_v30, %v1326_v55  ;;  %v1429_v11 = vld [vmem:[#allocation2 + $0x6a] sm:$0xff] }
 0x129   : > { %v2092_v43 = vadd.f32 %v2060_v22, %v1992_v2  ;;  %v1106_v46 = vmul.f32 %v3618_v59, %v4229_v27  ;;  %v1105_v20 = vmul.f32 %v3620_v28, %v4235_v35  ;;  %3627 = vpow2.f32 %v3296_v14 }
 0x12a   : > { %v1592_v52 = vadd.f32 %v1560_v6, %v1492_v40  ;;  %v2130_v13 = vmul.f32 %v4370_v60, %v2091_v54  ;;  %1192 = vst.msk [vmem:[#allocation2 + $0x61] sm:$0xff] %vm1129_vm2, %v1103_v33  ;;  %v1108_v45 = vmul.f32 %v3622_v4, %v4239_v44  ;;  %3629 = vpow2.f32 %v3297_v5  ;;  %v1329_v4 = vld [vmem:[#allocation2 + $0x69] sm:$0xff]  ;;  %v4474_v54 = vpop.f32.mrb[28].mxu0 }
 0x12b   : > { %v3624_v57 = vpop.eup %3623  ;;  %v1363_v49 = vmul.f32 %v4232_v30, %v1327_v42  ;;  %v2131_v21 = vmul.f32 %v4370_v60, %v2092_v43  ;;  %1195 = vst.msk [vmem:[#allocation2 + $0x81] sm:$0xff] %vm1129_vm2, %v1106_v46  ;;  %1194 = vst.msk [vmem:[#allocation2 + $0x79] sm:$0xff] %vm1129_vm2, %v1105_v20  ;;  %v853_v27 = vmul.f32 %v4276_v23, %v4164_v34  ;;  %3631 = vpow2.f32 %v4393_v8 }
 0x12c   : > { %v1263_v35 = vmul.f32 %v4226_v26, %v1227_v24  ;;  %v1593_v6 = vadd.f32 %v1561_v41, %v1493_v15  ;;  %v1660_v14 = vmul.f32 %v4291_v37, %v1326_v55  ;;  %v4441_v44 = vadd.f32 %v4379_v51, %v2130_v13  ;;  %1197 = vst.msk [vmem:[#allocation2 + $0x99] sm:$0xff] %vm1129_vm2, %v1108_v45  ;;  %v4484_v45 = vpop.f32.mrb[29].mxu0 }
 0x12d   : > { %v4445_v39 = vadd.f32 %v4379_v51, %v2131_v21  ;;  %v852_v59 = vmul.f32 %v4164_v34, %v4284_v29  ;;  %v1661_v28 = vmul.f32 %v4291_v37, %v1327_v42  ;;  %v1394_v23 = vadd.f32 %v1362_v1, %v1262_v10  ;;  %5734 = vst [vmem:[#allocation14_spill] sm:$0xff] %v4474_v54 }
 0x12e   : > { %v3626_v43 = vpop.eup %3625  ;;  %v1692_v16 = vadd.f32 %v1660_v14, %v1592_v52  ;;  %v3298_v24 = vmul.f32 -1.442695, %v4441_v44  ;;  %v4453_v13 = vmul.f32 -1.442695, %v4402_v12  ;;  %v4456_v55 = vmul.f32 -1.442695, %v4410_v3 }
 0x12f   : > { %v4459_v40 = vadd.f32 %v4169_v36, %v853_v27  ;;  %v1395_v29 = vadd.f32 %v1363_v49, %v1263_v35  ;;  %v1462_v0 = vmul.f32 %v4244_v47, %v1426_v9  ;;  %v1693_v42 = vadd.f32 %v1661_v28, %v1593_v6  ;;  %5735 = vst [vmem:[#allocation15_spill] sm:$0xff] %v4484_v45 }
 0x130   : > { %v1760_v52 = vmul.f32 %v4294_v38, %v1426_v9  ;;  %v1463_v7 = vmul.f32 %v4244_v47, %v4412_v58  ;;  %3633 = vpow2.f32 %v3298_v24  ;;  %v3299_v8 = vmul.f32 -1.442695, %v4445_v39 }
 0x131   : > { %v1228_v5 = vld [vmem:[#allocation2 + $0x60] sm:$0xff]  ;;  %v4467_v22 = vadd.f32 %v4169_v36, %v852_v59  ;;  %v1761_v10 = vmul.f32 %v4294_v38, %v4412_v58  ;;  %v1494_v2 = vadd.f32 %v1462_v0, %v1394_v23  ;;  %v4472_v41 = vmul.f32 %v4232_v30, %v1329_v4  ;;  %v1229_v9 = vld [vmem:[#allocation2 + $0x68] sm:$0xff] }
 0x132   : > { %v1792_v15 = vadd.f32 %v1760_v52, %v1692_v16  ;;  %v4477_v33 = vmul.f32 %v4244_v47, %v1429_v11  ;;  %v1663_v1 = vmul.f32 %v4291_v37, %v1329_v4  ;;  %v4481_v46 = vmul.f32 %v4294_v38, %v1429_v11  ;;  %v1328_v49 = vld [vmem:[#allocation2 + $0x61] sm:$0xff] }
 0x133   : > { %5733 = vst [vmem:[#allocation13_spill] sm:$0xff] %v4467_v22  ;;  %v1011_v20 = vadd.f32 1.0, %v4356_v48  ;;  %v3628_v58 = vpop.eup %3627  ;;  %v1495_v21 = vadd.f32 %v1463_v7, %v1395_v29  ;;  %v1562_v27 = vmul.f32 %v4287_v32, %v1228_v5  ;;  %v1793_v35 = vadd.f32 %v1761_v10, %v1693_v42  ;;  %v1428_v24 = vld [vmem:[#allocation2 + $0x62] sm:$0xff] }
 0x134   : > { %v1014_v6 = vadd.f32 1.0, %v4384_v17  ;;  %v3630_v14 = vpop.eup %3629  ;;  %3635 = vpow2.f32 %v3299_v8  ;;  %v1563_v59 = vmul.f32 %v4287_v32, %v1229_v9  ;;  %v1861_v28 = vmul.f32 %v4306_v56, %v1228_v5  ;;  %v4494_v17 = vpop.f32.mrb[30].mxu0 }
 0x135   : > { %v1013_v23 = vadd.f32 1.0, %v3624_v57  ;;  %v1962_v16 = vmul.f32 %v4299_v50, %v1329_v4  ;;  %v2062_v48 = vmul.f32 %v4346_v61, %v1429_v11  ;;  %v1862_v0 = vmul.f32 %v4306_v56, %v1229_v9  ;;  %5736 = vst [vmem:[#allocation16_spill] sm:$0xff] %v4494_v17  ;;  %v3632_v57 = vpop.eup %3631 }
 0x136   : > { %v1016_v29 = vadd.f32 1.0, %v3626_v43  ;;  %v2295_v52 = vadd.f32 1.0, %v3628_v58  ;;  %v1893_v7 = vadd.f32 %v1861_v28, %v1792_v15  ;;  %v1961_v42 = vmul.f32 %v4299_v50, %v1328_v49 }
 0x137   : > { %3637 = vrcp.f32 %v1011_v20  ;;  %v2296_v8 = vadd.f32 1.0, %v3630_v14  ;;  %v1594_v10 = vadd.f32 %v1562_v27, %v1494_v2  ;;  %v1894_v45 = vadd.f32 %v1862_v0, %v1793_v35  ;;  %v1231_v0 = vld [vmem:[#allocation2 + $0x80] sm:$0xff] }
 0x138   : > { %3639 = vrcp.f32 %v1014_v6  ;;  %v1595_v54 = vadd.f32 %v1563_v59, %v1495_v21  ;;  %v1993_v4 = vadd.f32 %v1961_v42, %v1893_v7  ;;  %v2061_v11 = vmul.f32 %v4346_v61, %v1428_v24 }
 0x139   : > { %3641 = vrcp.f32 %v1013_v23  ;;  %v1662_v3 = vmul.f32 %v4291_v37, %v1328_v49  ;;  %v1994_v43 = vadd.f32 %v1962_v16, %v1894_v45  ;;  %v855_v15 = vmul.f32 %v4302_v53, %v4164_v34 }
 0x13a   : > { %3643 = vrcp.f32 %v1016_v29  ;;  %v3634_v20 = vpop.eup %3633  ;;  %v1264_v58 = vmul.f32 %v4226_v26, %v1228_v5  ;;  %v1364_v2 = vmul.f32 %v4232_v30, %v1328_v49  ;;  %v2093_v27 = vadd.f32 %v2061_v11, %v1993_v4  ;;  %v1330_v4 = vld [vmem:[#allocation2 + $0x79] sm:$0xff] }
 0x13b   : > { %3645 = vrcp.f32 %v2295_v52  ;;  %v1694_v21 = vadd.f32 %v1662_v3, %v1594_v10  ;;  %v854_v35 = vmul.f32 %v4164_v34, %v4313_v63  ;;  %v857_v6 = vmul.f32 %v4325_v19, %v4164_v34  ;;  %v1230_v19 = vld [vmem:[#allocation2 + $0x78] sm:$0xff] }
 0x13c   : > { %3647 = vrcp.f32 %v2296_v8  ;;  %v1265_v45 = vmul.f32 %v4226_v26, %v1229_v9  ;;  %v1695_v14 = vadd.f32 %v1663_v1, %v1595_v54  ;;  %v2094_v59 = vadd.f32 %v2062_v48, %v1994_v43  ;;  %v4522_v1 = vpop.f32.mrb[31].mxu0 }
 0x13d   : > { %v2132_v53 = vmul.f32 %v4370_v60, %v2093_v27  ;;  %v2297_v28 = vadd.f32 1.0, %v3634_v20  ;;  %v1762_v5 = vmul.f32 %v4294_v38, %v1428_v24  ;;  %v4509_v23 = vadd.f32 1.0, %v3632_v57  ;;  %5737 = vst [vmem:[#allocation17_spill] sm:$0xff] %v4522_v1  ;;  %v1331_v57 = vld [vmem:[#allocation2 + $0x81] sm:$0xff] }
 0x13e   : > { %v856_v3 = vmul.f32 %v4164_v34, %v4329_v31  ;;  %v3636_v49 = vpop.eup %3635  ;;  %v1396_v16 = vadd.f32 %v1364_v2, %v1264_v58  ;;  %v4517_v9 = vmul.f32 -1.442695, %v4459_v40  ;;  %v4520_v54 = vmul.f32 -1.442695, %v4467_v22 }
 0x13f   : > { %v4514_v63 = vadd.f32 %v4379_v51, %v2132_v53  ;;  %v1794_v48 = vadd.f32 %v1762_v5, %v1694_v21  ;;  %v4525_v29 = vadd.f32 %v4169_v36, %v855_v15  ;;  %v4528_v31 = vadd.f32 %v4169_v36, %v854_v35  ;;  %v1430_v21 = vld [vmem:[#allocation2 + $0x7a] sm:$0xff] }
 0x140   : > { %v4531_v52 = vadd.f32 %v4169_v36, %v857_v6  ;;  %v1397_v42 = vadd.f32 %v4472_v41, %v1265_v45  ;;  %v1464_v8 = vmul.f32 %v4244_v47, %v1428_v24  ;;  %v2133_v10 = vmul.f32 %v4370_v60, %v2094_v59 }
 0x141   : > { %v3638_v7 = vpop.eup %3637  ;;  %v1795_v11 = vadd.f32 %v4481_v46, %v1695_v14  ;;  %v2298_v15 = vadd.f32 1.0, %v3636_v49  ;;  %3649 = vrcp.f32 %v2297_v28  ;;  %v1863_v20 = vmul.f32 %v4306_v56, %v1230_v19 }
 0x142   : > { %5738 = vst [vmem:[#allocation18_spill] sm:$0xff] %v4531_v52  ;;  %v3640_v43 = vpop.eup %3639  ;;  %v4539_v58 = vadd.f32 %v4169_v36, %v856_v3  ;;  %v1496_v27 = vadd.f32 %v1464_v8, %v1396_v16  ;;  %v3300_v41 = vmul.f32 -1.442695, %v4514_v63  ;;  %v1564_v24 = vmul.f32 %v4287_v32, %v1230_v19 }
 0x143   : > { %v3642_v2 = vpop.eup %3641  ;;  %v1864_v35 = vmul.f32 %v4306_v56, %v1231_v0  ;;  %v1964_v46 = vmul.f32 %v4299_v50, %v1331_v57  ;;  %v1266_v45 = vmul.f32 %v4226_v26, %v1230_v19  ;;  %v1895_v14 = vadd.f32 %v1863_v20, %v1794_v48  ;;  %v1431_v19 = vld [vmem:[#allocation2 + $0x82] sm:$0xff] }
 0x144   : > { %5739 = vst [vmem:[#allocation19_spill] sm:$0xff] %v4539_v58  ;;  %v3644_v6 = vpop.eup %3643  ;;  %v1963_v59 = vmul.f32 %v4299_v50, %v1330_v4  ;;  %v4548_v36 = vadd.f32 %v4379_v51, %v2133_v10  ;;  %v1497_v28 = vadd.f32 %v4477_v33, %v1397_v42  ;;  %v1565_v5 = vmul.f32 %v4287_v32, %v1231_v0  ;;  %v5740_v42 = vld [vmem:[#allocation5_spill] sm:$0xff] }
 0x145   : > { %v3646_v53 = vpop.eup %3645  ;;  %v1896_v3 = vadd.f32 %v1864_v35, %v1795_v11  ;;  %3651 = vrcp.f32 %v2298_v15  ;;  %v2063_v8 = vmul.f32 %v4346_v61, %v1430_v21  ;;  %v1107_v1 = vmul.f32 %v3638_v7, %v4271_v18  ;;  %v5741_v15 = vld [vmem:[#allocation10_spill] sm:$0xff] }
 0x146   : > { %v3648_v49 = vpop.eup %3647  ;;  %v1995_v16 = vadd.f32 %v1963_v59, %v1895_v14  ;;  %3653 = vpow2.f32 %v3300_v41  ;;  %v1366_v48 = vmul.f32 %v4232_v30, %v1330_v4  ;;  %v1596_v20 = vadd.f32 %v1564_v24, %v1496_v27  ;;  %v5743_v14 = vld [vmem:[#allocation11_spill] sm:$0xff] }
 0x147   : > { %v1110_v10 = vmul.f32 %v3640_v43, %v4281_v25  ;;  %v1996_v17 = vadd.f32 %v1964_v46, %v1896_v3  ;;  %1196 = vst.msk [vmem:[#allocation2 + $0x91] sm:$0xff] %vm1129_vm2, %v1107_v1  ;;  %v1109_v33 = vmul.f32 %v3642_v2, %v4311_v62  ;;  %v1112_v11 = vmul.f32 %v3644_v6, %v5740_v42  ;;  %v5745_v25 = vld [vmem:[#allocation4_spill] sm:$0xff] }
 0x148   : > { %v2095_v22 = vadd.f32 %v2063_v8, %v1995_v16  ;;  %v4560_v35 = vmul.f32 %v3646_v53, %v5741_v15  ;;  %v4563_v18 = vmul.f32 %v3648_v49, %v5743_v14  ;;  %v3301_v7 = vmul.f32 -1.442695, %v4548_v36  ;;  %v1333_v8 = vld [vmem:[#allocation2 + $0x99] sm:$0xff] }
 0x149   : > { %1199 = vst.msk [vmem:[#allocation2 + $0xb1] sm:$0xff] %vm1129_vm2, %v1110_v10  ;;  %v4569_v43 = vmul.f32 %v5745_v25, %v4164_v34  ;;  %v2064_v1 = vmul.f32 %v4346_v61, %v1431_v19  ;;  %v1597_v27 = vadd.f32 %v1565_v5, %v1497_v28  ;;  %v1664_v62 = vmul.f32 %v4291_v37, %v1330_v4 }
 0x14a   : > { %5742 = vst [vmem:[#allocation5_spill] sm:$0xff] %v4560_v35  ;;  %5744 = vst [vmem:[#allocation10_spill] sm:$0xff] %v4563_v18  ;;  %v2134_v2 = vmul.f32 %v4370_v60, %v2095_v22  ;;  %v1367_v41 = vmul.f32 %v4232_v30, %v1331_v57  ;;  %v1665_v24 = vmul.f32 %v4291_v37, %v1331_v57  ;;  %v4580_v46 = vmul.f32 -1.442695, %v4525_v29  ;;  %v5746_v57 = vld [vmem:[#allocation6_spill] sm:$0xff] }
 0x14b   : > { %1198 = vst.msk [vmem:[#allocation2 + $0xa9] sm:$0xff] %vm1129_vm2, %v1109_v33  ;;  %1201 = vst.msk [vmem:[#allocation2 + $0xc9] sm:$0xff] %vm1129_vm2, %v1112_v11  ;;  %v1267_v6 = vmul.f32 %v4226_v26, %v1231_v0  ;;  %v3650_v59 = vpop.eup %3649  ;;  %v1398_v53 = vadd.f32 %v1366_v48, %v1266_v45  ;;  %v1696_v28 = vadd.f32 %v1664_v62, %v1596_v20  ;;  %v2423_v22 = vsel %vm1129_vm2, %v4560_v35, 0.0  ;;  %v1433_v48 = vld [vmem:[#allocation2 + $0x9a] sm:$0xff] }
 0x14c   : > { %v2096_v5 = vadd.f32 %v2064_v1, %v1996_v17  ;;  %v4583_v4 = vadd.f32 %v4379_v51, %v2134_v2  ;;  %v2424_v3 = vsel %vm1129_vm2, %v4563_v18, 0.0  ;;  %3655 = vpow2.f32 %v3301_v7 }
 0x14d   : > { %v4591_v0 = vmul.f32 %v4164_v34, %v5746_v57  ;;  %v1466_v49 = vmul.f32 %v4244_v47, %v1430_v21  ;;  %v1697_v16 = vadd.f32 %v1665_v24, %v1597_v27  ;;  %v1764_v45 = vmul.f32 %v4294_v38, %v1430_v21 }
 0x14e   : > { %v3302_v17 = vmul.f32 -1.442695, %v4583_v4  ;;  %v4597_v20 = vmul.f32 %v3650_v59, %v4441_v44  ;;  %v1467_v10 = vmul.f32 %v4244_v47, %v1431_v19  ;;  %v1765_v33 = vmul.f32 %v4294_v38, %v1431_v19  ;;  %v1232_v25 = vld [vmem:[#allocation2 + $0x90] sm:$0xff]  ;;  %v1233_v19 = vld [vmem:[#allocation2 + $0x98] sm:$0xff] }
 0x14f   : > { %v1399_v42 = vadd.f32 %v1367_v41, %v1267_v6  ;;  %v3652_v11 = vpop.eup %3651  ;;  %v2425_v34 = vadd.f32 %v2424_v3, %v2423_v22  ;;  %v1498_v15 = vadd.f32 %v1466_v49, %v1398_v53  ;;  %v1796_v14 = vadd.f32 %v1764_v45, %v1696_v28  ;;  %v1332_v59 = vld [vmem:[#allocation2 + $0x91] sm:$0xff] }
 0x150   : > { %5747 = vst [vmem:[#allocation11_spill] sm:$0xff] %v4597_v20  ;;  %v2135_v7 = vmul.f32 %v4370_v60, %v2096_v5  ;;  %v3654_v21 = vpop.eup %3653  ;;  %v4603_v1 = vmul.f32 %v4232_v30, %v1333_v8  ;;  %v4606_v27 = vmul.f32 %v4244_v47, %v1433_v48  ;;  %v1667_v44 = vmul.f32 %v4291_v37, %v1333_v8  ;;  %v1432_v45 = vld [vmem:[#allocation2 + $0x92] sm:$0xff] }
 0x151   : > { %v4610_v62 = vmul.f32 %v4294_v38, %v1433_v48  ;;  %3657 = vpow2.f32 %v3302_v17  ;;  %v1966_v2 = vmul.f32 %v4299_v50, %v1333_v8  ;;  %v2066_v41 = vmul.f32 %v4346_v61, %v1433_v48 }
 0x152   : > { %v1797_v24 = vadd.f32 %v1765_v33, %v1697_v16  ;;  %v2426_v6 = vsel %vm1129_vm2, %v4597_v20, 0.0  ;;  %v1499_v53 = vadd.f32 %v1467_v10, %v1399_v42  ;;  %v1566_v28 = vmul.f32 %v4287_v32, %v1232_v25 }
 0x153   : > { %3659 = vrcp.f32 %v4509_v23  ;;  %v4619_v5 = vadd.f32 %v4379_v51, %v2135_v7  ;;  %v1567_v22 = vmul.f32 %v4287_v32, %v1233_v19  ;;  %v1865_v3 = vmul.f32 %v4306_v56, %v1232_v25 }
 0x154   : > { %v1866_v57 = vmul.f32 %v4306_v56, %v1233_v19  ;;  %v4625_v49 = vmul.f32 %v3652_v11, %v4445_v39  ;;  %v2299_v16 = vadd.f32 1.0, %v3654_v21  ;;  %3661 = vpow2.f32 %v4453_v13 }
 0x155   : > { %v3281_v17 = vmul.f32 -1.442695, %v4528_v31  ;;  %v1897_v8 = vadd.f32 %v1865_v3, %v1796_v14  ;;  %v1965_v48 = vmul.f32 %v4299_v50, %v1332_v59  ;;  %3663 = vpow2.f32 %v4456_v55 }
 0x156   : > { %5748 = vst [vmem:[#allocation4_spill] sm:$0xff] %v4625_v49  ;;  %v1898_v23 = vadd.f32 %v1866_v57, %v1797_v24  ;;  %v3656_v10 = vpop.eup %3655  ;;  %v2427_v33 = vadd.f32 %v2426_v6, %v2425_v34  ;;  %v1598_v42 = vadd.f32 %v1566_v28, %v1498_v15  ;;  %3665 = vpow2.f32 %v4517_v9 }
 0x157   : > { %v4633_v39 = vmul.f32 -1.442695, %v4531_v52  ;;  %v3303_v11 = vmul.f32 -1.442695, %v4619_v5  ;;  %v1599_v7 = vadd.f32 %v1567_v22, %v1499_v53  ;;  %v1997_v13 = vadd.f32 %v1965_v48, %v1897_v8  ;;  %v4647_v53 = vld [vmem:[%s5674_s3] ss:$0 sm:$0xff] }
 0x158   : > { %v2065_v21 = vmul.f32 %v4346_v61, %v1432_v45  ;;  %3667 = vrcp.f32 %v2299_v16  ;;  %v1268_v14 = vmul.f32 %v4226_v26, %v1232_v25  ;;  %v1368_v24 = vmul.f32 %v4232_v30, %v1332_v59  ;;  %v1234_v48 = vld [vmem:[#allocation2 + $0xa8] sm:$0xff] }
 0x159   : > { %5749 = vst [vmem:[#allocation6_spill] sm:$0xff] %v4633_v39  ;;  %v1666_v55 = vmul.f32 %v4291_v37, %v1332_v59  ;;  %v2300_v34 = vadd.f32 1.0, %v3656_v10  ;;  %v1998_v15 = vadd.f32 %v1966_v2, %v1898_v23  ;;  %3669 = vpow2.f32 %v4520_v54  ;;  %v1335_v23 = vld [vmem:[#allocation2 + $0xb1] sm:$0xff] }
 0x15a   : > { %v2097_v6 = vadd.f32 %v2065_v21, %v1997_v13  ;;  %v2428_v9 = vsel %vm1129_vm2, %v4625_v49, 0.0  ;;  %3671 = vpow2.f32 %v4580_v46  ;;  %v4651_v25 = vadd.f32 %v4647_v53, %v4569_v43  ;;  %v1235_v13 = vld [vmem:[#allocation2 + $0xb0] sm:$0xff] }
 0x15b   : > { %v1698_v28 = vadd.f32 %v1666_v55, %v1598_v42  ;;  %v3658_v59 = vpop.eup %3657  ;;  %3673 = vpow2.f32 %v3303_v11  ;;  %v1269_v2 = vmul.f32 %v4226_v26, %v1233_v19  ;;  %v1699_v54 = vadd.f32 %v1667_v44, %v1599_v7  ;;  %v4669_v7 = vld [vmem:[#allocation2 + $0xb2] sm:$0xff]  ;;  %v1334_v21 = vld [vmem:[#allocation2 + $0xa9] sm:$0xff] }
 0x15c   : > { %5750 = vst [vmem:[#allocation20_spill] sm:$0xff] %v4651_v25  ;;  %v2136_v22 = vmul.f32 %v4370_v60, %v2097_v6  ;;  %v1400_v57 = vadd.f32 %v1368_v24, %v1268_v14  ;;  %v1766_v46 = vmul.f32 %v4294_v38, %v1432_v45  ;;  %3675 = vpow2.f32 %v3281_v17  ;;  %v5754_v24 = vld [vmem:[#allocation8_spill] sm:$0xff] }
 0x15d   : > { %v3660_v3 = vpop.eup %3659  ;;  %v4657_v16 = vmul.f32 -1.442695, %v4539_v58  ;;  %3677 = vrcp.f32 %v2300_v34  ;;  %v4659_v8 = vadd.f32 %v2428_v9, %v2427_v33  ;;  %v2098_v43 = vadd.f32 %v2066_v41, %v1998_v15 }
 0x15e   : > { %v4663_v19 = vadd.f32 %v4647_v53, %v4591_v0  ;;  %v3662_v44 = vpop.eup %3661  ;;  %v2301_v10 = vadd.f32 1.0, %v3658_v59  ;;  %v1468_v42 = vmul.f32 %v4244_v47, %v1432_v45  ;;  %v1798_v11 = vadd.f32 %v1766_v46, %v1698_v28  ;;  %v4679_v45 = vld [vmem:[%s5673_s2] ss:$0 sm:$0xff] }
 0x15f   : > { %5751 = vst [vmem:[#allocation21_spill] sm:$0xff] %v4657_v16  ;;  %v4667_v17 = vadd.f32 %v4379_v51, %v2136_v22  ;;  %v3664_v33 = vpop.eup %3663  ;;  %v1401_v41 = vadd.f32 %v4603_v1, %v1269_v2  ;;  %v1799_v14 = vadd.f32 %v4610_v62, %v1699_v54  ;;  %v4674_v0 = vmul.f32 -1.442695, %v4651_v25  ;;  %v1434_v2 = vld [vmem:[#allocation2 + $0xaa] sm:$0xff] }
 0x160   : > { %v4683_v55 = vmul.f32 %v4679_v45, %v5754_v24  ;;  %v3666_v34 = vpop.eup %3665  ;;  %v1500_v15 = vadd.f32 %v1468_v42, %v1400_v57  ;;  %v4686_v6 = vmul.f32 %v4232_v30, %v1335_v23  ;;  %v1669_v1 = vmul.f32 %v4291_v37, %v1335_v23 }
 0x161   : > { %5752 = vst [vmem:[#allocation22_spill] sm:$0xff] %v4667_v17  ;;  %5753 = vst [vmem:[#allocation23_spill] sm:$0xff] %v4674_v0  ;;  %v1867_v62 = vmul.f32 %v4306_v56, %v1234_v48  ;;  %v2137_v9 = vmul.f32 %v4370_v60, %v2098_v43  ;;  %v1968_v28 = vmul.f32 %v4299_v50, %v1335_v23  ;;  %3679 = vrcp.f32 %v2301_v10  ;;  %v5755_v10 = vld [vmem:[#allocation7_spill] sm:$0xff] }
 0x162   : > { %v2068_v59 = vmul.f32 %v4346_v61, %v4669_v7  ;;  %v1868_v54 = vmul.f32 %v4306_v56, %v1235_v13  ;;  %v3668_v22 = vpop.eup %3667  ;;  %v3304_v57 = vmul.f32 -1.442695, %v4667_v17  ;;  %v1967_v42 = vmul.f32 %v4299_v50, %v1334_v21 }
 0x163   : > { %v1899_v46 = vadd.f32 %v1867_v62, %v1798_v11  ;;  %v3670_v24 = vpop.eup %3669  ;;  %v1270_v49 = vmul.f32 %v4226_v26, %v1234_v48  ;;  %v1501_v43 = vadd.f32 %v4606_v27, %v1401_v41  ;;  %v1568_v23 = vmul.f32 %v4287_v32, %v1234_v48 }
 0x164   : > { %v1900_v20 = vadd.f32 %v1868_v54, %v1799_v14  ;;  %v3672_v18 = vpop.eup %3671  ;;  %v1569_v35 = vmul.f32 %v4287_v32, %v1235_v13  ;;  %v2067_v58 = vmul.f32 %v4346_v61, %v1434_v2  ;;  %v1111_v52 = vmul.f32 %v3660_v3, %v5755_v10 }
 0x165   : > { %v1999_v25 = vadd.f32 %v1967_v42, %v1899_v46  ;;  %v3674_v0 = vpop.eup %3673  ;;  %v4704_v11 = vmul.f32 %v3668_v22, %v4514_v63  ;;  %v1018_v62 = vadd.f32 1.0, %v3662_v44  ;;  %v1017_v17 = vadd.f32 1.0, %v3664_v33 }
 0x166   : > { %v1020_v16 = vadd.f32 1.0, %v3666_v34  ;;  %v3676_v39 = vpop.eup %3675  ;;  %v4707_v27 = vadd.f32 %v4379_v51, %v2137_v9  ;;  %3681 = vpow2.f32 %v3304_v57  ;;  %1200 = vst.msk [vmem:[#allocation2 + $0xc1] sm:$0xff] %vm1129_vm2, %v1111_v52  ;;  %v1019_v41 = vadd.f32 1.0, %v3670_v24 }
 0x167   : > { %5756 = vst [vmem:[#allocation8_spill] sm:$0xff] %v4704_v11  ;;  %v2099_v48 = vadd.f32 %v2067_v58, %v1999_v25  ;;  %v3678_v14 = vpop.eup %3677  ;;  %v1370_v54 = vmul.f32 %v4232_v30, %v1334_v21  ;;  %v2000_v3 = vadd.f32 %v1968_v28, %v1900_v20  ;;  %3683 = vrcp.f32 %v1018_v62  ;;  %v1337_v28 = vld [vmem:[#allocation2 + $0xc9] sm:$0xff] }
 0x168   : > { %v1022_v46 = vadd.f32 1.0, %v3672_v18  ;;  %v2302_v63 = vadd.f32 1.0, %v3674_v0  ;;  %v1600_v22 = vadd.f32 %v1568_v23, %v1500_v15  ;;  %v1601_v44 = vadd.f32 %v1569_v35, %v1501_v43 }
 0x169   : > { %3685 = vrcp.f32 %v1017_v17  ;;  %v2430_v33 = vsel %vm1129_vm2, %v4704_v11, 0.0  ;;  %v2138_v34 = vmul.f32 %v4370_v60, %v2099_v48  ;;  %v1021_v58 = vadd.f32 1.0, %v3676_v39 }
 0x16a   : > { %3687 = vrcp.f32 %v1020_v16  ;;  %v3305_v52 = vmul.f32 -1.442695, %v4707_v27  ;;  %v1271_v25 = vmul.f32 %v4226_v26, %v1235_v13  ;;  %v1668_v9 = vmul.f32 %v4291_v37, %v1334_v21 }
 0x16b   : > { %3689 = vrcp.f32 %v1019_v41  ;;  %v4718_v18 = vmul.f32 %v3678_v14, %v4548_v36  ;;  %v1402_v20 = vadd.f32 %v1370_v54, %v1270_v49  ;;  %v2100_v35 = vadd.f32 %v2068_v59, %v2000_v3  ;;  %v3680_v17 = vpop.eup %3679  ;;  %v1437_v59 = vld [vmem:[#allocation2 + $0xca] sm:$0xff] }
 0x16c   : > { %3691 = vrcp.f32 %v1022_v46  ;;  %v2431_v0 = vadd.f32 %v2430_v33, %v4659_v8  ;;  %v1700_v15 = vadd.f32 %v1668_v9, %v1600_v22  ;;  %v1701_v16 = vadd.f32 %v1669_v1, %v1601_v44 }
 0x16d   : > { %5757 = vst [vmem:[#allocation7_spill] sm:$0xff] %v4718_v18  ;;  %3693 = vrcp.f32 %v2302_v63  ;;  %v1471_v39 = vmul.f32 %v4244_v47, %v4669_v7  ;;  %v1470_v13 = vmul.f32 %v4244_v47, %v1434_v2  ;;  %v4725_v21 = vadd.f32 %v4379_v51, %v2138_v34  ;;  %v1236_v43 = vld [vmem:[#allocation2 + $0xc0] sm:$0xff]  ;;  %v1237_v23 = vld [vmem:[#allocation2 + $0xc8] sm:$0xff] }
 0x16e   : > { %3695 = vrcp.f32 %v1021_v58  ;;  %v1769_v36 = vmul.f32 %v4294_v38, %v4669_v7  ;;  %v1403_v49 = vadd.f32 %v4686_v6, %v1271_v25  ;;  %v1768_v8 = vmul.f32 %v4294_v38, %v1434_v2  ;;  %v1336_v3 = vld [vmem:[#allocation2 + $0xc1] sm:$0xff] }
 0x16f   : > { %3697 = vpow2.f32 %v3305_v52  ;;  %v4732_v1 = vmul.f32 %v3680_v17, %v4583_v4  ;;  %v2432_v57 = vsel %vm1129_vm2, %v4718_v18, 0.0  ;;  %v1502_v42 = vadd.f32 %v1470_v13, %v1402_v20  ;;  %v1436_v25 = vld [vmem:[#allocation2 + $0xc2] sm:$0xff] }
 0x170   : > { %v2139_v24 = vmul.f32 %v4370_v60, %v2100_v35  ;;  %v3682_v10 = vpop.eup %3681  ;;  %v2433_v62 = vadd.f32 %v2432_v57, %v2431_v0  ;;  %v1800_v48 = vadd.f32 %v1768_v8, %v1700_v15  ;;  %v4738_v7 = vmul.f32 %v4232_v30, %v1337_v28 }
 0x171   : > { %5758 = vst [vmem:[#allocation24_spill] sm:$0xff] %v4732_v1  ;;  %v1801_v6 = vadd.f32 %v1769_v36, %v1701_v16  ;;  %v3684_v2 = vpop.eup %3683  ;;  %v3306_v41 = vmul.f32 -1.442695, %v4725_v21  ;;  %v4742_v4 = vmul.f32 %v4244_v47, %v1437_v59  ;;  %v1671_v14 = vmul.f32 %v4291_v37, %v1337_v28  ;;  %v5759_v16 = vld [vmem:[#allocation12_spill] sm:$0xff] }
 0x172   : > { %v1970_v54 = vmul.f32 %v4299_v50, %v1337_v28  ;;  %v2070_v63 = vmul.f32 %v4346_v61, %v1437_v59  ;;  %v1503_v22 = vadd.f32 %v1471_v39, %v1403_v49  ;;  %v1869_v44 = vmul.f32 %v4306_v56, %v1236_v43  ;;  %v5760_v49 = vld [vmem:[#allocation13_spill] sm:$0xff] }
 0x173   : > { %v3686_v46 = vpop.eup %3685  ;;  %v1870_v33 = vmul.f32 %v4306_v56, %v1237_v23  ;;  %v2434_v58 = vsel %vm1129_vm2, %v4732_v1, 0.0  ;;  %v4752_v52 = vadd.f32 %v4379_v51, %v2139_v24  ;;  %v1570_v9 = vmul.f32 %v4287_v32, %v1236_v43 }
 0x174   : > { %v3688_v34 = vpop.eup %3687  ;;  %v1114_v20 = vmul.f32 %v3684_v2, %v4402_v12  ;;  %v1901_v17 = vadd.f32 %v1869_v44, %v1800_v48  ;;  %v1969_v15 = vmul.f32 %v4299_v50, %v1336_v3  ;;  %v1113_v39 = vmul.f32 %v3686_v46, %v5759_v16 }
 0x175   : > { %v3690_v35 = vpop.eup %3689  ;;  %v1902_v0 = vadd.f32 %v1870_v33, %v1801_v6  ;;  %3699 = vpow2.f32 %v3306_v41  ;;  %v1571_v28 = vmul.f32 %v4287_v32, %v1237_v23  ;;  %v1116_v36 = vmul.f32 %v3688_v34, %v4459_v40 }
 0x176   : > { %v3692_v13 = vpop.eup %3691  ;;  %1203 = vst.msk [vmem:[#allocation2 + $0xe1] sm:$0xff] %vm1129_vm2, %v1114_v20  ;;  %v1115_v8 = vmul.f32 %v3690_v35, %v5760_v49  ;;  %v2001_v24 = vadd.f32 %v1969_v15, %v1901_v17  ;;  %v2069_v48 = vmul.f32 %v4346_v61, %v1436_v25  ;;  %1202 = vst.msk [vmem:[#allocation2 + $0xd9] sm:$0xff] %vm1129_vm2, %v1113_v39  ;;  %v2303_v46 = vadd.f32 1.0, %v3682_v10 }
 0x177   : > { %v3694_v57 = vpop.eup %3693  ;;  %v2002_v12 = vadd.f32 %v1970_v54, %v1902_v0  ;;  %v1118_v6 = vmul.f32 %v3692_v13, %v4525_v29  ;;  %v3307_v41 = vmul.f32 -1.442695, %v4752_v52  ;;  %v1272_v44 = vmul.f32 %v4226_v26, %v1236_v43  ;;  %1205 = vst.msk [vmem:[#allocation2 + $0xf9] sm:$0xff] %vm1129_vm2, %v1116_v36  ;;  %v5761_v43 = vld [vmem:[#allocation9_spill] sm:$0xff]  ;;  %v5764_v36 = vld [vmem:[#allocation15_spill] sm:$0xff] }
 0x178   : > { %v3696_v2 = vpop.eup %3695  ;;  %v1372_v33 = vmul.f32 %v4232_v30, %v1336_v3  ;;  %1204 = vst.msk [vmem:[#allocation2 + $0xf1] sm:$0xff] %vm1129_vm2, %v1115_v8  ;;  %v1602_v54 = vadd.f32 %v1570_v9, %v1502_v42  ;;  %v2101_v34 = vadd.f32 %v2069_v48, %v2001_v24  ;;  %v1771_v10 = vmul.f32 %v4294_v38, %v1437_v59 }
 0x179   : > { %v3698_v40 = vpop.eup %3697  ;;  %v2102_v61 = vadd.f32 %v2070_v63, %v2002_v12  ;;  %1207 = vst.msk [vmem:[#allocation2 + $0x111] sm:$0xff] %vm1129_vm2, %v1118_v6  ;;  %v1117_v29 = vmul.f32 %v3696_v2, %v4528_v31  ;;  %v1273_v20 = vmul.f32 %v4226_v26, %v1237_v23  ;;  %v1603_v35 = vadd.f32 %v1571_v28, %v1503_v22  ;;  %v5763_v23 = vld [vmem:[#allocation14_spill] sm:$0xff] }
 0x17a   : > { %v860_v17 = vmul.f32 %v4679_v45, %v5761_v43  ;;  %v4777_v0 = vmul.f32 %v3694_v57, %v4619_v5  ;;  %v1670_v15 = vmul.f32 %v4291_v37, %v1336_v3  ;;  %v2140_v42 = vmul.f32 %v4370_v60, %v2101_v34 }
 0x17b   : > { %1206 = vst.msk [vmem:[#allocation2 + $0x109] sm:$0xff] %vm1129_vm2, %v1117_v29  ;;  %v4784_v31 = vadd.f32 %v4647_v53, %v4683_v55  ;;  %v2435_v59 = vadd.f32 %v2434_v58, %v2433_v62  ;;  %v2304_v63 = vadd.f32 1.0, %v3698_v40  ;;  %3701 = vrcp.f32 %v2303_v46  ;;  %v5766_v40 = vld [vmem:[#allocation6_spill] sm:$0xff] }
 0x17c   : > { %5762 = vst [vmem:[#allocation12_spill] sm:$0xff] %v4777_v0  ;;  %v863_v22 = vmul.f32 %v4679_v45, %v5763_v23  ;;  %3703 = vpow2.f32 %v3307_v41  ;;  %v1404_v9 = vadd.f32 %v1372_v33, %v1272_v44  ;;  %v1702_v5 = vadd.f32 %v1670_v15, %v1602_v54 }
 0x17d   : > { %v2141_v16 = vmul.f32 %v4370_v60, %v2102_v61  ;;  %v1405_v3 = vadd.f32 %v4738_v7, %v1273_v20  ;;  %v1703_v39 = vadd.f32 %v1671_v14, %v1603_v35  ;;  %v4791_v13 = vadd.f32 %v4379_v51, %v2140_v42  ;;  %v1238_v7 = vld [vmem:[#allocation2 + $0xd8] sm:$0xff]  ;;  %v1239_v6 = vld [vmem:[#allocation2 + $0xe0] sm:$0xff]  ;;  %v4836_v42 = vld [vmem:[%s5675_s4 + $0x8] ss:$0 sm:$0xff] }
 0x17e   : > { %v4794_v55 = vadd.f32 %v4647_v53, %v860_v17  ;;  %v2436_v62 = vsel %vm1129_vm2, %v4777_v0, 0.0  ;;  %v1472_v58 = vmul.f32 %v4244_v47, %v1436_v25  ;;  %v1770_v28 = vmul.f32 %v4294_v38, %v1436_v25  ;;  %v1339_v46 = vld [vmem:[#allocation2 + $0xe1] sm:$0xff]  ;;  %v1338_v54 = vld [vmem:[#allocation2 + $0xd9] sm:$0xff] }
 0x17f   : > { %v862_v49 = vmul.f32 %v4679_v45, %v5764_v36  ;;  %v3700_v60 = vpop.eup %3699  ;;  %v4802_v8 = vadd.f32 %v2436_v62, %v2435_v59  ;;  %v4805_v14 = vmul.f32 -1.442695, %v4663_v19  ;;  %v4808_v57 = vmul.f32 -1.442695, %v4784_v31  ;;  %v1439_v41 = vld [vmem:[#allocation2 + $0xe2] sm:$0xff] }
 0x180   : > { %v4811_v24 = vadd.f32 %v4647_v53, %v863_v22  ;;  %3705 = vrcp.f32 %v2304_v63  ;;  %v1504_v12 = vadd.f32 %v1472_v58, %v1404_v9  ;;  %v1802_v48 = vadd.f32 %v1770_v28, %v1702_v5  ;;  %v5767_v61 = vld [vmem:[#allocation21_spill] sm:$0xff] }
 0x181   : > { %v4814_v25 = vadd.f32 %v4379_v51, %v2141_v16  ;;  %v3308_v2 = vmul.f32 -1.442695, %v4791_v13  ;;  %v1505_v44 = vadd.f32 %v4742_v4, %v1405_v3  ;;  %v1803_v33 = vadd.f32 %v1771_v10, %v1703_v39  ;;  %v1438_v63 = vld [vmem:[#allocation2 + $0xda] sm:$0xff] }
 0x182   : > { %5765 = vst [vmem:[#allocation13_spill] sm:$0xff] %v4811_v24  ;;  %3707 = vpow2.f32 %v5766_v40  ;;  %v1572_v34 = vmul.f32 %v4287_v32, %v1238_v7  ;;  %v4822_v29 = vmul.f32 -1.442695, %v4794_v55  ;;  %v4825_v51 = vadd.f32 %v4647_v53, %v862_v49  ;;  %v5769_v40 = vld [vmem:[#allocation22_spill] sm:$0xff] }
 0x183   : > { %3709 = vpow2.f32 %v5767_v61  ;;  %v2305_v20 = vadd.f32 1.0, %v3700_v60  ;;  %v1573_v35 = vmul.f32 %v4287_v32, %v1239_v6  ;;  %v1871_v43 = vmul.f32 %v4306_v56, %v1238_v7 }
 0x184   : > { %5768 = vst [vmem:[#allocation9_spill] sm:$0xff] %v4825_v51  ;;  %v1872_v4 = vmul.f32 %v4306_v56, %v1239_v6  ;;  %v3309_v10 = vmul.f32 -1.442695, %v4814_v25  ;;  %v1375_v17 = vmul.f32 %v4232_v30, %v1339_v46  ;;  %v1972_v15 = vmul.f32 %v4299_v50, %v1339_v46 }
 0x185   : > { %v2072_v59 = vmul.f32 %v4836_v42, %v1439_v41  ;;  %v3702_v23 = vpop.eup %3701  ;;  %3711 = vpow2.f32 %v3308_v2  ;;  %v1903_v22 = vadd.f32 %v1871_v43, %v1802_v48  ;;  %v1971_v5 = vmul.f32 %v4299_v50, %v1338_v54  ;;  %v5771_v2 = vld [vmem:[#allocation23_spill] sm:$0xff] }
 0x186   : > { %v1904_v9 = vadd.f32 %v1872_v4, %v1803_v33  ;;  %v3704_v16 = vpop.eup %3703  ;;  %v1274_v3 = vmul.f32 %v4226_v26, %v1238_v7  ;;  %v1275_v39 = vmul.f32 %v4226_v26, %v1239_v6  ;;  %v1374_v62 = vmul.f32 %v4232_v30, %v1338_v54 }
 0x187   : > { %v1604_v58 = vadd.f32 %v1572_v34, %v1504_v12  ;;  %v1605_v28 = vadd.f32 %v1573_v35, %v1505_v44  ;;  %v2003_v36 = vadd.f32 %v1971_v5, %v1903_v22  ;;  %v2071_v60 = vmul.f32 %v4836_v42, %v1438_v63  ;;  %v1240_v5 = vld [vmem:[#allocation2 + $0xf0] sm:$0xff] }
 0x188   : > { %v2004_v49 = vadd.f32 %v1972_v15, %v1904_v9  ;;  %v4845_v61 = vmul.f32 %v3702_v23, %v5769_v40  ;;  %v1672_v48 = vmul.f32 %v4291_v37, %v1338_v54  ;;  %3713 = vpow2.f32 %v5771_v2  ;;  %v4858_v54 = vld [vmem:[%s5676_s5] ss:$0 sm:$0xff]  ;;  %v1340_v2 = vld [vmem:[#allocation2 + $0xf1] sm:$0xff] }
 0x189   : > { %v4850_v33 = vmul.f32 -1.442695, %v4811_v24  ;;  %v2306_v7 = vadd.f32 1.0, %v3704_v16  ;;  %v1673_v6 = vmul.f32 %v4291_v37, %v1339_v46  ;;  %v2103_v43 = vadd.f32 %v2071_v60, %v2003_v36  ;;  %v4870_v16 = vld [vmem:[#allocation2 + $0xf8] sm:$0xff] }
 0x18a   : > { %5770 = vst [vmem:[#allocation14_spill] sm:$0xff] %v4845_v61  ;;  %v2104_v12 = vadd.f32 %v2072_v59, %v2004_v49  ;;  %v3706_v44 = vpop.eup %3705  ;;  %3715 = vrcp.f32 %v2305_v20  ;;  %v1406_v34 = vadd.f32 %v1374_v62, %v1274_v3  ;;  %v1407_v35 = vadd.f32 %v1375_v17, %v1275_v39  ;;  %v4878_v62 = vld [vmem:[%s5677_s6] ss:$0 sm:$0xff] }
 0x18b   : > { %v1704_v4 = vadd.f32 %v1672_v48, %v1604_v58  ;;  %3717 = vpow2.f32 %v3309_v10  ;;  %v1705_v23 = vadd.f32 %v1673_v6, %v1605_v28  ;;  %v2142_v22 = vmul.f32 %v4858_v54, %v2103_v43  ;;  %v1341_v49 = vld [vmem:[#allocation2 + $0xf9] sm:$0xff] }
 0x18c   : > { %v4853_v15 = vpop.eup %3707  ;;  %v4862_v46 = vmul.f32 -1.442695, %v4825_v51  ;;  %v1475_v20 = vmul.f32 %v4244_v47, %v1439_v41  ;;  %v1474_v17 = vmul.f32 %v4244_v47, %v1438_v63  ;;  %v1772_v9 = vmul.f32 %v4294_v38, %v1438_v63 }
 0x18d   : > { %v4864_v59 = vpop.eup %3709  ;;  %v2143_v10 = vmul.f32 %v4858_v54, %v2104_v12  ;;  %v2438_v3 = vsel %vm1129_vm2, %v4845_v61, 0.0  ;;  %3719 = vrcp.f32 %v2306_v7  ;;  %v1773_v39 = vmul.f32 %v4294_v38, %v1439_v41  ;;  %v1441_v12 = vld [vmem:[#allocation2 + $0xfa] sm:$0xff] }
 0x18e   : > { %v4881_v58 = vadd.f32 %v4878_v62, %v2142_v22  ;;  %v1506_v63 = vadd.f32 %v1474_v17, %v1406_v34  ;;  %v1804_v28 = vadd.f32 %v1772_v9, %v1704_v4  ;;  %v1507_v60 = vadd.f32 %v1475_v20, %v1407_v35  ;;  %v5772_v22 = vld [vmem:[#allocation16_spill] sm:$0xff] }
 0x18f   : > { %v4884_v36 = vadd.f32 %v4878_v62, %v2143_v10  ;;  %v3712_v40 = vpop.eup %3711  ;;  %v1574_v41 = vmul.f32 %v4287_v32, %v1240_v5  ;;  %v1575_v7 = vmul.f32 %v4287_v32, %v4870_v16  ;;  %v1805_v6 = vadd.f32 %v1773_v39, %v1705_v23  ;;  %v1440_v23 = vld [vmem:[#allocation2 + $0xf2] sm:$0xff] }
 0x190   : > { %v3310_v48 = vmul.f32 -1.442695, %v4881_v58  ;;  %v1873_v34 = vmul.f32 %v4306_v56, %v1240_v5  ;;  %v1874_v4 = vmul.f32 %v4306_v56, %v4870_v16  ;;  %v865_v35 = vmul.f32 %v4679_v45, %v5772_v22 }
 0x191   : > { %v3311_v43 = vmul.f32 -1.442695, %v4884_v36  ;;  %v4897_v20 = vmul.f32 %v3706_v44, %v4707_v27  ;;  %v2439_v17 = vadd.f32 %v2438_v3, %v4802_v8  ;;  %v1974_v9 = vmul.f32 %v4299_v50, %v1341_v49 }
 0x192   : > { %3721 = vpow2.f32 %v3310_v48  ;;  %v4901_v10 = vpop.eup %3713  ;;  %v1905_v39 = vadd.f32 %v1873_v34, %v1804_v28  ;;  %v1906_v61 = vadd.f32 %v1874_v4, %v1805_v6  ;;  %v1973_v0 = vmul.f32 %v4299_v50, %v1340_v2 }
 0x193   : > { %5773 = vst [vmem:[#allocation15_spill] sm:$0xff] %v4897_v20  ;;  %3723 = vpow2.f32 %v3311_v43  ;;  %v2074_v1 = vmul.f32 %v4836_v42, %v1441_v12  ;;  %v1606_v18 = vadd.f32 %v1574_v41, %v1506_v63  ;;  %v1607_v22 = vadd.f32 %v1575_v7, %v1507_v60 }
 0x194   : > { %3725 = vpow2.f32 %v4805_v14  ;;  %v3716_v27 = vpop.eup %3715  ;;  %v2307_v44 = vadd.f32 1.0, %v3712_v40  ;;  %v2005_v8 = vadd.f32 %v1973_v0, %v1905_v39  ;;  %v2006_v3 = vadd.f32 %v1974_v9, %v1906_v61 }
 0x195   : > { %v2073_v48 = vmul.f32 %v4836_v42, %v1440_v23  ;;  %v3718_v11 = vpop.eup %3717  ;;  %v2440_v43 = vsel %vm1129_vm2, %v4897_v20, 0.0  ;;  %v1675_v28 = vmul.f32 %v4291_v37, %v1341_v49  ;;  %v1674_v6 = vmul.f32 %v4291_v37, %v1340_v2 }
 0x196   : > { %3727 = vpow2.f32 %v4808_v57  ;;  %v2441_v63 = vadd.f32 %v2440_v43, %v2439_v17  ;;  %v2106_v41 = vadd.f32 %v2074_v1, %v2006_v3  ;;  %v4913_v14 = vadd.f32 %v4647_v53, %v865_v35 }
 0x197   : > { %v2105_v60 = vadd.f32 %v2073_v48, %v2005_v8  ;;  %v3720_v0 = vpop.eup %3719  ;;  %v4916_v61 = vmul.f32 %v3716_v27, %v4725_v21  ;;  %v1377_v40 = vmul.f32 %v4232_v30, %v1341_v49  ;;  %v1706_v7 = vadd.f32 %v1674_v6, %v1606_v18  ;;  %v4938_v27 = vld [vmem:[#allocation2 + $0x110] sm:$0xff] }
 0x198   : > { %v1707_v34 = vadd.f32 %v1675_v28, %v1607_v22  ;;  %v2308_v4 = vadd.f32 1.0, %v3718_v11  ;;  %3729 = vrcp.f32 %v2307_v44  ;;  %v2145_v57 = vmul.f32 %v4858_v54, %v2106_v41  ;;  %v4936_v22 = vld [vmem:[#allocation2 + $0x108] sm:$0xff] }
 0x199   : > { %5774 = vst [vmem:[#allocation6_spill] sm:$0xff] %v4916_v61  ;;  %v2144_v9 = vmul.f32 %v4858_v54, %v2105_v60  ;;  %v4922_v17 = vmul.f32 %v4244_v47, %v1441_v12  ;;  %v1775_v1 = vmul.f32 %v4294_v38, %v1441_v12  ;;  %v1276_v35 = vmul.f32 %v4226_v26, %v1240_v5 }
 0x19a   : > { %v1774_v21 = vmul.f32 %v4294_v38, %v1440_v23  ;;  %v1277_v49 = vmul.f32 %v4226_v26, %v4870_v16  ;;  %v1376_v18 = vmul.f32 %v4232_v30, %v1340_v2  ;;  %v4934_v39 = vadd.f32 %v4878_v62, %v2145_v57  ;;  %v4944_v16 = vld [vmem:[#allocation2 + $0x111] sm:$0xff]  ;;  %v4946_v2 = vld [vmem:[#allocation2 + $0x109] sm:$0xff] }
 0x19b   : > { %v4931_v11 = vadd.f32 %v4878_v62, %v2144_v9  ;;  %v4941_v5 = vmul.f32 %v3720_v0, %v4752_v52  ;;  %v1476_v44 = vmul.f32 %v4244_v47, %v1440_v23  ;;  %v1807_v3 = vadd.f32 %v1775_v1, %v1707_v34  ;;  %v4952_v0 = vld [vmem:[#allocation2 + $0x10a] sm:$0xff] }
 0x19c   : > { %5775 = vst [vmem:[#allocation21_spill] sm:$0xff] %v4934_v39  ;;  %v3722_v12 = vpop.eup %3721  ;;  %v1806_v8 = vadd.f32 %v1774_v21, %v1706_v7  ;;  %v2442_v43 = vsel %vm1129_vm2, %v4916_v61, 0.0  ;;  %3731 = vrcp.f32 %v2308_v4  ;;  %v3313_v52 = vmul.f32 -1.442695, %v4934_v39  ;;  %v4964_v61 = vld [vmem:[#allocation2 + $0x112] sm:$0xff] }
 0x19d   : > { %5776 = vst [vmem:[#allocation22_spill] sm:$0xff] %v4941_v5  ;;  %v3724_v48 = vpop.eup %3723  ;;  %v2309_v28 = vadd.f32 1.0, %v3722_v12  ;;  %v3312_v6 = vmul.f32 -1.442695, %v4931_v11  ;;  %v1875_v23 = vmul.f32 %v4306_v56, %v4936_v22  ;;  %v1876_v7 = vmul.f32 %v4306_v56, %v4938_v27 }
 0x19e   : > { %v3726_v60 = vpop.eup %3725  ;;  %v2310_v41 = vadd.f32 1.0, %v3724_v48  ;;  %v1976_v34 = vmul.f32 %v4299_v50, %v4944_v16  ;;  %v1975_v4 = vmul.f32 %v4299_v50, %v4946_v2  ;;  %v1024_v9 = vadd.f32 1.0, %v4853_v15  ;;  %v2494_v15 = vld [vmem:[%s5678_s7] sm:$0xff] }
 0x19f   : > { %3733 = vrcp.f32 %v2309_v28  ;;  %v1907_v1 = vadd.f32 %v1875_v23, %v1806_v8  ;;  %v1908_v21 = vadd.f32 %v1876_v7, %v1807_v3  ;;  %v1023_v12 = vadd.f32 1.0, %v4864_v59  ;;  %v2495_v59 = vld [vmem:[%s5678_s7 + $0x8] sm:$0xff] }
 0x1a0   : > { %v3728_v57 = vpop.eup %3727  ;;  %3735 = vrcp.f32 %v2310_v41  ;;  %v1408_v48 = vadd.f32 %v1376_v18, %v1276_v35  ;;  %v2075_v28 = vmul.f32 %v4836_v42, %v4952_v0  ;;  %v1026_v20 = vadd.f32 1.0, %v4901_v10 }
 0x1a1   : > { %3737 = vpow2.f32 %v3312_v6  ;;  %v2007_v39 = vadd.f32 %v1975_v4, %v1907_v1  ;;  %v2008_v51 = vadd.f32 %v1976_v34, %v1908_v21  ;;  %v1025_v24 = vadd.f32 1.0, %v3726_v60 }
 0x1a2   : > { %3739 = vpow2.f32 %v3313_v52  ;;  %v3730_v35 = vpop.eup %3729  ;;  %v2443_v18 = vadd.f32 %v2442_v43, %v2441_v63  ;;  %v1409_v8 = vadd.f32 %v1377_v40, %v1277_v49  ;;  %v1028_v3 = vadd.f32 1.0, %v3728_v57 }
 0x1a3   : > { %3741 = vrcp.f32 %v1024_v9  ;;  %v2076_v10 = vmul.f32 %v4836_v42, %v4964_v61  ;;  %v2107_v6 = vadd.f32 %v2075_v28, %v2007_v39  ;;  %v2444_v60 = vsel %vm1129_vm2, %v4941_v5, 0.0 }
 0x1a4   : > { %3743 = vrcp.f32 %v1023_v12  ;;  %v3888_v41 = vmov 0.0|0.0   ;;  %v3558_v52 = vpack.c.bf16 %v2495_v59, %v2494_v15  ;;  %v4980_v23 = vmul.f32 %v3730_v35, %v4791_v13 }
 0x1a5   : > { %3745 = vrcp.f32 %v1026_v20  ;;  %3557 = vmatprep.subr.bf16.mxu0 %v3888_v41  ;;  %v2108_v7 = vadd.f32 %v2076_v10, %v2008_v51  ;;  %v2146_v63 = vmul.f32 %v4858_v54, %v2107_v6  ;;  %v5778_v40 = vmov 0.0   ;;  %v5782_v6 = vld [vmem:[#allocation18_spill] sm:$0xff] }
 0x1a6   : > { %5777 = vst [vmem:[#allocation23_spill] sm:$0xff] %v4980_v23  ;;  %3747 = vrcp.f32 %v1025_v24  ;;  %3497 = vmatprep.mubr.msk.f32.mxu0 %vm3889_vm4, %v5778_v40  ;;  %3502 = vmatprep.mubr.msk.f32.mxu1 %vm3889_vm4, %v5778_v40  ;;  %v3732_v49 = vpop.eup %3731  ;;  %v2445_v39 = vadd.f32 %v2444_v60, %v2443_v18  ;;  %v1508_v43 = vadd.f32 %v1476_v44, %v1408_v48  ;;  %v3292_v20 = vmul.f32 -1.442695, %v4913_v14  ;;  %v5779_v24 = vld [vmem:[#allocation17_spill] sm:$0xff] }
 0x1a7   : > { %3749 = vrcp.f32 %v1028_v3  ;;  %3559 = vmatpush3.bf16.msra.mxu0 %v3558_v52  ;;  %v1379_v13 = vmul.f32 %v4232_v30, %v4944_v16  ;;  %v4989_v51 = vadd.f32 %v4878_v62, %v2146_v63  ;;  %v864_v34 = vmul.f32 %v4679_v45, %v5779_v24 }
 0x1a8   : > { %3751 = vpow2.f32 %v4822_v29  ;;  %v1509_v9 = vadd.f32 %v4922_v17, %v1409_v8  ;;  %v1576_v44 = vmul.f32 %v4287_v32, %v4936_v22  ;;  %v1577_v57 = vmul.f32 %v4287_v32, %v4938_v27 }
 0x1a9   : > { %v3734_v4 = vpop.eup %3733  ;;  %3753 = vpow2.f32 %v4850_v33  ;;  %v2446_v21 = vsel %vm1129_vm2, %v4980_v23, 0.0  ;;  %v2147_v29 = vmul.f32 %v4858_v54, %v2108_v7  ;;  %v3314_v12 = vmul.f32 -1.442695, %v4989_v51  ;;  %v5784_v7 = vld [vmem:[#allocation19_spill] sm:$0xff] }
 0x1aa   : > { %v3736_v1 = vpop.eup %3735  ;;  %3755 = vpow2.f32 %v4862_v46  ;;  %v1278_v17 = vmul.f32 %v4226_v26, %v4936_v22  ;;  %v1279_v48 = vmul.f32 %v4226_v26, %v4938_v27  ;;  %v1378_v33 = vmul.f32 %v4232_v30, %v4946_v2 }
 0x1ab   : > { %v3738_v45 = vpop.eup %3737  ;;  %3757 = vpow2.f32 %v3292_v20  ;;  %v5012_v15 = vmul.f32 %v3732_v49, %v4814_v25  ;;  %v5015_v35 = vadd.f32 %v4647_v53, %v864_v34  ;;  %v2447_v18 = vadd.f32 %v2446_v21, %v2445_v39  ;;  %v5785_v39 = vld [vmem:[#allocation20_spill] sm:$0xff] }
 0x1ac   : > { %v3740_v28 = vpop.eup %3739  ;;  %v2311_v59 = vadd.f32 1.0, %v3738_v45  ;;  %3759 = vpow2.f32 %v3314_v12  ;;  %v1677_v22 = vmul.f32 %v4291_v37, %v4944_v16  ;;  %v1478_v27 = vmul.f32 %v4244_v47, %v4952_v0 }
 0x1ad   : > { %5780 = vst [vmem:[#allocation16_spill] sm:$0xff] %v5012_v15  ;;  %v3742_v46 = vpop.eup %3741  ;;  %v1608_v8 = vadd.f32 %v1576_v44, %v1508_v43  ;;  %v5022_v10 = vmul.f32 %v3734_v4, %v4881_v58  ;;  %v1609_v25 = vadd.f32 %v1577_v57, %v1509_v9  ;;  %v5026_v41 = vadd.f32 %v4878_v62, %v2147_v29 }
 0x1ae   : > { %v3744_v3 = vpop.eup %3743  ;;  %v1120_v60 = vmul.f32 %v3742_v46, %v5782_v6  ;;  %3761 = vrcp.f32 %v2311_v59  ;;  %v1410_v52 = vadd.f32 %v1378_v33, %v1278_v17  ;;  %v1676_v16 = vmul.f32 %v4291_v37, %v4946_v2  ;;  %v1851_v33 = vld [vmem:[#allocation2 + $0x198] sm:$0xff] }
 0x1af   : > { %5781 = vst [vmem:[#allocation17_spill] sm:$0xff] %v5022_v10  ;;  %5783 = vst [vmem:[#allocation18_spill] sm:$0xff] %v5026_v41  ;;  %v3746_v53 = vpop.eup %3745  ;;  %v1119_v63 = vmul.f32 %v3744_v3, %v5784_v7  ;;  %v2448_v49 = vsel %vm1129_vm2, %v5012_v15, 0.0  ;;  %v1411_v58 = vadd.f32 %v1379_v13, %v1279_v48  ;;  %v3291_v20 = vmul.f32 -1.442695, %v5015_v35  ;;  %v2051_v6 = vld [vmem:[#allocation2 + $0x19a] sm:$0xff] }
 0x1b0   : > { %v3748_v40 = vpop.eup %3747  ;;  %1209 = vst.msk [vmem:[#allocation2 + $0x129] sm:$0xff] %vm1129_vm2, %v1120_v60  ;;  %v1122_v43 = vmul.f32 %v3746_v53, %v5785_v39  ;;  %v2449_v34 = vadd.f32 %v2448_v49, %v2447_v18  ;;  %v2312_v4 = vadd.f32 1.0, %v3740_v28  ;;  %v1708_v9 = vadd.f32 %v1676_v16, %v1608_v8  ;;  %v1852_v18 = vld [vmem:[#allocation2 + $0x1a0] sm:$0xff] }
 0x1b1   : > { %v3750_v24 = vpop.eup %3749  ;;  %1208 = vst.msk [vmem:[#allocation2 + $0x121] sm:$0xff] %vm1129_vm2, %v1119_v63  ;;  %v1121_v2 = vmul.f32 %v3748_v40, %v4663_v19  ;;  %v2450_v57 = vsel %vm1129_vm2, %v5022_v10, 0.0  ;;  %v1709_v21 = vadd.f32 %v1677_v22, %v1609_v25  ;;  %v3315_v29 = vmul.f32 -1.442695, %v5026_v41  ;;  %v1951_v22 = vld [vmem:[#allocation2 + $0x199] sm:$0xff]  ;;  %v1952_v8 = vld [vmem:[#allocation2 + $0x1a1] sm:$0xff] }
 0x1b2   : > { %v3752_v44 = vpop.eup %3751  ;;  %1211 = vst.msk [vmem:[#allocation2 + $0x141] sm:$0xff] %vm1129_vm2, %v1122_v43  ;;  %v1124_v13 = vmul.f32 %v3750_v24, %v4784_v31  ;;  %v1479_v45 = vmul.f32 %v4244_v47, %v4964_v61  ;;  %v1777_v17 = vmul.f32 %v4294_v38, %v4964_v61  ;;  %v1776_v19 = vmul.f32 %v4294_v38, %v4952_v0  ;;  %v2052_v60 = vld [vmem:[#allocation2 + $0x1a2] sm:$0xff] }
 0x1b3   : > { %v3754_v12 = vpop.eup %3753  ;;  %1210 = vst.msk [vmem:[#allocation2 + $0x139] sm:$0xff] %vm1129_vm2, %v1121_v2  ;;  %v1027_v48 = vadd.f32 1.0, %v3752_v44  ;;  %v5051_v59 = vmul.f32 %v3736_v1, %v4884_v36  ;;  %v1510_v31 = vadd.f32 %v1478_v27, %v1410_v52  ;;  %3763 = vpow2.f32 %v3291_v20 }
 0x1b4   : > { %v3756_v28 = vpop.eup %3755  ;;  %1213 = vst.msk [vmem:[#allocation2 + $0x159] sm:$0xff] %vm1129_vm2, %v1124_v13  ;;  %v1030_v46 = vadd.f32 1.0, %v3754_v12  ;;  %v2451_v3 = vadd.f32 %v2450_v57, %v2449_v34  ;;  %3765 = vrcp.f32 %v2312_v4  ;;  %v1808_v0 = vadd.f32 %v1776_v19, %v1708_v9 }
 0x1b5   : > { %5786 = vst [vmem:[#allocation19_spill] sm:$0xff] %v5051_v59  ;;  %v3758_v61 = vpop.eup %3757  ;;  %v1029_v25 = vadd.f32 1.0, %v3756_v28  ;;  %v1511_v16 = vadd.f32 %v1479_v45, %v1411_v58  ;;  %v1809_v7 = vadd.f32 %v1777_v17, %v1709_v21  ;;  %v5055_v36 = vmul.f32 %v4306_v56, %v1851_v33 }
 0x1b6   : > { %v3760_v53 = vpop.eup %3759  ;;  %3767 = vpow2.f32 %v3315_v29  ;;  %v5058_v52 = vmul.f32 %v4306_v56, %v1852_v18  ;;  %v5061_v63 = vmul.f32 %v4299_v50, %v1951_v22  ;;  %v5064_v40 = vmul.f32 %v4299_v50, %v1952_v8 }
 0x1b7   : > { %v1345_v1 = vld [vmem:[#allocation2 + $0x129] sm:$0xff]  ;;  %3769 = vrcp.f32 %v1027_v48  ;;  %v5067_v43 = vmul.f32 %v4836_v42, %v2051_v6  ;;  %v5070_v20 = vmul.f32 %v4836_v42, %v2052_v60  ;;  %v2452_v24 = vsel %vm1129_vm2, %v5051_v59, 0.0 }
 0x1b8   : > { %v1445_v27 = vld [vmem:[#allocation2 + $0x12a] sm:$0xff]  ;;  %5787 = vst [vmem:[#allocation20_spill] sm:$0xff] %v5064_v40  ;;  %v1244_v49 = vld [vmem:[#allocation2 + $0x120] sm:$0xff]  ;;  %3771 = vrcp.f32 %v1030_v46  ;;  %v3762_v34 = vpop.eup %3761  ;;  %v2313_v4 = vadd.f32 1.0, %v3760_v53  ;;  %v5074_v9 = vadd.f32 1.0, %v3758_v61  ;;  %v5076_v2 = vadd.f32 %v2452_v24, %v2451_v3 }
 0x1b9   : > { %v1245_v39 = vld [vmem:[#allocation2 + $0x128] sm:$0xff]  ;;  %5788 = vst [vmem:[#allocation25_spill] sm:$0xff] %v5067_v43  ;;  %5789 = vst [vmem:[#allocation26_spill] sm:$0xff] %v5070_v20  ;;  %3773 = vrcp.f32 %v1029_v25  ;;  %v1381_v44 = vmul.f32 %v4232_v30, %v1345_v1  ;;  %v1481_v57 = vmul.f32 %v4244_v47, %v1445_v27  ;;  %v1280_v21 = vmul.f32 %v4226_v26, %v1244_v49 }
 0x1ba   : > { %v1344_v58 = vld [vmem:[#allocation2 + $0x121] sm:$0xff]  ;;  %v1679_v29 = vmul.f32 %v4291_v37, %v1345_v1  ;;  %v1281_v12 = vmul.f32 %v4226_v26, %v1245_v39  ;;  %v1578_v45 = vmul.f32 %v4287_v32, %v1244_v49  ;;  %v1579_v17 = vmul.f32 %v4287_v32, %v1245_v39  ;;  %v1246_v53 = vld [vmem:[#allocation2 + $0x138] sm:$0xff] }
 0x1bb   : > { %v1380_v13 = vmul.f32 %v4232_v30, %v1344_v58  ;;  %v5087_v19 = vmul.f32 %v3762_v34, %v4931_v11  ;;  %v1779_v48 = vmul.f32 %v4294_v38, %v1445_v27  ;;  %v1444_v33 = vld [vmem:[#allocation2 + $0x122] sm:$0xff]  ;;  %v1877_v28 = vmul.f32 %v4306_v56, %v1244_v49  ;;  %v1349_v41 = vld [vmem:[#allocation2 + $0x159] sm:$0xff] }
 0x1bc   : > { %v1878_v46 = vmul.f32 %v4306_v56, %v1245_v39  ;;  %v1610_v22 = vadd.f32 %v1578_v45, %v1510_v31  ;;  %v1611_v8 = vadd.f32 %v1579_v17, %v1511_v16  ;;  %v1678_v61 = vmul.f32 %v4291_v37, %v1344_v58  ;;  %v1347_v60 = vld [vmem:[#allocation2 + $0x141] sm:$0xff] }
 0x1bd   : > { %5790 = vst [vmem:[#allocation27_spill] sm:$0xff] %v5087_v19  ;;  %v1412_v18 = vadd.f32 %v1380_v13, %v1280_v21  ;;  %v5093_v3 = vpop.eup %3763  ;;  %3775 = vrcp.f32 %v2313_v4  ;;  %v1909_v25 = vadd.f32 %v1877_v28, %v1808_v0  ;;  %v1977_v11 = vmul.f32 %v4299_v50, %v1344_v58  ;;  %v1447_v16 = vld [vmem:[#allocation2 + $0x142] sm:$0xff]  ;;  %v1346_v21 = vld [vmem:[#allocation2 + $0x139] sm:$0xff] }
 0x1be   : > { %v1910_v6 = vadd.f32 %v1878_v46, %v1809_v7  ;;  %v5096_v24 = vpop.eup %3765  ;;  %v1978_v49 = vmul.f32 %v4299_v50, %v1345_v1  ;;  %v1413_v34 = vadd.f32 %v1381_v44, %v1281_v12  ;;  %v1480_v39 = vmul.f32 %v4244_v47, %v1444_v33  ;;  %v1247_v45 = vld [vmem:[#allocation2 + $0x140] sm:$0xff] }
 0x1bf   : > { %v1710_v31 = vadd.f32 %v1678_v61, %v1610_v22  ;;  %v2078_v4 = vmul.f32 %v4836_v42, %v1445_v27  ;;  %v1778_v0 = vmul.f32 %v4294_v38, %v1444_v33  ;;  %v2009_v7 = vadd.f32 %v1977_v11, %v1909_v25 }
 0x1c0   : > { %v5100_v13 = vpop.eup %3767  ;;  %v2077_v58 = vmul.f32 %v4836_v42, %v1444_v33  ;;  %v1512_v28 = vadd.f32 %v1480_v39, %v1412_v18  ;;  %v1711_v46 = vadd.f32 %v1679_v29, %v1611_v8  ;;  %v1383_v1 = vmul.f32 %v4232_v30, %v1347_v60  ;;  %v1446_v39 = vld [vmem:[#allocation2 + $0x13a] sm:$0xff] }
 0x1c1   : > { %v3770_v17 = vpop.eup %3769  ;;  %v1282_v44 = vmul.f32 %v4226_v26, %v1246_v53  ;;  %v2010_v22 = vadd.f32 %v1978_v49, %v1910_v6  ;;  %v5108_v61 = vmul.f32 %v4244_v47, %v1447_v16  ;;  %v1681_v27 = vmul.f32 %v4291_v37, %v1347_v60 }
 0x1c2   : > { %v3772_v12 = vpop.eup %3771  ;;  %v1382_v59 = vmul.f32 %v4232_v30, %v1346_v21  ;;  %v1810_v11 = vadd.f32 %v1778_v0, %v1710_v31  ;;  %v1513_v33 = vadd.f32 %v1481_v57, %v1413_v34  ;;  %v1580_v10 = vmul.f32 %v4287_v32, %v1246_v53 }
 0x1c3   : > { %v3774_v25 = vpop.eup %3773  ;;  %v1581_v29 = vmul.f32 %v4287_v32, %v1247_v45  ;;  %v2109_v18 = vadd.f32 %v2077_v58, %v2009_v7  ;;  %v5115_v8 = vmul.f32 %v4294_v38, %v1447_v16  ;;  %v1980_v6 = vmul.f32 %v4299_v50, %v1347_v60 }
 0x1c4   : > { %v1283_v49 = vmul.f32 %v4226_v26, %v1247_v45  ;;  %v1414_v15 = vadd.f32 %v1382_v59, %v1282_v44  ;;  %v1612_v23 = vadd.f32 %v1580_v10, %v1512_v28  ;;  %v1811_v5 = vadd.f32 %v1779_v48, %v1711_v46 }
 0x1c5   : > { %v1879_v20 = vmul.f32 %v4306_v56, %v1246_v53  ;;  %v2110_v31 = vadd.f32 %v2078_v4, %v2010_v22  ;;  %v2080_v57 = vmul.f32 %v4836_v42, %v1447_v16  ;;  %v1613_v34 = vadd.f32 %v1581_v29, %v1513_v33  ;;  %v1449_v4 = vld [vmem:[#allocation2 + $0x15a] sm:$0xff] }
 0x1c6   : > { %v1880_v0 = vmul.f32 %v4306_v56, %v1247_v45  ;;  %v1482_v7 = vmul.f32 %v4244_v47, %v1446_v39  ;;  %v1680_v58 = vmul.f32 %v4291_v37, %v1346_v21  ;;  %v1979_v60 = vmul.f32 %v4299_v50, %v1346_v21 }
 0x1c7   : > { %v1911_v43 = vadd.f32 %v1879_v20, %v1810_v11  ;;  %v3776_v40 = vpop.eup %3775  ;;  %v2148_v10 = vmul.f32 %v4858_v54, %v2109_v18  ;;  %v1415_v59 = vadd.f32 %v1383_v1, %v1283_v49  ;;  %v1780_v48 = vmul.f32 %v4294_v38, %v1446_v39  ;;  %v5791_v1 = vld [vmem:[#allocation13_spill] sm:$0xff] }
 0x1c8   : > { %v1912_v53 = vadd.f32 %v1880_v0, %v1811_v5  ;;  %v1514_v16 = vadd.f32 %v1482_v7, %v1414_v15  ;;  %v1712_v28 = vadd.f32 %v1680_v58, %v1612_v23  ;;  %v2079_v45 = vmul.f32 %v4836_v42, %v1446_v39  ;;  %v5792_v18 = vld [vmem:[#allocation9_spill] sm:$0xff] }
 0x1c9   : > { %v2011_v46 = vadd.f32 %v1979_v60, %v1911_v43  ;;  %v1713_v44 = vadd.f32 %v1681_v27, %v1613_v34  ;;  %v1385_v20 = vmul.f32 %v4232_v30, %v1349_v41  ;;  %v1123_v21 = vmul.f32 %v3770_v17, %v4794_v55  ;;  %v5793_v39 = vld [vmem:[#allocation21_spill] sm:$0xff] }
 0x1ca   : > { %v2012_v22 = vadd.f32 %v1980_v6, %v1912_v53  ;;  %v5131_v33 = vmul.f32 %v4244_v47, %v1449_v4  ;;  %v1126_v29 = vmul.f32 %v3772_v12, %v5791_v1  ;;  %v1125_v5 = vmul.f32 %v3774_v25, %v5792_v18 }
 0x1cb   : > { %v2111_v11 = vadd.f32 %v2079_v45, %v2011_v46  ;;  %1212 = vst.msk [vmem:[#allocation2 + $0x151] sm:$0xff] %vm1129_vm2, %v1123_v21  ;;  %v1031_v23 = vadd.f32 1.0, %v5093_v3  ;;  %v2149_v43 = vmul.f32 %v4858_v54, %v2110_v31  ;;  %v5139_v27 = vadd.f32 %v4878_v62, %v2148_v10 }
 0x1cc   : > { %v2112_v15 = vadd.f32 %v2080_v57, %v2012_v22  ;;  %v5142_v55 = vmul.f32 %v4291_v37, %v1349_v41  ;;  %v5145_v17 = vmul.f32 %v4294_v38, %v1449_v4  ;;  %1215 = vst.msk [vmem:[#allocation2 + $0x171] sm:$0xff] %vm1129_vm2, %v1126_v29  ;;  %1214 = vst.msk [vmem:[#allocation2 + $0x169] sm:$0xff] %vm1129_vm2, %v1125_v5  ;;  %v2314_v3 = vadd.f32 1.0, %v5100_v13 }
 0x1cd   : > { %v2150_v12 = vmul.f32 %v4858_v54, %v2111_v11  ;;  %v5153_v6 = vadd.f32 %v4878_v62, %v2149_v43  ;;  %v3316_v49 = vmul.f32 -1.442695, %v5139_v27  ;;  %v5158_v31 = vmul.f32 %v5096_v24, %v5793_v39 }
 0x1ce   : > { %v2151_v25 = vmul.f32 %v4858_v54, %v2112_v15  ;;  %v1812_v57 = vadd.f32 %v1780_v48, %v1712_v28  ;;  %3777 = vrcp.f32 %v5074_v9  ;;  %v5165_v0 = vmul.f32 %v3776_v40, %v4989_v51 }
 0x1cf   : > { %5794 = vst [vmem:[#allocation13_spill] sm:$0xff] %v5158_v31  ;;  %v5162_v34 = vadd.f32 %v4878_v62, %v2150_v12  ;;  %3779 = vrcp.f32 %v1031_v23  ;;  %v3317_v7 = vmul.f32 -1.442695, %v5153_v6  ;;  %v2454_v58 = vsel %vm1129_vm2, %v5087_v19, 0.0 }
 0x1d0   : > { %5795 = vst [vmem:[#allocation9_spill] sm:$0xff] %v5165_v0  ;;  %v5168_v13 = vadd.f32 %v4878_v62, %v2151_v25  ;;  %v5174_v24 = vmul.f32 %v4299_v50, %v1349_v41  ;;  %v5177_v9 = vmul.f32 %v4836_v42, %v1449_v4  ;;  %3781 = vrcp.f32 %v2314_v3 }
 0x1d1   : > { %v3318_v60 = vmul.f32 -1.442695, %v5162_v34  ;;  %v1515_v51 = vadd.f32 %v5108_v61, %v1415_v59  ;;  %v1813_v40 = vadd.f32 %v5115_v8, %v1713_v44  ;;  %3783 = vpow2.f32 %v3316_v49 }
 0x1d2   : > { %v5184_v10 = vsel %vm1129_vm2, %v5158_v31, 0.0  ;;  %v1248_v48 = vld [vmem:[#allocation2 + $0x150] sm:$0xff]  ;;  %v1249_v53 = vld [vmem:[#allocation2 + $0x158] sm:$0xff]  ;;  %3785 = vpow2.f32 %v3317_v7  ;;  %v5187_v41 = vmul.f32 -1.442695, %v5168_v13  ;;  %v5190_v4 = vadd.f32 %v2454_v58, %v5076_v2 }
 0x1d3   : > { %v1348_v28 = vld [vmem:[#allocation2 + $0x151] sm:$0xff]  ;;  %v5194_v61 = vsel %vm1129_vm2, %v5165_v0, 0.0  ;;  %v1284_v8 = vmul.f32 %v4226_v26, %v1248_v48  ;;  %v1285_v59 = vmul.f32 %v4226_v26, %v1249_v53  ;;  %v1582_v44 = vmul.f32 %v4287_v32, %v1248_v48  ;;  %v1250_v15 = vld [vmem:[#allocation2 + $0x168] sm:$0xff] }
 0x1d4   : > { %v1384_v46 = vmul.f32 %v4232_v30, %v1348_v28  ;;  %v1448_v45 = vld [vmem:[#allocation2 + $0x152] sm:$0xff]  ;;  %v1583_v21 = vmul.f32 %v4287_v32, %v1249_v53  ;;  %v1682_v2 = vmul.f32 %v4291_v37, %v1348_v28  ;;  %3787 = vpow2.f32 %v3318_v60  ;;  %v1350_v39 = vld [vmem:[#allocation2 + $0x169] sm:$0xff] }
 0x1d5   : > { %v1484_v22 = vmul.f32 %v4244_v47, %v1448_v45  ;;  %v1614_v1 = vadd.f32 %v1582_v44, %v1514_v16  ;;  %v1782_v29 = vmul.f32 %v4294_v38, %v1448_v45  ;;  %v1881_v18 = vmul.f32 %v4306_v56, %v1248_v48  ;;  %v1351_v5 = vld [vmem:[#allocation2 + $0x171] sm:$0xff] }
 0x1d6   : > { %v1416_v11 = vadd.f32 %v1384_v46, %v1284_v8  ;;  %v5205_v23 = vld [vmem:[#allocation2 + $0x172] sm:$0xff]  ;;  %v1417_v43 = vadd.f32 %v1385_v20, %v1285_v59  ;;  %v1615_v12 = vadd.f32 %v1583_v21, %v1515_v51  ;;  %v1882_v3 = vmul.f32 %v4306_v56, %v1249_v53  ;;  %v1450_v8 = vld [vmem:[#allocation2 + $0x16a] sm:$0xff] }
 0x1d7   : > { %v1981_v25 = vmul.f32 %v4299_v50, %v1348_v28  ;;  %v1251_v49 = vld [vmem:[#allocation2 + $0x170] sm:$0xff]  ;;  %v1714_v58 = vadd.f32 %v1682_v2, %v1614_v1  ;;  %v1913_v60 = vadd.f32 %v1881_v18, %v1812_v57  ;;  %v2081_v16 = vmul.f32 %v4836_v42, %v1448_v45 }
 0x1d8   : > { %v1516_v7 = vadd.f32 %v1484_v22, %v1416_v11  ;;  %v3778_v46 = vpop.eup %3777  ;;  %v1914_v48 = vadd.f32 %v1882_v3, %v1813_v40  ;;  %v1387_v44 = vmul.f32 %v4232_v30, %v1351_v5  ;;  %v1487_v20 = vmul.f32 %v4244_v47, %v5205_v23 }
 0x1d9   : > { %v1286_v51 = vmul.f32 %v4226_v26, %v1250_v15  ;;  %v3780_v53 = vpop.eup %3779  ;;  %v1814_v59 = vadd.f32 %v1782_v29, %v1714_v58  ;;  %v1685_v28 = vmul.f32 %v4291_v37, %v1351_v5  ;;  %v1287_v22 = vmul.f32 %v4226_v26, %v1251_v49 }
 0x1da   : > { %v1386_v57 = vmul.f32 %v4232_v30, %v1350_v39  ;;  %v5217_v21 = vpop.eup %3781  ;;  %v2013_v45 = vadd.f32 %v1981_v25, %v1913_v60  ;;  %v1486_v40 = vmul.f32 %v4244_v47, %v1450_v8  ;;  %v1584_v2 = vmul.f32 %v4287_v32, %v1250_v15 }
 0x1db   : > { %v1585_v11 = vmul.f32 %v4287_v32, %v1251_v49  ;;  %v3784_v1 = vpop.eup %3783  ;;  %v1684_v3 = vmul.f32 %v4291_v37, %v1350_v39  ;;  %v1784_v29 = vmul.f32 %v4294_v38, %v1450_v8  ;;  %v1883_v58 = vmul.f32 %v4306_v56, %v1250_v15 }
 0x1dc   : > { %v1418_v18 = vadd.f32 %v1386_v57, %v1286_v51  ;;  %v3786_v26 = vpop.eup %3785  ;;  %v1616_v0 = vadd.f32 %v1584_v2, %v1516_v7  ;;  %v1884_v30 = vmul.f32 %v4306_v56, %v1251_v49  ;;  %v1128_v25 = vmul.f32 %v3778_v46, %v4913_v14 }
 0x1dd   : > { %v1127_v47 = vmul.f32 %v3780_v53, %v5015_v35  ;;  %v1983_v60 = vmul.f32 %v4299_v50, %v1350_v39  ;;  %v1419_v31 = vadd.f32 %v1387_v44, %v1287_v22  ;;  %v1517_v19 = vadd.f32 %v5131_v33, %v1417_v43 }
 0x1de   : > { %v1715_v51 = vadd.f32 %v5142_v55, %v1615_v12  ;;  %v3788_v57 = vpop.eup %3787  ;;  %1217 = vst.msk [vmem:[#allocation2 + $0x189] sm:$0xff] %vm1129_vm2, %v1128_v25  ;;  %v1518_v15 = vadd.f32 %v1486_v40, %v1418_v18  ;;  %v1716_v7 = vadd.f32 %v1684_v3, %v1616_v0  ;;  %v1785_v49 = vmul.f32 %v4294_v38, %v5205_v23 }
 0x1df   : > { %1216 = vst.msk [vmem:[#allocation2 + $0x181] sm:$0xff] %vm1129_vm2, %v1127_v47  ;;  %v1915_v14 = vadd.f32 %v1883_v58, %v1814_v59  ;;  %v1617_v46 = vadd.f32 %v1585_v11, %v1517_v19  ;;  %v1984_v39 = vmul.f32 %v4299_v50, %v1351_v5  ;;  %v2014_v33 = vadd.f32 %v5174_v24, %v1914_v48 }
 0x1e0   : > { %v1815_v35 = vadd.f32 %v5145_v17, %v1715_v51  ;;  %v1519_v43 = vadd.f32 %v1487_v20, %v1419_v31  ;;  %v1816_v55 = vadd.f32 %v1784_v29, %v1716_v7  ;;  %v2083_v44 = vmul.f32 %v4836_v42, %v1450_v8 }
 0x1e1   : > { %v2015_v12 = vadd.f32 %v1983_v60, %v1915_v14  ;;  %v1717_v53 = vadd.f32 %v1685_v28, %v1617_v46  ;;  %v2113_v40 = vadd.f32 %v2081_v16, %v2013_v45  ;;  %v2114_v0 = vadd.f32 %v5177_v9, %v2014_v33  ;;  %v3844_v14 = vld [vmem:[%s5675_s4 + $0x8] ss:$0 sm:$0xff] }
 0x1e2   : > { %v1916_v22 = vadd.f32 %v1884_v30, %v1815_v35  ;;  %3789 = vpow2.f32 %v5187_v41  ;;  %v2315_v19 = vadd.f32 1.0, %v3784_v1  ;;  %v2316_v59 = vadd.f32 1.0, %v3786_v26 }
 0x1e3   : > { %v2115_v2 = vadd.f32 %v2083_v44, %v2015_v12  ;;  %v2084_v5 = vmul.f32 %v4836_v42, %v5205_v23  ;;  %v2152_v31 = vmul.f32 %v4858_v54, %v2113_v40  ;;  %v2153_v24 = vmul.f32 %v4858_v54, %v2114_v0 }
 0x1e4   : > { %v2016_v17 = vadd.f32 %v1984_v39, %v1916_v22  ;;  %v1817_v48 = vadd.f32 %v1785_v49, %v1717_v53  ;;  %v2317_v20 = vadd.f32 1.0, %v3788_v57  ;;  %3791 = vrcp.f32 %v2315_v19 }
 0x1e5   : > { %v2154_v8 = vmul.f32 %v4858_v54, %v2115_v2  ;;  %v5247_v41 = vadd.f32 %v4878_v62, %v2152_v31  ;;  %v5250_v11 = vadd.f32 %v4878_v62, %v2153_v24  ;;  %3793 = vrcp.f32 %v2316_v59  ;;  %v1651_v1 = vld [vmem:[#allocation2 + $0x189] sm:$0xff] }
 0x1e6   : > { %v1550_v16 = vld [vmem:[#allocation2 + $0x180] sm:$0xff]  ;;  %v1551_v9 = vld [vmem:[#allocation2 + $0x188] sm:$0xff]  ;;  %v2116_v45 = vadd.f32 %v2084_v5, %v2016_v17  ;;  %v1687_v26 = vmul.f32 %v4291_v37, %v1651_v1  ;;  %v1986_v49 = vmul.f32 %v4299_v50, %v1651_v1  ;;  %v2457_v2 = vadd.f32 %v5184_v10, %v5190_v4 }
 0x1e7   : > { %v1650_v28 = vld [vmem:[#allocation2 + $0x181] sm:$0xff]  ;;  %v1586_v42 = vmul.f32 %v4287_v32, %v1550_v16  ;;  %v1587_v23 = vmul.f32 %v4287_v32, %v1551_v9  ;;  %v1751_v29 = vld [vmem:[#allocation2 + $0x18a] sm:$0xff]  ;;  %v1885_v58 = vmul.f32 %v4306_v56, %v1550_v16  ;;  %v1886_v47 = vmul.f32 %v4306_v56, %v1551_v9  ;;  %v5796_v9 = vld [vmem:[#allocation20_spill] sm:$0xff] }
 0x1e8   : > { %v1686_v18 = vmul.f32 %v4291_v37, %v1650_v28  ;;  %v1750_v3 = vld [vmem:[#allocation2 + $0x182] sm:$0xff]  ;;  %v1787_v25 = vmul.f32 %v4294_v38, %v1751_v29  ;;  %v1985_v32 = vmul.f32 %v4299_v50, %v1650_v28  ;;  %v2086_v37 = vmul.f32 %v3844_v14, %v1751_v29 }
 0x1e9   : > { %v1786_v30 = vmul.f32 %v4294_v38, %v1750_v3  ;;  %v1618_v60 = vadd.f32 %v1586_v42, %v1518_v15  ;;  %v1619_v51 = vadd.f32 %v1587_v23, %v1519_v43  ;;  %v1917_v57 = vadd.f32 %v1885_v58, %v1816_v55  ;;  %v5799_v42 = vld [vmem:[#allocation26_spill] sm:$0xff] }
 0x1ea   : > { %v1918_v7 = vadd.f32 %v1886_v47, %v1817_v48  ;;  %v2085_v46 = vmul.f32 %v3844_v14, %v1750_v3  ;;  %v2155_v38 = vmul.f32 %v4858_v54, %v2116_v45  ;;  %v5267_v15 = vadd.f32 %v4878_v62, %v2154_v8 }
 0x1eb   : > { %v1718_v35 = vadd.f32 %v1686_v18, %v1618_v60  ;;  %v1719_v39 = vadd.f32 %v1687_v26, %v1619_v51  ;;  %v2017_v33 = vadd.f32 %v1985_v32, %v1917_v57  ;;  %v3320_v43 = vmul.f32 -1.442695, %v5247_v41 }
 0x1ec   : > { %v2018_v56 = vadd.f32 %v1986_v49, %v1918_v7  ;;  %v3321_v55 = vmul.f32 -1.442695, %v5250_v11  ;;  %v3790_v50 = vpop.eup %3789  ;;  %v5272_v22 = vadd.f32 %v4878_v62, %v2155_v38  ;;  %v3322_v0 = vmul.f32 -1.442695, %v5267_v15 }
 0x1ed   : > { %v1818_v12 = vadd.f32 %v1786_v30, %v1718_v35  ;;  %v1819_v44 = vadd.f32 %v1787_v25, %v1719_v39  ;;  %v2117_v53 = vadd.f32 %v2085_v46, %v2017_v33  ;;  %3795 = vpow2.f32 %v3320_v43 }
 0x1ee   : > { %v2118_v40 = vadd.f32 %v2086_v37, %v2018_v56  ;;  %v3792_v19 = vpop.eup %3791  ;;  %3797 = vpow2.f32 %v3321_v55  ;;  %v3323_v48 = vmul.f32 -1.442695, %v5272_v22  ;;  %v2318_v8 = vadd.f32 1.0, %v3790_v50 }
 0x1ef   : > { %v1919_v59 = vadd.f32 %v5055_v36, %v1818_v12  ;;  %v1920_v17 = vadd.f32 %v5058_v52, %v1819_v44  ;;  %v2156_v5 = vmul.f32 %v4858_v54, %v2117_v53  ;;  %v3794_v31 = vpop.eup %3793  ;;  %3799 = vpow2.f32 %v3322_v0  ;;  %v5797_v52 = vld [vmem:[#allocation18_spill] sm:$0xff] }
 0x1f0   : > { %v2157_v24 = vmul.f32 %v4858_v54, %v2118_v40  ;;  %3801 = vrcp.f32 %v2317_v20  ;;  %v5292_v4 = vmul.f32 %v5217_v21, %v5797_v52  ;;  %v5798_v54 = vld [vmem:[#allocation25_spill] sm:$0xff]  ;;  %v2459_v1 = vadd.f32 %v5194_v61, %v2457_v2 }
 0x1f1   : > { %v2019_v16 = vadd.f32 %v5061_v63, %v1919_v59  ;;  %v2020_v28 = vadd.f32 %v5796_v9, %v1920_v17  ;;  %v5285_v10 = vadd.f32 %v4878_v62, %v2156_v5  ;;  %3803 = vpow2.f32 %v3323_v48  ;;  %v3846_v61 = vld [vmem:[%s5677_s6] ss:$0 sm:$0xff] }
 0x1f2   : > { %v5288_v36 = vadd.f32 %v4878_v62, %v2157_v24  ;;  %3805 = vrcp.f32 %v2318_v8  ;;  %v5300_v20 = vmul.f32 %v3792_v19, %v5139_v27  ;;  %v3845_v62 = vld [vmem:[%s5676_s5] ss:$0 sm:$0xff]  ;;  %v2460_v29 = vsel %vm1129_vm2, %v5292_v4, 0.0 }
 0x1f3   : > { %v2119_v45 = vadd.f32 %v5798_v54, %v2019_v16  ;;  %v2120_v23 = vadd.f32 %v5799_v42, %v2020_v28  ;;  %v3324_v63 = vmul.f32 -1.442695, %v5285_v10  ;;  %v2461_v27 = vadd.f32 %v2460_v29, %v2459_v1 }
 0x1f4   : > { %v3325_v18 = vmul.f32 -1.442695, %v5288_v36  ;;  %v2462_v25 = vsel %vm1129_vm2, %v5300_v20, 0.0  ;;  %v5319_v49 = vmul.f32 %v3794_v31, %v5153_v6 }
 0x1f5   : > { %v2158_v21 = vmul.f32 %v3845_v62, %v2119_v45  ;;  %v2159_v3 = vmul.f32 %v3845_v62, %v2120_v23  ;;  %3807 = vpow2.f32 %v3324_v63  ;;  %v2463_v37 = vadd.f32 %v2462_v25, %v2461_v27 }
 0x1f6   : > { %3809 = vpow2.f32 %v3325_v18  ;;  %v2464_v56 = vsel %vm1129_vm2, %v5319_v49, 0.0 }
 0x1f7   : > { %v5310_v58 = vadd.f32 %v3846_v61, %v2158_v21  ;;  %v5312_v26 = vadd.f32 %v3846_v61, %v2159_v3  ;;  %v3796_v30 = vpop.eup %3795  ;;  %v2465_v6 = vadd.f32 %v2464_v56, %v2463_v37 }
 0x1f8   : > { %v3798_v47 = vpop.eup %3797  ;;  %v2319_v57 = vadd.f32 1.0, %v3796_v30 }
 0x1f9   : > { %v3326_v60 = vmul.f32 -1.442695, %v5310_v58  ;;  %v3327_v51 = vmul.f32 -1.442695, %v5312_v26  ;;  %v3800_v32 = vpop.eup %3799  ;;  %v2320_v7 = vadd.f32 1.0, %v3798_v47 }
 0x1fa   : > { %v3802_v14 = vpop.eup %3801  ;;  %v2321_v46 = vadd.f32 1.0, %v3800_v32 }
 0x1fb   : > { %3811 = vpow2.f32 %v3326_v60  ;;  %v3804_v35 = vpop.eup %3803  ;;  %v5322_v39 = vmul.f32 %v3802_v14, %v5162_v34  ;;  %v2577_v14 = vld [vmem:[%s5680_s9] sm:$0xf] }
 0x1fc   : > { %3813 = vpow2.f32 %v3327_v51  ;;  %v2322_v33 = vadd.f32 1.0, %v3804_v35  ;;  %v3806_v38 = vpop.eup %3805  ;;  %3501 = vmatpush3.msk.msra.mxu1 %vm598_vm0, %v2577_v14 }
 0x1fd   : > { %3815 = vrcp.f32 %v2319_v57  ;;  %v2466_v12 = vsel %vm1129_vm2, %v5322_v39, 0.0  ;;  %v5329_v34 = vmul.f32 %v3806_v38, %v5168_v13 }
 0x1fe   : > { %3817 = vrcp.f32 %v2320_v7  ;;  %v2467_v53 = vadd.f32 %v2466_v12, %v2465_v6  ;;  %v2698_v12 = vld [vmem:[%s5682_s11 + $0x8] sm:$0xff] }
 0x1ff   : > { %v3808_v43 = vpop.eup %3807  ;;  %3819 = vrcp.f32 %v2321_v46  ;;  %v2468_v19 = vsel %vm1129_vm2, %v5329_v34, 0.0  ;;  %v2496_v46 = vld [vmem:[%s5679_s8] sm:$0x1] }
 0x200   : > { %v3810_v55 = vpop.eup %3809  ;;  %v2323_v50 = vadd.f32 1.0, %v3808_v43  ;;  %3821 = vrcp.f32 %v2322_v33  ;;  %v2469_v5 = vadd.f32 %v2468_v19, %v2467_v53  ;;  %v2578_v53 = vld [vmem:[%s5681_s10] sm:$0x1] }
 0x201   : > { %v2324_v44 = vadd.f32 1.0, %v3810_v55 }
 0x202   : > { %3823 = vrcp.f32 %v2323_v50  ;;  %v2697_v50 = vld [vmem:[%s5682_s11] sm:$0xff] }
 0x203   : > { %3825 = vrcp.f32 %v2324_v44  ;;  %v3560_v44 = vpack.c.bf16 %v2698_v12, %v2697_v50 }
 0x205   : > { %v3812_v40 = vpop.eup %3811  ;;  %3561 = vmatprep.subr.bf16.mxu1 %v3560_v44 }
 0x206   : > { %v3814_v0 = vpop.eup %3813  ;;  %v2325_v2 = vadd.f32 1.0, %v3812_v40 }
 0x207   : > { %v3816_v59 = vpop.eup %3815  ;;  %v2326_v17 = vadd.f32 1.0, %v3814_v0 }
 0x208   : > { %v3818_v31 = vpop.eup %3817  ;;  %3827 = vrcp.f32 %v2325_v2  ;;  %v5334_v24 = vmul.f32 %v3816_v59, %v5247_v41 }
 0x209   : > { %v3820_v48 = vpop.eup %3819  ;;  %3829 = vrcp.f32 %v2326_v17  ;;  %v5337_v13 = vmul.f32 %v3818_v31, %v5250_v11  ;;  %v5800_v31 = vld [vmem:[#allocation3_spill] sm:$0xff] }
 0x20a   : > { %v3822_v8 = vpop.eup %3821  ;;  %v5340_v16 = vmul.f32 %v3820_v48, %v5267_v15  ;;  %v2470_v9 = vsel %vm1129_vm2, %v5334_v24, 0.0  ;;  %v5801_v48 = vsub.s32 0, %v5800_v31 }
 0x20b   : > { %v2471_v28 = vadd.f32 %v2470_v9, %v2469_v5  ;;  %v5345_v54 = vmul.f32 %v3822_v8, %v5272_v22  ;;  %v2472_v41 = vsel %vm1129_vm2, %v5337_v13, 0.0  ;;  %v5802_v9 = vld [vmem:[#allocation5_spill] sm:$0xff] }
 0x20c   : > { %v3824_v52 = vpop.eup %3823  ;;  %v2474_v45 = vsel %vm1129_vm2, %v5340_v16, 0.0 }
 0x20d   : > { %v3826_v11 = vpop.eup %3825  ;;  %v5352_v42 = vmul.f32 %v3824_v52, %v5285_v10  ;;  %v2473_v15 = vadd.f32 %v2472_v41, %v2471_v28  ;;  %v2476_v1 = vsel %vm1129_vm2, %v5345_v54, 0.0  ;;  %v5803_v52 = vld [vmem:[#allocation10_spill] sm:$0xff] }
 0x20e   : > { %v5355_v63 = vmul.f32 %v3826_v11, %v5288_v36 }
 0x20f   : > { %v2475_v23 = vadd.f32 %v2474_v45, %v2473_v15  ;;  %v2478_v22 = vsel %vm1129_vm2, %v5352_v42, 0.0  ;;  %v5804_v45 = vld [vmem:[#allocation11_spill] sm:$0xff]  ;;  %v5805_v15 = vld [vmem:[#allocation4_spill] sm:$0xff] }
 0x210   : > { %v2480_v36 = vsel %vm1129_vm2, %v5355_v63, 0.0 }
 0x211   : > { %v2477_v18 = vadd.f32 %v2476_v1, %v2475_v23  ;;  %v5806_v1 = vld [vmem:[#allocation8_spill] sm:$0xff] }
 0x212   : > { %v3828_v62 = vpop.eup %3827 }
 0x213   : > { %v3830_v21 = vpop.eup %3829  ;;  %v5362_v3 = vmul.f32 %v3828_v62, %v5310_v58  ;;  %v2479_v29 = vadd.f32 %v2478_v22, %v2477_v18  ;;  %v5807_v18 = vld [vmem:[#allocation7_spill] sm:$0xff] }
 0x214   : > { %v5365_v10 = vmul.f32 %v3830_v21, %v5312_v26  ;;  %v5808_v21 = vld [vmem:[#allocation24_spill] sm:$0xff] }
 0x215   : > { %v2481_v61 = vadd.f32 %v2480_v36, %v2479_v29  ;;  %v2482_v27 = vsel %vm1129_vm2, %v5362_v3, 0.0  ;;  %v5809_v36 = vld [vmem:[#allocation12_spill] sm:$0xff] }
 0x216   : > { %v2484_v25 = vsel %vm1129_vm2, %v5365_v10, 0.0 }
 0x217   : > { %v2483_v30 = vadd.f32 %v2482_v27, %v2481_v61  ;;  %v5810_v27 = vld [vmem:[#allocation14_spill] sm:$0xff] }
 0x219   : > { %v2485_v47 = vadd.f32 %v2484_v25, %v2483_v30  ;;  %v5811_v25 = vld [vmem:[#allocation15_spill] sm:$0xff] }
 0x21b   : > { %v2486_v60 = vrot.slane %v2485_v47, 4 }
 0x21d   : > { %v2487_v51 = vadd.f32 %v2486_v60, %v2485_v47  ;;  %v5812_v60 = vld [vmem:[#allocation6_spill] sm:$0xff] }
 0x21f   : > { %v2488_v58 = vrot.slane %v2487_v51, 2 }
 0x221   : > { %v2489_v57 = vadd.f32 %v2488_v58, %v2487_v51  ;;  %v5813_v58 = vld [vmem:[#allocation22_spill] sm:$0xff] }
 0x223   : > { %v2490_v32 = vrot.slane %v2489_v57, 1 }
 0x225   : > { %v2491_v7 = vadd.f32 %v2490_v32, %v2489_v57  ;;  %v5814_v32 = vld [vmem:[#allocation23_spill] sm:$0xff] }
 0x227   : > { %v2493_v26 = vmul.f32 0.00390625, %v2491_v7 }
 0x229   : > { %3498 = vmatmul.mubr.msk.f32.vlgmr.msra.gmra.mrb[32].mxu0 %vm1129_vm2, %v2493_v26  ;;  %v5815_v26 = vld [vmem:[#allocation16_spill] sm:$0xff] }
 0x2fc   : > { %v2566_v37 = vpop.f32.mrb[32].mxu0 }
 0x2fd   : > { %v2567_v35 = vadd.f32 %v2566_v37, %v2496_v46  ;;  %v3499_v33 = vpop.f32.mrb[33].mxu0  ;;  %v5816_v46 = vld [vmem:[#allocation17_spill] sm:$0xff] }
 0x2ff   : > { %v3329_v38 = vmul.f32 -1.442695, %v2567_v35 }
 0x301   : > { %3831 = vpow2.f32 %v3329_v38  ;;  %v5818_v38 = vld [vmem:[#allocation27_spill] sm:$0xff] }
 0x30b   : > { %v3832_v56 = vpop.eup %3831 }
 0x30c   : > { %v2573_v43 = vadd.f32 1.0, %v3832_v56 }
 0x30e   : > { %3833 = vrcp.f32 %v2573_v43  ;;  %v5819_v43 = vld [vmem:[#allocation13_spill] sm:$0xff] }
 0x318   : > { %v3834_v6 = vpop.eup %3833 }
 0x319   : > { %v2576_v55 = vmul.f32 %v3834_v6, %v2567_v35  ;;  %v5817_v35 = vld [vmem:[#allocation19_spill] sm:$0xff] }
 0x31b   : > { %3503 = vmatmul.mubr.msk.f32.vlgmr.msra.gmra.mrb[0].mxu1 %vm501_vm1, %v2576_v55  ;;  %v5820_v55 = vld [vmem:[#allocation9_spill] sm:$0xff] }
 0x31c   : > { %3563 = vmatpush3.bf16.msra.mxu1 %v3560_v44 }
 0x3ee   : > { %v2651_v40 = vpop.f32.mrb[0].mxu1 }
 0x3ef   : > { %v2652_v0 = vadd.f32 %v2651_v40, %v2578_v53  ;;  %v3504_v2 = vpop.f32.mrb[1].mxu1 }
 0x3f1   : > { %v3332_v19 = vmul.f32 -1.442695, %v2652_v0 }
 0x3f3   : > { %3835 = vpow2.f32 %v3332_v19 }
 0x3fd   : > { %v3836_v59 = vpop.eup %3835 }
 0x3fe   : > { %v2658_v17 = vadd.f32 1.0, %v3836_v59 }
 0x400   : > { %3837 = vrcp.f32 %v2658_v17 }
 0x40a   : > { %v3838_v5 = vpop.eup %3837 }
 0x40b   : > { %v5393_v8 = vrot.slane %v3838_v5, %v5801_v48  ;;  %v3847_v5 = vld [vmem:[%s3986_s20 + $0x8] sm:$0xff] }
 0x40d   : > { %v2665_v28 = vmul.f32 %v5393_v8, %v5802_v9  ;;  %v2666_v41 = vmul.f32 %v5393_v8, %v5803_v52  ;;  %v2667_v11 = vmul.f32 %v5393_v8, %v5804_v45  ;;  %v2668_v23 = vmul.f32 %v5393_v8, %v5805_v15  ;;  %v3848_v9 = vld [vmem:[%s3986_s20] sm:$0xff]  ;;  %v3849_v15 = vld [vmem:[%s3986_s20 + $0x18] sm:$0xff] }
 0x40e   : > { %v2669_v22 = vmul.f32 %v5393_v8, %v5806_v1  ;;  %v2670_v62 = vmul.f32 %v5393_v8, %v5807_v18  ;;  %v2671_v29 = vmul.f32 %v5393_v8, %v5808_v21  ;;  %v2672_v61 = vmul.f32 %v5393_v8, %v5809_v36  ;;  %v3850_v18 = vld [vmem:[%s3986_s20 + $0x10] sm:$0xff] }
 0x40f   : > { %3509 = vmatprep.mubr.msk.f32.mxu1 %vm1129_vm2, %v2665_v28  ;;  %v2673_v30 = vmul.f32 %v5393_v8, %v5810_v27  ;;  %v2674_v47 = vmul.f32 %v5393_v8, %v5811_v25  ;;  %v2675_v51 = vmul.f32 %v5393_v8, %v5812_v60  ;;  %v2676_v57 = vmul.f32 %v5393_v8, %v5813_v58  ;;  %v3851_v27 = vld [vmem:[%s3986_s20 + $0x28] sm:$0xff]  ;;  %v3852_v60 = vld [vmem:[%s3986_s20 + $0x20] sm:$0xff] }
 0x410   : > { %3510 = vmatmul.mubr.msk.f32.vlgmr.msra.gmra.mrb[2].mxu1 %vm1129_vm2, %v2666_v41  ;;  %v2677_v7 = vmul.f32 %v5393_v8, %v5814_v32  ;;  %v2678_v14 = vmul.f32 %v5393_v8, %v5815_v26  ;;  %v2679_v37 = vmul.f32 %v5393_v8, %v5816_v46  ;;  %v2680_v33 = vmul.f32 %v5393_v8, %v5817_v35  ;;  %v3853_v26 = vld [vmem:[%s3986_s20 + $0x38] sm:$0xff]  ;;  %v3854_v35 = vld [vmem:[%s3986_s20 + $0x30] sm:$0xff] }
 0x411   : > { %3512 = vmatprep.mubr.msk.f32.mxu1 %vm1129_vm2, %v2667_v11  ;;  %v2681_v56 = vmul.f32 %v5393_v8, %v5818_v38  ;;  %v2682_v6 = vmul.f32 %v5393_v8, %v5819_v43  ;;  %v2683_v50 = vmul.f32 %v5393_v8, %v5820_v55  ;;  %v2684_v12 = vmul.f32 %v5393_v8, %v5292_v4  ;;  %v3855_v55 = vld [vmem:[%s3986_s20 + $0x48] sm:$0xff] }
 0x412   : > { %v2685_v44 = vmul.f32 %v5393_v8, %v5300_v20  ;;  %v2686_v53 = vmul.f32 %v5393_v8, %v5319_v49  ;;  %v2687_v40 = vmul.f32 %v5393_v8, %v5322_v39  ;;  %v2688_v4 = vmul.f32 %v5393_v8, %v5329_v34 }
 0x413   : > { %v2689_v20 = vmul.f32 %v5393_v8, %v5334_v24  ;;  %v2690_v49 = vmul.f32 %v5393_v8, %v5337_v13  ;;  %v2691_v39 = vmul.f32 %v5393_v8, %v5340_v16  ;;  %v2692_v34 = vmul.f32 %v5393_v8, %v5345_v54 }
 0x414   : > { %3513 = vmatmul.mubr.msk.f32.gmra.mrb[4].mxu1 %vm1129_vm2, %v2668_v23  ;;  %v2693_v24 = vmul.f32 %v5393_v8, %v5352_v42  ;;  %v2694_v13 = vmul.f32 %v5393_v8, %v5355_v63  ;;  %v2695_v16 = vmul.f32 %v5393_v8, %v5362_v3  ;;  %v2696_v54 = vmul.f32 %v5393_v8, %v5365_v10  ;;  %v5494_v42 = vld [vmem:[%s5683_s12] ss:$0 sm:$0xff] }
 0x415   : > { %3515 = vmatprep.mubr.msk.f32.mxu1 %vm1129_vm2, %v2669_v22  ;;  %v5499_v3 = vld [vmem:[%s5684_s13] ss:$0 sm:$0xff] }
 0x418   : > { %3516 = vmatmul.mubr.msk.f32.gmra.mrb[6].mxu1 %vm1129_vm2, %v2670_v62 }
 0x419   : > { %3518 = vmatprep.mubr.msk.f32.mxu1 %vm1129_vm2, %v2671_v29 }
 0x41c   : > { %3519 = vmatmul.mubr.msk.f32.gmra.mrb[8].mxu1 %vm1129_vm2, %v2672_v61 }
 0x41d   : > { %3521 = vmatprep.mubr.msk.f32.mxu1 %vm1129_vm2, %v2673_v30 }
 0x420   : > { %3522 = vmatmul.mubr.msk.f32.gmra.mrb[10].mxu1 %vm1129_vm2, %v2674_v47 }
 0x421   : > { %3524 = vmatprep.mubr.msk.f32.mxu1 %vm1129_vm2, %v2675_v51 }
 0x424   : > { %3525 = vmatmul.mubr.msk.f32.gmra.mrb[12].mxu1 %vm1129_vm2, %v2676_v57 }
 0x425   : > { %3527 = vmatprep.mubr.msk.f32.mxu1 %vm1129_vm2, %v2677_v7 }
 0x428   : > { %3528 = vmatmul.mubr.msk.f32.gmra.mrb[14].mxu1 %vm1129_vm2, %v2678_v14 }
 0x429   : > { %3530 = vmatprep.mubr.msk.f32.mxu1 %vm1129_vm2, %v2679_v37 }
 0x42c   : > { %3531 = vmatmul.mubr.msk.f32.gmra.mrb[16].mxu1 %vm1129_vm2, %v2680_v33 }
 0x42d   : > { %3533 = vmatprep.mubr.msk.f32.mxu1 %vm1129_vm2, %v2681_v56 }
 0x430   : > { %3534 = vmatmul.mubr.msk.f32.gmra.mrb[18].mxu1 %vm1129_vm2, %v2682_v6 }
 0x431   : > { %3536 = vmatprep.mubr.msk.f32.mxu1 %vm1129_vm2, %v2683_v50 }
 0x434   : > { %3537 = vmatmul.mubr.msk.f32.gmra.mrb[20].mxu1 %vm1129_vm2, %v2684_v12 }
 0x435   : > { %3539 = vmatprep.mubr.msk.f32.mxu1 %vm1129_vm2, %v2685_v44 }
 0x438   : > { %3540 = vmatmul.mubr.msk.f32.gmra.mrb[22].mxu1 %vm1129_vm2, %v2686_v53  ;;  %v3856_v53 = vld [vmem:[%s3986_s20 + $0x40] sm:$0xff] }
 0x439   : > { %3542 = vmatprep.mubr.msk.f32.mxu1 %vm1129_vm2, %v2687_v40 }
 0x43c   : > { %3543 = vmatmul.mubr.msk.f32.gmra.mrb[24].mxu1 %vm1129_vm2, %v2688_v4 }
 0x43d   : > { %3545 = vmatprep.mubr.msk.f32.mxu1 %vm1129_vm2, %v2689_v20 }
 0x440   : > { %3546 = vmatmul.mubr.msk.f32.gmra.mrb[26].mxu1 %vm1129_vm2, %v2690_v49 }
 0x441   : > { %3548 = vmatprep.mubr.msk.f32.mxu1 %vm1129_vm2, %v2691_v39 }
 0x444   : > { %3549 = vmatmul.mubr.msk.f32.gmra.mrb[28].mxu1 %vm1129_vm2, %v2692_v34  ;;  %v3857_v34 = vld [vmem:[%s3986_s20 + $0x58] sm:$0xff] }
 0x445   : > { %3551 = vmatprep.mubr.msk.f32.mxu1 %vm1129_vm2, %v2693_v24 }
 0x448   : > { %3552 = vmatmul.mubr.msk.f32.gmra.mrb[30].mxu1 %vm1129_vm2, %v2694_v13 }
 0x449   : > { %3554 = vmatprep.mubr.msk.f32.mxu1 %vm1129_vm2, %v2695_v16 }
 0x44c   : > { %3555 = vmatmul.mubr.msk.f32.gmra.mrb[32].mxu1 %vm1129_vm2, %v2696_v54  ;;  %v3858_v54 = vld [vmem:[%s3986_s20 + $0x50] sm:$0xff] }
 0x4e3   : > { %v3511_v63 = vpop.f32.mrb[2].mxu1 }
 0x4e4   : > { %v3028_v0 = vmul.f32 %v3511_v63, %v5494_v42  ;;  %v2861_v2 = vpop.f32.mrb[3].mxu1 }
 0x4e5   : > { %v3027_v19 = vmul.f32 %v5494_v42, %v2861_v2 }
 0x4e6   : > { %v3067_v10 = vadd.f32 %v5499_v3, %v3028_v0 }
 0x4e7   : > { %v3066_v59 = vadd.f32 %v5499_v3, %v3027_v19  ;;  %v3514_v17 = vpop.f32.mrb[4].mxu1 }
 0x4e8   : > { %v3099_v31 = vadd.f32 %v3847_v5, %v3067_v10  ;;  %v3030_v48 = vmul.f32 %v3514_v17, %v5494_v42  ;;  %v2871_v8 = vpop.f32.mrb[5].mxu1 }
 0x4e9   : > { %v3098_v28 = vadd.f32 %v3848_v9, %v3066_v59  ;;  %v3029_v52 = vmul.f32 %v5494_v42, %v2871_v8  ;;  %v3859_v59 = vld [vmem:[%s3986_s20 + $0x68] sm:$0xff] }
 0x4ea   : > { %3131 = vst.msk [vmem:[%s5509_s21 + $0x8] sm:$0xff] %vm501_vm1, %v3099_v31  ;;  %v3069_v41 = vadd.f32 %v5499_v3, %v3030_v48  ;;  %v3860_v48 = vld [vmem:[%s3986_s20 + $0x60] sm:$0xff] }
 0x4eb   : > { %3130 = vst.msk [vmem:[%s5509_s21] sm:$0xff] %vm501_vm1, %v3098_v28  ;;  %v3068_v45 = vadd.f32 %v5499_v3, %v3029_v52  ;;  %v3517_v11 = vpop.f32.mrb[6].mxu1 }
 0x4ec   : > { %v3101_v23 = vadd.f32 %v3849_v15, %v3069_v41  ;;  %v3032_v1 = vmul.f32 %v3517_v11, %v5494_v42  ;;  %v2881_v22 = vpop.f32.mrb[7].mxu1 }
 0x4ed   : > { %v3100_v62 = vadd.f32 %v3850_v18, %v3068_v45  ;;  %v3031_v21 = vmul.f32 %v5494_v42, %v2881_v22  ;;  %v3861_v45 = vld [vmem:[%s3986_s20 + $0x78] sm:$0xff] }
 0x4ee   : > { %3133 = vst.msk [vmem:[%s5509_s21 + $0x18] sm:$0xff] %vm501_vm1, %v3101_v23  ;;  %v3071_v29 = vadd.f32 %v5499_v3, %v3032_v1  ;;  %v3862_v1 = vld [vmem:[%s3986_s20 + $0x70] sm:$0xff] }
 0x4ef   : > { %3132 = vst.msk [vmem:[%s5509_s21 + $0x10] sm:$0xff] %vm501_vm1, %v3100_v62  ;;  %v3070_v36 = vadd.f32 %v5499_v3, %v3031_v21  ;;  %v3520_v61 = vpop.f32.mrb[8].mxu1 }
 0x4f0   : > { %v3103_v30 = vadd.f32 %v3851_v27, %v3071_v29  ;;  %v3034_v25 = vmul.f32 %v3520_v61, %v5494_v42  ;;  %v2891_v47 = vpop.f32.mrb[9].mxu1 }
 0x4f1   : > { %v3102_v51 = vadd.f32 %v3852_v60, %v3070_v36  ;;  %v3033_v58 = vmul.f32 %v5494_v42, %v2891_v47  ;;  %v3863_v36 = vld [vmem:[%s3986_s20 + $0x88] sm:$0xff] }
 0x4f2   : > { %3135 = vst.msk [vmem:[%s5509_s21 + $0x28] sm:$0xff] %vm501_vm1, %v3103_v30  ;;  %v3073_v57 = vadd.f32 %v5499_v3, %v3034_v25  ;;  %v3864_v25 = vld [vmem:[%s3986_s20 + $0x80] sm:$0xff] }
 0x4f3   : > { %3134 = vst.msk [vmem:[%s5509_s21 + $0x20] sm:$0xff] %vm501_vm1, %v3102_v51  ;;  %v3072_v32 = vadd.f32 %v5499_v3, %v3033_v58  ;;  %v3523_v7 = vpop.f32.mrb[10].mxu1 }
 0x4f4   : > { %v3105_v14 = vadd.f32 %v3853_v26, %v3073_v57  ;;  %v3036_v46 = vmul.f32 %v3523_v7, %v5494_v42  ;;  %v2901_v37 = vpop.f32.mrb[11].mxu1 }
 0x4f5   : > { %v3104_v33 = vadd.f32 %v3854_v35, %v3072_v32  ;;  %v3035_v38 = vmul.f32 %v5494_v42, %v2901_v37  ;;  %v3865_v32 = vld [vmem:[%s3986_s20 + $0x98] sm:$0xff] }
 0x4f6   : > { %3137 = vst.msk [vmem:[%s5509_s21 + $0x38] sm:$0xff] %vm501_vm1, %v3105_v14  ;;  %v3075_v56 = vadd.f32 %v5499_v3, %v3036_v46  ;;  %v3866_v46 = vld [vmem:[%s3986_s20 + $0x90] sm:$0xff] }
 0x4f7   : > { %3136 = vst.msk [vmem:[%s5509_s21 + $0x30] sm:$0xff] %vm501_vm1, %v3104_v33  ;;  %v3074_v43 = vadd.f32 %v5499_v3, %v3035_v38  ;;  %v3526_v6 = vpop.f32.mrb[12].mxu1 }
 0x4f8   : > { %v3107_v50 = vadd.f32 %v3855_v55, %v3075_v56  ;;  %v3038_v12 = vmul.f32 %v3526_v6, %v5494_v42  ;;  %v2911_v44 = vpop.f32.mrb[13].mxu1 }
 0x4f9   : > { %v3106_v40 = vadd.f32 %v3856_v53, %v3074_v43  ;;  %v3037_v4 = vmul.f32 %v5494_v42, %v2911_v44  ;;  %v3867_v43 = vld [vmem:[%s3986_s20 + $0xa8] sm:$0xff] }
 0x4fa   : > { %3139 = vst.msk [vmem:[%s5509_s21 + $0x48] sm:$0xff] %vm501_vm1, %v3107_v50  ;;  %v3077_v20 = vadd.f32 %v5499_v3, %v3038_v12  ;;  %v3868_v12 = vld [vmem:[%s3986_s20 + $0xa0] sm:$0xff] }
 0x4fb   : > { %3138 = vst.msk [vmem:[%s5509_s21 + $0x40] sm:$0xff] %vm501_vm1, %v3106_v40  ;;  %v3076_v49 = vadd.f32 %v5499_v3, %v3037_v4  ;;  %v3529_v39 = vpop.f32.mrb[14].mxu1 }
 0x4fc   : > { %v3109_v24 = vadd.f32 %v3857_v34, %v3077_v20  ;;  %v3040_v13 = vmul.f32 %v3529_v39, %v5494_v42  ;;  %v2921_v16 = vpop.f32.mrb[15].mxu1 }
 0x4fd   : > { %v3108_v63 = vadd.f32 %v3858_v54, %v3076_v49  ;;  %v3039_v0 = vmul.f32 %v5494_v42, %v2921_v16  ;;  %v3869_v49 = vld [vmem:[%s3986_s20 + $0xb8] sm:$0xff] }
 0x4fe   : > { %3141 = vst.msk [vmem:[%s5509_s21 + $0x58] sm:$0xff] %vm501_vm1, %v3109_v24  ;;  %v3079_v2 = vadd.f32 %v5499_v3, %v3040_v13  ;;  %v3870_v13 = vld [vmem:[%s3986_s20 + $0xb0] sm:$0xff] }
 0x4ff   : > { %3140 = vst.msk [vmem:[%s5509_s21 + $0x50] sm:$0xff] %vm501_vm1, %v3108_v63  ;;  %v3078_v19 = vadd.f32 %v5499_v3, %v3039_v0  ;;  %v3532_v10 = vpop.f32.mrb[16].mxu1 }
 0x500   : > { %v3111_v17 = vadd.f32 %v3859_v59, %v3079_v2  ;;  %v3042_v5 = vmul.f32 %v3532_v10, %v5494_v42  ;;  %v2931_v31 = vpop.f32.mrb[17].mxu1 }
 0x501   : > { %v3110_v8 = vadd.f32 %v3860_v48, %v3078_v19  ;;  %v3041_v9 = vmul.f32 %v5494_v42, %v2931_v31  ;;  %v3871_v19 = vld [vmem:[%s3986_s20 + $0xc8] sm:$0xff] }
 0x502   : > { %3143 = vst.msk [vmem:[%s5509_s21 + $0x68] sm:$0xff] %vm501_vm1, %v3111_v17  ;;  %v3081_v28 = vadd.f32 %v5499_v3, %v3042_v5  ;;  %v3872_v5 = vld [vmem:[%s3986_s20 + $0xc0] sm:$0xff] }
 0x503   : > { %3142 = vst.msk [vmem:[%s5509_s21 + $0x60] sm:$0xff] %vm501_vm1, %v3110_v8  ;;  %v3080_v52 = vadd.f32 %v5499_v3, %v3041_v9  ;;  %v3535_v41 = vpop.f32.mrb[18].mxu1 }
 0x504   : > { %v3113_v11 = vadd.f32 %v3861_v45, %v3081_v28  ;;  %v3044_v15 = vmul.f32 %v3535_v41, %v5494_v42  ;;  %v2941_v23 = vpop.f32.mrb[19].mxu1 }
 0x505   : > { %v3112_v22 = vadd.f32 %v3862_v1, %v3080_v52  ;;  %v3043_v18 = vmul.f32 %v5494_v42, %v2941_v23  ;;  %v3873_v52 = vld [vmem:[%s3986_s20 + $0xd8] sm:$0xff] }
 0x506   : > { %3145 = vst.msk [vmem:[%s5509_s21 + $0x78] sm:$0xff] %vm501_vm1, %v3113_v11  ;;  %v3083_v62 = vadd.f32 %v5499_v3, %v3044_v15  ;;  %v3874_v15 = vld [vmem:[%s3986_s20 + $0xd0] sm:$0xff] }
 0x507   : > { %3144 = vst.msk [vmem:[%s5509_s21 + $0x70] sm:$0xff] %vm501_vm1, %v3112_v22  ;;  %v3082_v21 = vadd.f32 %v5499_v3, %v3043_v18  ;;  %v3538_v29 = vpop.f32.mrb[20].mxu1 }
 0x508   : > { %v3115_v61 = vadd.f32 %v3863_v36, %v3083_v62  ;;  %v3046_v27 = vmul.f32 %v3538_v29, %v5494_v42  ;;  %v2951_v30 = vpop.f32.mrb[21].mxu1 }
 0x509   : > { %v3114_v47 = vadd.f32 %v3864_v25, %v3082_v21  ;;  %v3045_v60 = vmul.f32 %v5494_v42, %v2951_v30  ;;  %v3875_v21 = vld [vmem:[%s3986_s20 + $0xe8] sm:$0xff] }
 0x50a   : > { %3147 = vst.msk [vmem:[%s5509_s21 + $0x88] sm:$0xff] %vm501_vm1, %v3115_v61  ;;  %v3085_v51 = vadd.f32 %v5499_v3, %v3046_v27  ;;  %v3876_v27 = vld [vmem:[%s3986_s20 + $0xe0] sm:$0xff] }
 0x50b   : > { %3146 = vst.msk [vmem:[%s5509_s21 + $0x80] sm:$0xff] %vm501_vm1, %v3114_v47  ;;  %v3084_v58 = vadd.f32 %v5499_v3, %v3045_v60  ;;  %v3541_v57 = vpop.f32.mrb[22].mxu1 }
 0x50c   : > { %v3117_v7 = vadd.f32 %v3865_v32, %v3085_v51  ;;  %v3048_v26 = vmul.f32 %v3541_v57, %v5494_v42  ;;  %v2961_v14 = vpop.f32.mrb[23].mxu1  ;;  %v3877_v51 = vld [vmem:[%s3986_s20 + $0xf8] sm:$0xff]  ;;  %v3878_v57 = vld [vmem:[%s3986_s20 + $0xf0] sm:$0xff] }
 0x50d   : > { %v3116_v37 = vadd.f32 %v3866_v46, %v3084_v58  ;;  %v3047_v35 = vmul.f32 %v5494_v42, %v2961_v14 }
 0x50e   : > { %3149 = vst.msk [vmem:[%s5509_s21 + $0x98] sm:$0xff] %vm501_vm1, %v3117_v7  ;;  %v3087_v33 = vadd.f32 %v5499_v3, %v3048_v26 }
 0x50f   : > { %3148 = vst.msk [vmem:[%s5509_s21 + $0x90] sm:$0xff] %vm501_vm1, %v3116_v37  ;;  %v3086_v38 = vadd.f32 %v5499_v3, %v3047_v35  ;;  %v3544_v56 = vpop.f32.mrb[24].mxu1 }
 0x510   : > { %v3119_v6 = vadd.f32 %v3867_v43, %v3087_v33  ;;  %v3050_v55 = vmul.f32 %v3544_v56, %v5494_v42  ;;  %v2971_v50 = vpop.f32.mrb[25].mxu1 }
 0x511   : > { %v3118_v44 = vadd.f32 %v3868_v12, %v3086_v38  ;;  %v3049_v53 = vmul.f32 %v5494_v42, %v2971_v50 }
 0x512   : > { %3151 = vst.msk [vmem:[%s5509_s21 + $0xa8] sm:$0xff] %vm501_vm1, %v3119_v6  ;;  %v3089_v40 = vadd.f32 %v5499_v3, %v3050_v55 }
 0x513   : > { %3150 = vst.msk [vmem:[%s5509_s21 + $0xa0] sm:$0xff] %vm501_vm1, %v3118_v44  ;;  %v3088_v4 = vadd.f32 %v5499_v3, %v3049_v53  ;;  %v3547_v20 = vpop.f32.mrb[26].mxu1 }
 0x514   : > { %v3121_v39 = vadd.f32 %v3869_v49, %v3089_v40  ;;  %v3052_v34 = vmul.f32 %v3547_v20, %v5494_v42  ;;  %v2981_v24 = vpop.f32.mrb[27].mxu1 }
 0x515   : > { %v3120_v16 = vadd.f32 %v3870_v13, %v3088_v4  ;;  %v3051_v54 = vmul.f32 %v5494_v42, %v2981_v24 }
 0x516   : > { %3153 = vst.msk [vmem:[%s5509_s21 + $0xb8] sm:$0xff] %vm501_vm1, %v3121_v39  ;;  %v3091_v63 = vadd.f32 %v5499_v3, %v3052_v34 }
 0x517   : > { %3152 = vst.msk [vmem:[%s5509_s21 + $0xb0] sm:$0xff] %vm501_vm1, %v3120_v16  ;;  %v3090_v0 = vadd.f32 %v5499_v3, %v3051_v54  ;;  %v3550_v2 = vpop.f32.mrb[28].mxu1 }
 0x518   : > { %v3123_v10 = vadd.f32 %v3871_v19, %v3091_v63  ;;  %v3054_v59 = vmul.f32 %v3550_v2, %v5494_v42  ;;  %v2991_v17 = vpop.f32.mrb[29].mxu1 }
 0x519   : > { %v3122_v31 = vadd.f32 %v3872_v5, %v3090_v0  ;;  %v3053_v48 = vmul.f32 %v5494_v42, %v2991_v17 }
 0x51a   : > { %3155 = vst.msk [vmem:[%s5509_s21 + $0xc8] sm:$0xff] %vm501_vm1, %v3123_v10  ;;  %v3093_v8 = vadd.f32 %v5499_v3, %v3054_v59 }
 0x51b   : > { %3154 = vst.msk [vmem:[%s5509_s21 + $0xc0] sm:$0xff] %vm501_vm1, %v3122_v31  ;;  %v3092_v9 = vadd.f32 %v5499_v3, %v3053_v48  ;;  %v3553_v28 = vpop.f32.mrb[30].mxu1 }
 0x51c   : > { %v3125_v41 = vadd.f32 %v3873_v52, %v3093_v8  ;;  %v3056_v45 = vmul.f32 %v3553_v28, %v5494_v42  ;;  %v3001_v11 = vpop.f32.mrb[31].mxu1 }
 0x51d   : > { %v3124_v23 = vadd.f32 %v3874_v15, %v3092_v9  ;;  %v3055_v1 = vmul.f32 %v5494_v42, %v3001_v11 }
 0x51e   : > { %3157 = vst.msk [vmem:[%s5509_s21 + $0xd8] sm:$0xff] %vm501_vm1, %v3125_v41  ;;  %v3095_v22 = vadd.f32 %v5499_v3, %v3056_v45 }
 0x51f   : > { %3156 = vst.msk [vmem:[%s5509_s21 + $0xd0] sm:$0xff] %vm501_vm1, %v3124_v23  ;;  %v3094_v18 = vadd.f32 %v5499_v3, %v3055_v1  ;;  %v3556_v62 = vpop.f32.mrb[32].mxu1 }
 0x520   : > { %v3127_v29 = vadd.f32 %v3875_v21, %v3095_v22  ;;  %v3058_v36 = vmul.f32 %v3556_v62, %v5494_v42  ;;  %v3011_v61 = vpop.f32.mrb[33].mxu1 }
 0x521   : > { %v3126_v30 = vadd.f32 %v3876_v27, %v3094_v18  ;;  %v3057_v25 = vmul.f32 %v5494_v42, %v3011_v61 }
 0x522   : > { %3159 = vst.msk [vmem:[%s5509_s21 + $0xe8] sm:$0xff] %vm501_vm1, %v3127_v29  ;;  %v3097_v47 = vadd.f32 %v5499_v3, %v3058_v36 }
 0x523   : > { %3158 = vst.msk [vmem:[%s5509_s21 + $0xe0] sm:$0xff] %vm501_vm1, %v3126_v30  ;;  %v3096_v60 = vadd.f32 %v5499_v3, %v3057_v25 }
 0x524   : > { %v3129_v58 = vadd.f32 %v3877_v51, %v3097_v47 }
 0x525   : > { %v3128_v32 = vadd.f32 %v3878_v57, %v3096_v60 }
 0x526   : > { %3161 = vst.msk [vmem:[%s5509_s21 + $0xf8] sm:$0xff] %vm501_vm1, %v3129_v58 }
 0x527   : > { %3160 = vst.msk [vmem:[%s5509_s21 + $0xf0] sm:$0xff] %vm501_vm1, %v3128_v32 }
 0x528 PF: > { %s24_s29 = sadd.s32 1, %s3885_s29  }
 0x529   : > { %p21_p4 = scmp.ge.s32.totalorder %s24_s29, 4  }
 0x52b   :  { %23 = sbr.rel (!%p21_p4) target bundleno = 1 (0x1), region = 108 }

</bundles_post_ra>
